<compile_context>
chip_gen: v7x
topology: tpu7x:2x2x1
jax: 0.10.0
libtpu: 0.0.40
codegen_flags: <defaults>
</compile_context>

<pallas_src>
import jax
import jax.numpy as jnp
from jax.experimental import pallas as pl
from jax.experimental.pallas import tpu as pltpu

_LANE = 128   # TPU lane width; channels are padded to a multiple of this
_LEFT = 8     # column offset of the conv2-scratch interior (sublane aligned)


def basic_block_kernel(xpad_ref, w1_ref, w2_ref, s1_ref, b1_ref, s2_ref, b2_ref,
                       out_ref, mid_ref):
    # xpad_ref: (1, H+2, W+2, Cp) f32       padded input (residual = interior)
    # w1_ref:   (9*Cp, Cp) bf16             conv1 weights, im2col layout
    # w2_ref:   (9*Cp, Cp) bf16             conv2 weights, im2col layout
    # s*/b*:    (1, Cp) f32                 folded BN scale / bias
    # out_ref:  (1, H, W, Cp) f32
    # mid_ref:  (H+2, _LEFT+W+1, Cp) bf16   conv2 input scratch (zero halo)
    Hp, Wp, C = xpad_ref.shape[1], xpad_ref.shape[2], xpad_ref.shape[3]
    H, W = Hp - 2, Wp - 2
    Wm = mid_ref.shape[1]

    # Hoisted BN parameters (loaded / broadcast once, f32 epilogue on the VPU).
    s1 = s1_ref[...]
    b1 = b1_ref[...]
    s2 = s2_ref[...]
    b2 = b2_ref[...]

    xpad = xpad_ref[0]                       # (H+2, W+2, C) f32 (residual source)
    x_bf = xpad.astype(jnp.bfloat16)         # bf16 operands for the MXU

    # ---- conv1: im2col of the 9 shifted windows -> one deep-K matmul ----
    col1 = jnp.concatenate(
        [x_bf[dy:dy + H, dx:dx + W, :].reshape(H * W, C)
         for dy in range(3) for dx in range(3)], axis=-1)          # (H*W, 9*C) bf16
    acc1 = jnp.dot(col1, w1_ref[...], preferred_element_type=jnp.float32)

    # ---- bn1 (folded) + relu, in f32 ----
    out1 = jnp.maximum(acc1 * s1 + b1, 0.0)

    # ---- conv2 input scratch: zero only the 1-pixel halo (cheap and correct
    # even when the batch axis is sharded across TensorCores), then write the
    # interior with a sublane-aligned store (column offset _LEFT == 8) ----
    zrow = jnp.zeros((1, Wm, C), jnp.bfloat16)
    zcol = jnp.zeros((Hp, 1, C), jnp.bfloat16)
    mid_ref[pl.ds(0, 1), :, :] = zrow
    mid_ref[pl.ds(H + 1, 1), :, :] = zrow
    mid_ref[:, pl.ds(_LEFT - 1, 1), :] = zcol
    mid_ref[:, pl.ds(_LEFT + W, 1), :] = zcol
    mid_ref[pl.ds(1, H), pl.ds(_LEFT, W), :] = (
        out1.astype(jnp.bfloat16).reshape(H, W, C))

    # ---- conv2: same im2col / single deep-K matmul on the bf16 scratch ----
    mid = mid_ref[...]                       # (H+2, Wm, C) bf16
    col2 = jnp.concatenate(
        [mid[dy:dy + H, _LEFT - 1 + dx:_LEFT - 1 + dx + W, :].reshape(H * W, C)
         for dy in range(3) for dx in range(3)], axis=-1)          # (H*W, 9*C) bf16
    acc2 = jnp.dot(col2, w2_ref[...], preferred_element_type=jnp.float32)

    # ---- bn2 (folded) + residual add + relu, single lane-dense store ----
    out2 = acc2 * s2 + b2
    resid = xpad[1:H + 1, 1:W + 1, :]        # residual from padded-input interior (f32)
    y = jnp.maximum(out2.reshape(H, W, C) + resid, 0.0)
    out_ref[0] = y.astype(out_ref.dtype)


def _round_up(n, m):
    return ((n + m - 1) // m) * m


def basic_block_forward(x_nchw, w1_oihw, w2_oihw, bn1, bn2, eps=1e-5):
    """x_nchw: (N, C, H, W).  Weights in PyTorch OIHW.  bn* = (gamma, beta, mean, var)."""
    g1, be1, m1, v1 = bn1
    g2, be2, m2, v2 = bn2
    s1 = g1 / jnp.sqrt(v1 + eps)
    b1 = be1 - m1 * s1
    s2 = g2 / jnp.sqrt(v2 + eps)
    b2 = be2 - m2 * s2

    N, Cin, H, W = x_nchw.shape
    Cout = w1_oihw.shape[0]
    assert Cin == Cout, "stride=1 / downsample=None BasicBlock requires inplanes == planes"
    Cp = _round_up(Cout, _LANE)

    # Glue (outside the kernel): NCHW -> NHWC, channel pad to lane width,
    # 1-pixel spatial halo for conv1.
    x = jnp.transpose(x_nchw, (0, 2, 3, 1))
    xpad = jnp.pad(x, ((0, 0), (1, 1), (1, 1), (0, Cp - Cin)))

    def prep_w(w_oihw):
        w = jnp.transpose(w_oihw, (2, 3, 1, 0))                    # OIHW -> HWIO
        w = jnp.pad(w, ((0, 0), (0, 0),
                        (0, Cp - w.shape[2]), (0, Cp - w.shape[3])))
        return w.reshape(9 * Cp, Cp).astype(jnp.bfloat16)          # im2col layout

    def prep_sb(v):
        return jnp.pad(v, (0, Cp - v.shape[0])).reshape(1, Cp).astype(jnp.float32)

    w1 = prep_w(w1_oihw)
    w2 = prep_w(w2_oihw)

    out = pl.pallas_call(
        basic_block_kernel,
        out_shape=jax.ShapeDtypeStruct((N, H, W, Cp), x.dtype),
        grid_spec=pltpu.PrefetchScalarGridSpec(
            num_scalar_prefetch=0,
            grid=(N,),
            in_specs=[
                pl.BlockSpec((1, H + 2, W + 2, Cp), lambda n: (n, 0, 0, 0)),
                pl.BlockSpec((9 * Cp, Cp), lambda n: (0, 0)),
                pl.BlockSpec((9 * Cp, Cp), lambda n: (0, 0)),
                pl.BlockSpec((1, Cp), lambda n: (0, 0)),
                pl.BlockSpec((1, Cp), lambda n: (0, 0)),
                pl.BlockSpec((1, Cp), lambda n: (0, 0)),
                pl.BlockSpec((1, Cp), lambda n: (0, 0)),
            ],
            out_specs=pl.BlockSpec((1, H, W, Cp), lambda n: (n, 0, 0, 0)),
            scratch_shapes=[pltpu.VMEM((H + 2, _LEFT + W + 1, Cp), jnp.bfloat16)],
        ),
        compiler_params=pltpu.CompilerParams(
            dimension_semantics=("parallel",),
            vmem_limit_bytes=32 * 1024 * 1024),
    )(xpad, w1, w2, prep_sb(s1), prep_sb(b1), prep_sb(s2), prep_sb(b2))

    # Strip channel padding, NHWC -> NCHW.
    return jnp.transpose(out[..., :Cout], (0, 3, 1, 2))


def reference_forward(x, w1, w2, bn1, bn2, eps=1e-5):
    """Pure-JAX reference matching the PyTorch forward (eval-mode BN), f32."""
    def conv(a, w):
        return jax.lax.conv_general_dilated(
            a, w, window_strides=(1, 1), padding=((1, 1), (1, 1)),
            dimension_numbers=("NCHW", "OIHW", "NCHW"))

    def bn(a, p):
        g, b, m, v = p
        return ((a - m[None, :, None, None]) /
                jnp.sqrt(v[None, :, None, None] + eps)) * g[None, :, None, None] \
               + b[None, :, None, None]

    out = jax.nn.relu(bn(conv(x, w1), bn1))
    out = bn(conv(out, w2), bn2)
    return jax.nn.relu(out + x)


if __name__ == "__main__":
    # Small shapes consistent with BasicBlock(inplanes=4, planes=4, stride=1).
    N, C, H, W = 2, 4, 16, 16
    key = jax.random.PRNGKey(0)
    ks = jax.random.split(key, 9)

    x = jax.random.normal(ks[0], (N, C, H, W), jnp.float32)
    w1 = jax.random.normal(ks[1], (C, C, 3, 3), jnp.float32) * 0.1   # conv1 (OIHW)
    w2 = jax.random.normal(ks[2], (C, C, 3, 3), jnp.float32) * 0.1   # conv2 (OIHW)

    bn1 = (1.0 + 0.1 * jax.random.normal(ks[3], (C,), jnp.float32),   # gamma
           0.1 * jax.random.normal(ks[4], (C,), jnp.float32),         # beta
           0.1 * jax.random.normal(ks[5], (C,), jnp.float32),         # running_mean
           1.0 + 0.1 * jax.nn.softplus(jax.random.normal(ks[6], (C,), jnp.float32)))  # running_var
    bn2 = (1.0 + 0.1 * jax.random.normal(ks[7], (C,), jnp.float32),
           0.1 * jax.random.normal(ks[8], (C,), jnp.float32),
           jnp.zeros((C,), jnp.float32),
           jnp.ones((C,), jnp.float32))

    out = basic_block_forward(x, w1, w2, bn1, bn2)
    out = jax.block_until_ready(out)

    ref = reference_forward(x, w1, w2, bn1, bn2)
    assert out.shape == (N, C, H, W)
    # bf16 MXU operands (f32 accumulation) -> loosened tolerance vs f32 reference.
    assert jnp.allclose(out, ref, atol=5e-2, rtol=5e-2), \
        f"max abs err {jnp.max(jnp.abs(out - ref))}"

    print("KERNEL_OK")
</pallas_src>

<mosaic_0001>
module attributes {stable_mosaic.version = 11 : i64} {
  func.func @basic_block_kernel(%arg0: i32, %arg1: memref<1x18x18x128xf32, #tpu.memory_space<vmem>>, %arg2: memref<1152x128xbf16, #tpu.memory_space<vmem>>, %arg3: memref<1152x128xbf16, #tpu.memory_space<vmem>>, %arg4: memref<1x128xf32, #tpu.memory_space<vmem>>, %arg5: memref<1x128xf32, #tpu.memory_space<vmem>>, %arg6: memref<1x128xf32, #tpu.memory_space<vmem>>, %arg7: memref<1x128xf32, #tpu.memory_space<vmem>>, %arg8: memref<1x16x16x128xf32, #tpu.memory_space<vmem>>, %arg9: memref<18x25x128xbf16, #tpu.memory_space<vmem>>) attributes {dimension_semantics = [#tpu.dimension_semantics<parallel>], iteration_bounds = array<i64: 2>, scalar_prefetch = 0 : i64, scratch_operands = 1 : i64, tpu.core_type = #tpu.core_type<tc>, window_params = [{transform_indices = @transform_0, window_bounds = array<i64: 1, 18, 18, 128>}, {pipeline_mode = #tpu.pipeline_mode<synchronous>, transform_indices = @transform_1, window_bounds = array<i64: 1152, 128>}, {pipeline_mode = #tpu.pipeline_mode<synchronous>, transform_indices = @transform_2, window_bounds = array<i64: 1152, 128>}, {pipeline_mode = #tpu.pipeline_mode<synchronous>, transform_indices = @transform_3, window_bounds = array<i64: 1, 128>}, {pipeline_mode = #tpu.pipeline_mode<synchronous>, transform_indices = @transform_4, window_bounds = array<i64: 1, 128>}, {pipeline_mode = #tpu.pipeline_mode<synchronous>, transform_indices = @transform_5, window_bounds = array<i64: 1, 128>}, {pipeline_mode = #tpu.pipeline_mode<synchronous>, transform_indices = @transform_6, window_bounds = array<i64: 1, 128>}, {transform_indices = @transform_7, window_bounds = array<i64: 1, 16, 16, 128>}]} {
    %c0 = arith.constant 0 : index
    %c0_0 = arith.constant 0 : index
    %0 = vector.load %arg4[%c0, %c0_0] : memref<1x128xf32, #tpu.memory_space<vmem>>, vector<1x128xf32>
    %c0_1 = arith.constant 0 : index
    %c0_2 = arith.constant 0 : index
    %1 = vector.load %arg5[%c0_1, %c0_2] : memref<1x128xf32, #tpu.memory_space<vmem>>, vector<1x128xf32>
    %c0_3 = arith.constant 0 : index
    %c0_4 = arith.constant 0 : index
    %2 = vector.load %arg6[%c0_3, %c0_4] : memref<1x128xf32, #tpu.memory_space<vmem>>, vector<1x128xf32>
    %c0_5 = arith.constant 0 : index
    %c0_6 = arith.constant 0 : index
    %3 = vector.load %arg7[%c0_5, %c0_6] : memref<1x128xf32, #tpu.memory_space<vmem>>, vector<1x128xf32>
    %c0_7 = arith.constant 0 : index
    %c0_8 = arith.constant 0 : index
    %c0_9 = arith.constant 0 : index
    %c0_10 = arith.constant 0 : index
    %4 = vector.load %arg1[%c0_7, %c0_8, %c0_9, %c0_10] : memref<1x18x18x128xf32, #tpu.memory_space<vmem>>, vector<1x18x18x128xf32>
    %5 = vector.shape_cast %4 : vector<1x18x18x128xf32> to vector<18x18x128xf32>
    %6 = arith.truncf %5 : vector<18x18x128xf32> to vector<18x18x128xbf16>
    %7 = vector.extract_strided_slice %6 {offsets = [0, 0, 0], sizes = [16, 16, 128], strides = [1, 1, 1]} : vector<18x18x128xbf16> to vector<16x16x128xbf16>
    %8 = vector.shape_cast %7 : vector<16x16x128xbf16> to vector<256x128xbf16>
    %9 = vector.extract_strided_slice %6 {offsets = [0, 1, 0], sizes = [16, 16, 128], strides = [1, 1, 1]} : vector<18x18x128xbf16> to vector<16x16x128xbf16>
    %10 = vector.shape_cast %9 : vector<16x16x128xbf16> to vector<256x128xbf16>
    %11 = vector.extract_strided_slice %6 {offsets = [0, 2, 0], sizes = [16, 16, 128], strides = [1, 1, 1]} : vector<18x18x128xbf16> to vector<16x16x128xbf16>
    %12 = vector.shape_cast %11 : vector<16x16x128xbf16> to vector<256x128xbf16>
    %13 = vector.extract_strided_slice %6 {offsets = [1, 0, 0], sizes = [16, 16, 128], strides = [1, 1, 1]} : vector<18x18x128xbf16> to vector<16x16x128xbf16>
    %14 = vector.shape_cast %13 : vector<16x16x128xbf16> to vector<256x128xbf16>
    %15 = vector.extract_strided_slice %6 {offsets = [1, 1, 0], sizes = [16, 16, 128], strides = [1, 1, 1]} : vector<18x18x128xbf16> to vector<16x16x128xbf16>
    %16 = vector.shape_cast %15 : vector<16x16x128xbf16> to vector<256x128xbf16>
    %17 = vector.extract_strided_slice %6 {offsets = [1, 2, 0], sizes = [16, 16, 128], strides = [1, 1, 1]} : vector<18x18x128xbf16> to vector<16x16x128xbf16>
    %18 = vector.shape_cast %17 : vector<16x16x128xbf16> to vector<256x128xbf16>
    %19 = vector.extract_strided_slice %6 {offsets = [2, 0, 0], sizes = [16, 16, 128], strides = [1, 1, 1]} : vector<18x18x128xbf16> to vector<16x16x128xbf16>
    %20 = vector.shape_cast %19 : vector<16x16x128xbf16> to vector<256x128xbf16>
    %21 = vector.extract_strided_slice %6 {offsets = [2, 1, 0], sizes = [16, 16, 128], strides = [1, 1, 1]} : vector<18x18x128xbf16> to vector<16x16x128xbf16>
    %22 = vector.shape_cast %21 : vector<16x16x128xbf16> to vector<256x128xbf16>
    %23 = vector.extract_strided_slice %6 {offsets = [2, 2, 0], sizes = [16, 16, 128], strides = [1, 1, 1]} : vector<18x18x128xbf16> to vector<16x16x128xbf16>
    %24 = vector.shape_cast %23 : vector<16x16x128xbf16> to vector<256x128xbf16>
    %25 = tpu.concatenate %8, %10, %12, %14, %16, %18, %20, %22, %24 in 1 : vector<256x128xbf16>, vector<256x128xbf16>, vector<256x128xbf16>, vector<256x128xbf16>, vector<256x128xbf16>, vector<256x128xbf16>, vector<256x128xbf16>, vector<256x128xbf16>, vector<256x128xbf16> -> vector<256x1152xbf16>
    %c0_11 = arith.constant 0 : index
    %c0_12 = arith.constant 0 : index
    %26 = vector.load %arg2[%c0_11, %c0_12] : memref<1152x128xbf16, #tpu.memory_space<vmem>>, vector<1152x128xbf16>
    %cst = arith.constant dense<0.000000e+00> : vector<256x128xf32>
    %27 = tpu.matmul %25, %26, %cst {dimension_numbers = #tpu.dot_dimension_numbers<[1], [0], [0], [1], [0, 0, 1, 1], [], []>} : vector<256x1152xbf16>, vector<1152x128xbf16>, vector<256x128xf32> -> vector<256x128xf32>
    %28 = vector.broadcast %0 : vector<1x128xf32> to vector<256x128xf32>
    %29 = arith.mulf %27, %28 : vector<256x128xf32>
    %30 = vector.broadcast %1 : vector<1x128xf32> to vector<256x128xf32>
    %31 = arith.addf %29, %30 : vector<256x128xf32>
    %cst_13 = arith.constant 0.000000e+00 : f32
    %32 = vector.broadcast %cst_13 : f32 to vector<256x128xf32>
    %33 = arith.maximumf %31, %32 : vector<256x128xf32>
    %cst_14 = arith.constant 0.000000e+00 : bf16
    %34 = vector.broadcast %cst_14 : bf16 to vector<1x25x128xbf16>
    %cst_15 = arith.constant 0.000000e+00 : bf16
    %35 = vector.broadcast %cst_15 : bf16 to vector<18x1x128xbf16>
    %c0_16 = arith.constant 0 : index
    %c0_17 = arith.constant 0 : index
    %c0_18 = arith.constant 0 : index
    %36 = vector.load %arg9[%c0_16, %c0_17, %c0_18] : memref<18x25x128xbf16, #tpu.memory_space<vmem>>, vector<1x25x128xbf16>
    tpu.vector_store %arg9[%c0_16, %c0_17, %c0_18], %34 {strides = array<i32>} : memref<18x25x128xbf16, #tpu.memory_space<vmem>>, vector<1x25x128xbf16>,
    %c17 = arith.constant 17 : index
    %c0_19 = arith.constant 0 : index
    %c0_20 = arith.constant 0 : index
    %37 = vector.load %arg9[%c17, %c0_19, %c0_20] : memref<18x25x128xbf16, #tpu.memory_space<vmem>>, vector<1x25x128xbf16>
    tpu.vector_store %arg9[%c17, %c0_19, %c0_20], %34 {strides = array<i32>} : memref<18x25x128xbf16, #tpu.memory_space<vmem>>, vector<1x25x128xbf16>,
    %c0_21 = arith.constant 0 : index
    %c7 = arith.constant 7 : index
    %c0_22 = arith.constant 0 : index
    %38 = vector.load %arg9[%c0_21, %c7, %c0_22] : memref<18x25x128xbf16, #tpu.memory_space<vmem>>, vector<18x1x128xbf16>
    tpu.vector_store %arg9[%c0_21, %c7, %c0_22], %35 {strides = array<i32>} : memref<18x25x128xbf16, #tpu.memory_space<vmem>>, vector<18x1x128xbf16>,
    %c0_23 = arith.constant 0 : index
    %c24 = arith.constant 24 : index
    %c0_24 = arith.constant 0 : index
    %39 = vector.load %arg9[%c0_23, %c24, %c0_24] : memref<18x25x128xbf16, #tpu.memory_space<vmem>>, vector<18x1x128xbf16>
    tpu.vector_store %arg9[%c0_23, %c24, %c0_24], %35 {strides = array<i32>} : memref<18x25x128xbf16, #tpu.memory_space<vmem>>, vector<18x1x128xbf16>,
    %40 = arith.truncf %33 : vector<256x128xf32> to vector<256x128xbf16>
    %41 = vector.shape_cast %40 : vector<256x128xbf16> to vector<16x16x128xbf16>
    %c1 = arith.constant 1 : index
    %c8 = arith.constant 8 : index
    %c0_25 = arith.constant 0 : index
    %42 = vector.load %arg9[%c1, %c8, %c0_25] : memref<18x25x128xbf16, #tpu.memory_space<vmem>>, vector<16x16x128xbf16>
    tpu.vector_store %arg9[%c1, %c8, %c0_25], %41 {strides = array<i32>} : memref<18x25x128xbf16, #tpu.memory_space<vmem>>, vector<16x16x128xbf16>,
    %c0_26 = arith.constant 0 : index
    %c0_27 = arith.constant 0 : index
    %c0_28 = arith.constant 0 : index
    %43 = vector.load %arg9[%c0_26, %c0_27, %c0_28] : memref<18x25x128xbf16, #tpu.memory_space<vmem>>, vector<18x25x128xbf16>
    %44 = vector.extract_strided_slice %43 {offsets = [0, 7, 0], sizes = [16, 16, 128], strides = [1, 1, 1]} : vector<18x25x128xbf16> to vector<16x16x128xbf16>
    %45 = vector.shape_cast %44 : vector<16x16x128xbf16> to vector<256x128xbf16>
    %46 = vector.extract_strided_slice %43 {offsets = [0, 8, 0], sizes = [16, 16, 128], strides = [1, 1, 1]} : vector<18x25x128xbf16> to vector<16x16x128xbf16>
    %47 = vector.shape_cast %46 : vector<16x16x128xbf16> to vector<256x128xbf16>
    %48 = vector.extract_strided_slice %43 {offsets = [0, 9, 0], sizes = [16, 16, 128], strides = [1, 1, 1]} : vector<18x25x128xbf16> to vector<16x16x128xbf16>
    %49 = vector.shape_cast %48 : vector<16x16x128xbf16> to vector<256x128xbf16>
    %50 = vector.extract_strided_slice %43 {offsets = [1, 7, 0], sizes = [16, 16, 128], strides = [1, 1, 1]} : vector<18x25x128xbf16> to vector<16x16x128xbf16>
    %51 = vector.shape_cast %50 : vector<16x16x128xbf16> to vector<256x128xbf16>
    %52 = vector.extract_strided_slice %43 {offsets = [1, 8, 0], sizes = [16, 16, 128], strides = [1, 1, 1]} : vector<18x25x128xbf16> to vector<16x16x128xbf16>
    %53 = vector.shape_cast %52 : vector<16x16x128xbf16> to vector<256x128xbf16>
    %54 = vector.extract_strided_slice %43 {offsets = [1, 9, 0], sizes = [16, 16, 128], strides = [1, 1, 1]} : vector<18x25x128xbf16> to vector<16x16x128xbf16>
    %55 = vector.shape_cast %54 : vector<16x16x128xbf16> to vector<256x128xbf16>
    %56 = vector.extract_strided_slice %43 {offsets = [2, 7, 0], sizes = [16, 16, 128], strides = [1, 1, 1]} : vector<18x25x128xbf16> to vector<16x16x128xbf16>
    %57 = vector.shape_cast %56 : vector<16x16x128xbf16> to vector<256x128xbf16>
    %58 = vector.extract_strided_slice %43 {offsets = [2, 8, 0], sizes = [16, 16, 128], strides = [1, 1, 1]} : vector<18x25x128xbf16> to vector<16x16x128xbf16>
    %59 = vector.shape_cast %58 : vector<16x16x128xbf16> to vector<256x128xbf16>
    %60 = vector.extract_strided_slice %43 {offsets = [2, 9, 0], sizes = [16, 16, 128], strides = [1, 1, 1]} : vector<18x25x128xbf16> to vector<16x16x128xbf16>
    %61 = vector.shape_cast %60 : vector<16x16x128xbf16> to vector<256x128xbf16>
    %62 = tpu.concatenate %45, %47, %49, %51, %53, %55, %57, %59, %61 in 1 : vector<256x128xbf16>, vector<256x128xbf16>, vector<256x128xbf16>, vector<256x128xbf16>, vector<256x128xbf16>, vector<256x128xbf16>, vector<256x128xbf16>, vector<256x128xbf16>, vector<256x128xbf16> -> vector<256x1152xbf16>
    %c0_29 = arith.constant 0 : index
    %c0_30 = arith.constant 0 : index
    %63 = vector.load %arg3[%c0_29, %c0_30] : memref<1152x128xbf16, #tpu.memory_space<vmem>>, vector<1152x128xbf16>
    %cst_31 = arith.constant dense<0.000000e+00> : vector<256x128xf32>
    %64 = tpu.matmul %62, %63, %cst_31 {dimension_numbers = #tpu.dot_dimension_numbers<[1], [0], [0], [1], [0, 0, 1, 1], [], []>} : vector<256x1152xbf16>, vector<1152x128xbf16>, vector<256x128xf32> -> vector<256x128xf32>
    %65 = vector.broadcast %2 : vector<1x128xf32> to vector<256x128xf32>
    %66 = arith.mulf %64, %65 : vector<256x128xf32>
    %67 = vector.broadcast %3 : vector<1x128xf32> to vector<256x128xf32>
    %68 = arith.addf %66, %67 : vector<256x128xf32>
    %69 = vector.extract_strided_slice %5 {offsets = [1, 1, 0], sizes = [16, 16, 128], strides = [1, 1, 1]} : vector<18x18x128xf32> to vector<16x16x128xf32>
    %70 = vector.shape_cast %68 : vector<256x128xf32> to vector<16x16x128xf32>
    %71 = arith.addf %70, %69 : vector<16x16x128xf32>
    %cst_32 = arith.constant 0.000000e+00 : f32
    %72 = vector.broadcast %cst_32 : f32 to vector<16x16x128xf32>
    %73 = arith.maximumf %71, %72 : vector<16x16x128xf32>
    %c0_33 = arith.constant 0 : index
    %c0_34 = arith.constant 0 : index
    %c0_35 = arith.constant 0 : index
    %c0_36 = arith.constant 0 : index
    %74 = vector.load %arg8[%c0_33, %c0_34, %c0_35, %c0_36] : memref<1x16x16x128xf32, #tpu.memory_space<vmem>>, vector<1x16x16x128xf32>
    %75 = vector.shape_cast %74 : vector<1x16x16x128xf32> to vector<16x16x128xf32>
    %76 = vector.shape_cast %73 : vector<16x16x128xf32> to vector<1x16x16x128xf32>
    tpu.vector_store %arg8[%c0_33, %c0_34, %c0_35, %c0_36], %76 {strides = array<i32>} : memref<1x16x16x128xf32, #tpu.memory_space<vmem>>, vector<1x16x16x128xf32>,
    return
  }
  func.func @transform_0(%arg0: i32) -> (i32, i32, i32, i32) {
    %c0_i32 = arith.constant 0 : i32
    %c0_i32_0 = arith.constant 0 : i32
    %c0_i32_1 = arith.constant 0 : i32
    %c0_i32_2 = arith.constant 0 : i32
    return %arg0, %c0_i32, %c0_i32_0, %c0_i32_1 : i32, i32, i32, i32
  }
  func.func @transform_1(%arg0: i32) -> (i32, i32) {
    %c0_i32 = arith.constant 0 : i32
    %c0_i32_0 = arith.constant 0 : i32
    %c0_i32_1 = arith.constant 0 : i32
    return %c0_i32, %c0_i32_0 : i32, i32
  }
  func.func @transform_2(%arg0: i32) -> (i32, i32) {
    %c0_i32 = arith.constant 0 : i32
    %c0_i32_0 = arith.constant 0 : i32
    %c0_i32_1 = arith.constant 0 : i32
    return %c0_i32, %c0_i32_0 : i32, i32
  }
  func.func @transform_3(%arg0: i32) -> (i32, i32) {
    %c0_i32 = arith.constant 0 : i32
    %c0_i32_0 = arith.constant 0 : i32
    %c0_i32_1 = arith.constant 0 : i32
    return %c0_i32, %c0_i32_0 : i32, i32
  }
  func.func @transform_4(%arg0: i32) -> (i32, i32) {
    %c0_i32 = arith.constant 0 : i32
    %c0_i32_0 = arith.constant 0 : i32
    %c0_i32_1 = arith.constant 0 : i32
    return %c0_i32, %c0_i32_0 : i32, i32
  }
  func.func @transform_5(%arg0: i32) -> (i32, i32) {
    %c0_i32 = arith.constant 0 : i32
    %c0_i32_0 = arith.constant 0 : i32
    %c0_i32_1 = arith.constant 0 : i32
    return %c0_i32, %c0_i32_0 : i32, i32
  }
  func.func @transform_6(%arg0: i32) -> (i32, i32) {
    %c0_i32 = arith.constant 0 : i32
    %c0_i32_0 = arith.constant 0 : i32
    %c0_i32_1 = arith.constant 0 : i32
    return %c0_i32, %c0_i32_0 : i32, i32
  }
  func.func @transform_7(%arg0: i32) -> (i32, i32, i32, i32) {
    %c0_i32 = arith.constant 0 : i32
    %c0_i32_0 = arith.constant 0 : i32
    %c0_i32_1 = arith.constant 0 : i32
    %c0_i32_2 = arith.constant 0 : i32
    return %arg0, %c0_i32, %c0_i32_0, %c0_i32_1 : i32, i32, i32, i32
  }
}

</mosaic_0001>

<bundles_post_ra>
// kernel: tpu_custom_call.1
= control target key start
LH: loop header
LB: loop body
LE: loop exit
PB: predicated region body
PF: predicated region fallthrough
CT: control target
= control target key end

     0   :  { %12 = vsyncpa [#allocation4], 0  ;;  %s9714_s0 = inlined_call_operand.vmem [shape: f32[2,18,18,128], index: 0, kind: input, shape index: {}]   ;;  %s9715_s1 = inlined_call_operand.vmem [shape: bf16[1152,128], index: 1, kind: input, shape index: {}]   ;;  %s9716_s2 = inlined_call_operand.vmem [shape: bf16[1152,128], index: 2, kind: input, shape index: {}]   ;;  %s9717_s3 = inlined_call_operand.vmem [shape: f32[1,128], index: 3, kind: input, shape index: {}]   ;;  %s9718_s4 = inlined_call_operand.vmem [shape: f32[1,128], index: 4, kind: input, shape index: {}]   ;;  %s9719_s5 = inlined_call_operand.vmem [shape: f32[1,128], index: 5, kind: input, shape index: {}]   ;;  %s9720_s6 = inlined_call_operand.vmem [shape: f32[1,128], index: 6, kind: input, shape index: {}]   ;;  %s9721_s7 = inlined_call_operand.hbm [shape: f32[2,16,16,128], index: 7, kind: output, shape index: {}]  }
   0x1   :  { %14 = vsyncpa [#allocation4 + $0x1], 0  ;;  %s6957_s24 = smov 0   ;;  %s6959_s25 = smov 0  }
   0x2   :  { %s6961_s26 = smov 0   ;;  %s6963_s27 = smov 0  }
   0x3 LB: > { %s6978_s28 = sadd.s32 4294967295, %s6911_s27   ;;  %s5260_s29 = sadd.s32 4294967294, %s6911_s27   ;;  %s6911_s27 = sphi %s6963_s27, %s9856_s27   ;;  %s6907_s26 = sphi %s6961_s26, %s9855_s26   ;;  %s6903_s25 = sphi %s6959_s25, %s9854_s25   ;;  %s6899_s24 = sphi %s6957_s24, %s9853_s24  }
   0x4   : > { %s6982_s30 = sadd.s32 1, %s6911_s27   ;;  %s179_s8 = sadd.s32 1, %s6907_s26 }
   0x5   : > { %s176_s9 = ssub.s32 %s6911_s27, %s6982_s30  ;;  %p189_p0 = scmp.ne.s32.totalorder %s6907_s26, %s6903_s25 }
   0x6   : > { %p177_p1 = scmp.eq.s32.totalorder %s176_s9, 0  ;;  %p190_p2 = scmp.eq.s32.totalorder %s6978_s28, 1 }
   0x7   : > { %p195_p3 = scmp.ne.s32.totalorder %s6903_s25, %s6899_s24  ;;  %p196_p4 = scmp.eq.s32.totalorder %s5260_s29, 1 }
   0x8   : > { %s6993_s10 = scalar_select %p177_p1, %s6907_s26, %s179_s8  }
   0x9   : > { %p6995_p5 = por %p190_p2, %p189_p0  ;;  %p6999_p6 = por %p196_p4, %p195_p3 }
   0xa   : > { %p5263_p7 = scmp.ge.s32.totalorder %s6911_s27, 1  ;;  %p240_p8 = scmp.lt.s32.totalorder %s6911_s27, 3 }
   0xc   : > { %p241_p9 = pnand %p5263_p7, %p240_p8 }
   0xe   : > { %244 = sbr.rel (%p241_p9) target bundleno = 1109 (0x455), region = 48 }
  0x15   : > { %v6639_v0 = vld [vmem:[%s9715_s1 + $0x40] sm:$0xff]   ;;  %v6643_v4 = vld [vmem:[%s9715_s1 + $0x48] sm:$0xff]   ;;  %v6647_v8 = vld [vmem:[%s9715_s1 + $0x50] sm:$0xff]   ;;  %p272_p10 = scmp.lt.s32.totalorder %s6978_s28, 1  ;;  %vm613_vm0 = vcmask 1046528   ;;  %vm2221_vm2 = vcmask 1043459  }
  0x16   : > { %v6640_v1 = vld [vmem:[%s9715_s1 + $0xc0] sm:$0xff]   ;;  %5556 = vmatprep.subr.bf16.mxu0 %v6639_v0  ;;  %v6644_v5 = vld [vmem:[%s9715_s1 + $0xc8] sm:$0xff]   ;;  %v6648_v9 = vld [vmem:[%s9715_s1 + $0xd0] sm:$0xff]   ;;  %vm372_vm1 = vsmask.f32 7424  ;;  %vm2208_vm8 = vcmask 1040384  }
  0x17   : > { %v6641_v2 = vld [vmem:[%s9715_s1] sm:$0xff]   ;;  %5668 = vmatprep.subr.bf16.mxu1 %v6640_v1  ;;  %v6645_v6 = vld [vmem:[%s9715_s1 + $0x8] sm:$0xff]   ;;  %v6649_v10 = vld [vmem:[%s9715_s1 + $0x10] sm:$0xff]   ;;  %s273_s15 = scalar_select %p272_p10, %s6978_s28, 1  ;;  %vm2222_vm3 = vsmask.f32 7950 }
  0x18   : > { %v6642_v3 = vld [vmem:[%s9715_s1 + $0x80] sm:$0xff]   ;;  %5557 = vmatpush3.bf16.msra.mxu0 %v6641_v2  ;;  %v6646_v7 = vld [vmem:[%s9715_s1 + $0x88] sm:$0xff]   ;;  %v6650_v11 = vld [vmem:[%s9715_s1 + $0x90] sm:$0xff]   ;;  %vm2209_vm5 = vsmask.f32 256  ;;  %s269_s8 = sand.u32 1, %s6903_s25  }
  0x19   : > { %5669 = vmatpush3.bf16.msra.mxu1 %v6642_v3  ;;  %5558 = vmatprep.subr.bf16.mxu0 %v6643_v4  ;;  %v6651_v12 = vld [vmem:[%s9715_s1 + $0x58] sm:$0xff]   ;;  %v6655_v16 = vld [vmem:[%s9715_s1 + $0x60] sm:$0xff]   ;;  %v6659_v20 = vld [vmem:[%s9715_s1 + $0x68] sm:$0xff]   ;;  %s6596_s29 = smul.u32 432, %s273_s15  ;;  %vm2565_vm6 = vsmask.f32 4368 }
  0x1a   : > { %5670 = vmatprep.subr.bf16.mxu1 %v6644_v5  ;;  %v6652_v13 = vld [vmem:[%s9715_s1 + $0xd8] sm:$0xff]   ;;  %v6656_v17 = vld [vmem:[%s9715_s1 + $0xe0] sm:$0xff]   ;;  %v6660_v21 = vld [vmem:[%s9715_s1 + $0xe8] sm:$0xff]   ;;  %vm2919_vm10 = vsmask.f32 3328  ;;  %s9452_s13 = sshll.u32 %s269_s8, 8 }
  0x1b   : > { %v6653_v14 = vld [vmem:[%s9715_s1 + $0x18] sm:$0xff]   ;;  %v6657_v18 = vld [vmem:[%s9715_s1 + $0x20] sm:$0xff]   ;;  %v6661_v22 = vld [vmem:[%s9715_s1 + $0x28] sm:$0xff]   ;;  %s7100_s21 = scalar_lea.vmem %s9714_s0, %s6596_s29  ;;  %vm2920_vm11 = vsmask.f32 7440  ;;  %s9475_s14 = scalar_lea.vmem [#allocation3], %s9452_s13 }
  0x1c   : > { %5559 = vmatpush3.bf16.msra.mxu0 %v6645_v6  ;;  %v6654_v15 = vld [vmem:[%s9715_s1 + $0x98] sm:$0xff]   ;;  %v6658_v19 = vld [vmem:[%s9715_s1 + $0xa0] sm:$0xff]   ;;  %v6662_v23 = vld [vmem:[%s9715_s1 + $0xa8] sm:$0xff]   ;;  %s5198_s16 = sshll.u32 %s9475_s14, 4  ;;  %s6914_s20 = smov [#allocation3]   ;;  %s9666_s16 = int_to_ptr.vmem [resolvable:$true] %s5198_s16 }
  0x1d   : > { %5671 = vmatpush3.bf16.msra.mxu1 %v6646_v7  ;;  %5560 = vmatprep.subr.bf16.mxu0 %v6647_v8  ;;  %v6663_v24 = vld [vmem:[%s9715_s1 + $0x70] sm:$0xff]   ;;  %v6667_v28 = vld [vmem:[%s9715_s1 + $0x78] sm:$0xff]   ;;  %v282_v32 = vld [vmem:[%s7100_s21] sm:$0xff]  ;;  %s6849_s15 = scalar_lea.vmem %s9666_s16, 4096  ;;  %s6853_s22 = sshll.u32 %s6914_s20, 4  ;;  %s6854_s22 = int_to_ptr.vmem [resolvable:$false] %s6853_s22 }
  0x1e   : > { %5672 = vmatprep.subr.bf16.mxu1 %v6648_v9  ;;  %v6664_v25 = vld [vmem:[%s9715_s1 + $0xf0] sm:$0xff]   ;;  %v6668_v29 = vld [vmem:[%s9715_s1 + $0xf8] sm:$0xff]   ;;  %v283_v33 = vld [vmem:[%s7100_s21 + $0x8] sm:$0xff]  ;;  %p6850_p11 = scmp.ne.s32.totalorder %s9666_s16, %s6849_s15  ;;  %s6855_s23 = scalar_lea.vmem %s6854_s22, 8192 }
  0x1f   : > { %v6665_v26 = vld [vmem:[%s9715_s1 + $0x30] sm:$0xff]   ;;  %v6669_v30 = vld [vmem:[%s9715_s1 + $0x38] sm:$0xff]   ;;  %v336_v35 = vpack.c.bf16 %v283_v33, %v282_v32  ;;  %v286_v38 = vld [vmem:[%s7100_s21 + $0x20] sm:$0xff]  ;;  %p6856_p0 = scmp.lt.s32.totalorder %s9666_s16, %s6854_s22  ;;  %p6857_p1 = scmp.lt.s32.totalorder %s6855_s23, %s6849_s15 }
  0x20   : > { %5561 = vmatpush3.bf16.msra.mxu0 %v6649_v10  ;;  %v6666_v27 = vld [vmem:[%s9715_s1 + $0xb0] sm:$0xff]   ;;  %v6670_v31 = vld [vmem:[%s9715_s1 + $0xb8] sm:$0xff]   ;;  %v6671_v40 = vld [vmem:[%s9715_s1 + $0x140] sm:$0xff]   ;;  %p6851_p12 = pnand %p6850_p11, %p6995_p5 }
  0x21   : > { %5673 = vmatpush3.bf16.msra.mxu1 %v6650_v11  ;;  %5562 = vmatprep.subr.bf16.mxu0 %v6651_v12  ;;  %v284_v34 = vld [vmem:[%s7100_s21 + $0x10] sm:$0x3]  ;;  %v285_v37 = vld [vmem:[%s7100_s21 + $0x18] sm:$0xff]  ;;  %v374_v41 = vshrl.u32 %v336_v35, 16  ;;  %v376_v42 = vshll.u32 %v336_v35, 16  ;;  %v614_v44 = vrot.slane %v336_v35, 1  ;;  %vm7882_vm4 = vmand %vm2221_vm2, %vm2222_vm3  ;;  %p6858_p2 = por %p6857_p1, %p6856_p0 }
  0x22   : > { %5674 = vmatprep.subr.bf16.mxu1 %v6652_v13  ;;  %v337_v36 = vpack.c.bf16 %v284_v34, %v284_v34  ;;  %v7113_v39 = vpack.c.bf16 %v286_v38, %v285_v37  ;;  %v287_v46 = vld [vmem:[%s7100_s21 + $0x28] sm:$0x3]  ;;  %v288_v52 = vld [vmem:[%s7100_s21 + $0x30] sm:$0xff]  ;;  %v289_v53 = vld [vmem:[%s7100_s21 + $0x38] sm:$0xff]  ;;  %p6852_p13 = pneg %p6851_p12 }
  0x23   : > { %v378_v49 = vrot.slane %v376_v42, 1  ;;  %v339_v51 = vpack.c.bf16 %v287_v46, %v287_v46  ;;  %v7125_v56 = vpack.c.bf16 %v289_v53, %v288_v52  ;;  %v290_v57 = vld [vmem:[%s7100_s21 + $0x40] sm:$0x3]  ;;  %v291_v58 = vld [vmem:[%s7100_s21 + $0x48] sm:$0xff]  ;;  %v292_v62 = vld [vmem:[%s7100_s21 + $0x50] sm:$0xff] }
  0x24   : > { %5563 = vmatpush3.bf16.msra.mxu0 %v6653_v14  ;;  %v381_v43 = vshll.u32 %v337_v36, 16  ;;  %1485 = vmatprep.mubr.bf16.mxu1 %v7113_v39  ;;  %v615_v45 = vrot.slane %v337_v36, 1  ;;  %v386_v47 = vshrl.u32 %v7113_v39, 16  ;;  %v388_v48 = vshll.u32 %v7113_v39, 16  ;;  %v6672_v63 = vld [vmem:[%s9715_s1 + $0x100] sm:$0xff]   ;;  %v6673_v8 = vld [vmem:[%s9715_s1 + $0x148] sm:$0xff]   ;;  %vm7937_vm7 = vmor %vm2209_vm5, %vm2565_vm6  ;;  %p6859_p3 = pnand %p6858_p2, %p6852_p13 }
  0x25   : > { %5675 = vmatpush3.bf16.msra.mxu1 %v6654_v15  ;;  %5564 = vmatprep.subr.bf16.mxu0 %v6655_v16  ;;  %v379_v59 = vor.u32 %v378_v49, %v374_v41  ;;  %v393_v60 = vshll.u32 %v339_v51, 16  ;;  %v341_v61 = vpack.c.bf16 %v290_v57, %v290_v57  ;;  %v617_v1 = vrot.slane %v7113_v39, 1  ;;  %v293_v11 = vld [vmem:[%s7100_s21 + $0x58] sm:$0x3]  ;;  %v6674_v14 = vld [vmem:[%s9715_s1 + $0x108] sm:$0xff]   ;;  %v298_v33 = vld [vmem:[%s7100_s21 + $0x80] sm:$0xff] }
  0x26   : > { %5676 = vmatprep.subr.bf16.mxu1 %v6656_v17  ;;  %v383_v50 = vrot.slane %v381_v43, 1  ;;  %v616_v54 = vsel %vm613_vm0, %v614_v44, %v615_v45  ;;  %v390_v55 = vrot.slane %v388_v48, 1  ;;  %v618_v2 = vrot.slane %v339_v51, 1  ;;  %v297_v32 = vld [vmem:[%s7100_s21 + $0x78] sm:$0xff]  ;;  %v299_v34 = vld [vmem:[%s7100_s21 + $0x88] sm:$0x3]  ;;  %vm7957_vm9 = vmand %vm2208_vm8, %vm2209_vm5 }
  0x27   : > { %v400_v3 = vshll.u32 %v7125_v56, 16  ;;  %v395_v5 = vrot.slane %v393_v60, 1  ;;  %v398_v6 = vshrl.u32 %v7125_v56, 16  ;;  %v405_v7 = vshll.u32 %v341_v61, 16  ;;  %v300_v37 = vld [vmem:[%s7100_s21 + $0x90] sm:$0xff]  ;;  %v301_v38 = vld [vmem:[%s7100_s21 + $0x98] sm:$0xff]  ;;  %vm8013_vm12 = vmor %vm2919_vm10, %vm2920_vm11 }
  0x28   : > { %5565 = vmatpush3.bf16.msra.mxu0 %v6657_v18  ;;  %v391_v0 = vor.u32 %v390_v55, %v386_v47  ;;  %v384_v4 = vsel %vm372_vm1, %v379_v59, %v383_v50  ;;  %v7141_v10 = vpack.c.bf16 %v292_v62, %v291_v58  ;;  %v7149_v13 = vsel %vm613_vm0, %v617_v1, %v618_v2  ;;  %v302_v46 = vld [vmem:[%s7100_s21 + $0xa0] sm:$0x3]  ;;  %v303_v60 = vld [vmem:[%s7100_s21 + $0xa8] sm:$0xff] }
  0x29   : > { %5677 = vmatpush3.bf16.msra.mxu1 %v6658_v19  ;;  %5566 = vmatprep.subr.bf16.mxu0 %v6659_v20  ;;  %v402_v9 = vrot.slane %v400_v3, 1  ;;  %v407_v16 = vrot.slane %v405_v7, 1  ;;  %v343_v17 = vpack.c.bf16 %v293_v11, %v293_v11  ;;  %v6675_v19 = vld [vmem:[%s9715_s1 + $0x150] sm:$0xff]   ;;  %v294_v20 = vld [vmem:[%s7100_s21 + $0x60] sm:$0xff]  ;;  %v7192_v43 = vpack.c.bf16 %v298_v33, %v297_v32  ;;  %v313_v32 = vld [vmem:[%s7100_s21 + $0xf8] sm:$0xff] }
  0x2a   : > { %5678 = vmatprep.subr.bf16.mxu1 %v6660_v21  ;;  %1324 = vmatprep.mubr.bf16.mxu0 %v384_v4  ;;  %v7145_v12 = vsel %vm372_vm1, %v391_v0, %v395_v5  ;;  %v412_v18 = vshll.u32 %v7141_v10, 16  ;;  %v295_v21 = vld [vmem:[%s7100_s21 + $0x68] sm:$0xff]  ;;  %v7194_v44 = vpack.c.bf16 %v299_v34, %v299_v34  ;;  %v7197_v45 = vpack.c.bf16 %v301_v38, %v300_v37  ;;  %v6679_v47 = vld [vmem:[%s9715_s1 + $0x160] sm:$0xff]   ;;  %v6683_v33 = vld [vmem:[%s9715_s1 + $0x170] sm:$0xff]  }
  0x2b   : > { %v403_v15 = vor.u32 %v402_v9, %v398_v6  ;;  %v623_v48 = vrot.slane %v7141_v10, 1  ;;  %v624_v49 = vrot.slane %v343_v17, 1  ;;  %v6680_v51 = vld [vmem:[%s9715_s1 + $0x120] sm:$0xff]   ;;  %v436_v55 = vshll.u32 %v7192_v43, 16  ;;  %v6681_v4 = vld [vmem:[%s9715_s1 + $0x168] sm:$0xff]  }
  0x2c   : > { %5567 = vmatpush3.bf16.msra.mxu0 %v6661_v22  ;;  %v620_v22 = vrot.slane %v7125_v56, 1  ;;  %v441_v58 = vshll.u32 %v7194_v44, 16  ;;  %v7216_v59 = vpack.c.bf16 %v302_v46, %v302_v46  ;;  %v448_v62 = vshll.u32 %v7197_v45, 16  ;;  %v6682_v9 = vld [vmem:[%s9715_s1 + $0x128] sm:$0xff]  }
  0x2d   : > { %5679 = vmatpush3.bf16.msra.mxu1 %v6662_v23  ;;  %5568 = vmatprep.subr.bf16.mxu0 %v6663_v24  ;;  %v621_v23 = vrot.slane %v341_v61, 1  ;;  %v410_v24 = vshrl.u32 %v7141_v10, 16  ;;  %v305_v61 = vld [vmem:[%s7100_s21 + $0xb8] sm:$0x3]  ;;  %v7225_v0 = vsel %vm613_vm0, %v623_v48, %v624_v49  ;;  %v434_v3 = vshrl.u32 %v7192_v43, 16 }
  0x2e   : > { %5680 = vmatprep.subr.bf16.mxu1 %v6664_v25  ;;  %v296_v25 = vld [vmem:[%s7100_s21 + $0x70] sm:$0x3]  ;;  %v438_v6 = vrot.slane %v436_v55, 1  ;;  %v629_v7 = vrot.slane %v7192_v43, 1  ;;  %v7237_v11 = vrot.slane %v441_v58, 1  ;;  %v6687_v58 = vld [vmem:[%s9715_s1 + $0x1c8] sm:$0xff]  }
  0x2f   : > { %v7184_v36 = vpack.c.bf16 %v296_v25, %v296_v25  ;;  %v311_v25 = vld [vmem:[%s7100_s21 + $0xe8] sm:$0x3] }
  0x30   : > { %5569 = vmatpush3.bf16.msra.mxu0 %v6665_v26  ;;  %v6676_v26 = vld [vmem:[%s9715_s1 + $0x110] sm:$0xff]   ;;  %v7284_v48 = vpack.c.bf16 %v311_v25, %v311_v25 }
  0x31   : > { %5681 = vmatpush3.bf16.msra.mxu1 %v6666_v27  ;;  %5570 = vmatprep.subr.bf16.mxu0 %v6667_v28  ;;  %v7169_v27 = vsel %vm372_vm1, %v403_v15, %v407_v16  ;;  %v414_v28 = vrot.slane %v412_v18, 1  ;;  %v429_v50 = vshll.u32 %v7184_v36, 16  ;;  %v627_v2 = vrot.slane %v7184_v36, 1  ;;  %v307_v18 = vld [vmem:[%s7100_s21 + $0xc8] sm:$0xff]  ;;  %v6689_v25 = vld [vmem:[%s9715_s1 + $0x1d0] sm:$0xff]  }
  0x32   : > { %5682 = vmatprep.subr.bf16.mxu1 %v6668_v29  ;;  %v417_v29 = vshll.u32 %v343_v17, 16  ;;  %v7242_v16 = vpack.c.bf16 %v305_v61, %v305_v61  ;;  %v306_v17 = vld [vmem:[%s7100_s21 + $0xc0] sm:$0xff] }
  0x33   : > { %v415_v41 = vor.u32 %v414_v28, %v410_v24  ;;  %v431_v1 = vrot.slane %v429_v50, 1  ;;  %v312_v24 = vld [vmem:[%s7100_s21 + $0xf0] sm:$0xff]  ;;  %v632_v28 = vrot.slane %v7197_v45, 1  ;;  %v315_v50 = vld [vmem:[%s7100_s21 + $0x108] sm:$0xff] }
  0x34   : > { %5571 = vmatpush3.bf16.msra.mxu0 %v6669_v30  ;;  %v7171_v30 = vpack.c.bf16 %v295_v21, %v294_v20  ;;  %v419_v42 = vrot.slane %v417_v29, 1  ;;  %v446_v20 = vshrl.u32 %v7197_v45, 16  ;;  %v450_v21 = vrot.slane %v448_v62, 1  ;;  %v316_v62 = vld [vmem:[%s7100_s21 + $0x110] sm:$0xff] }
  0x35   : > { %5683 = vmatpush3.bf16.msra.mxu1 %v6670_v31  ;;  %5780 = vmatprep.subr.bf16.mxu0 %v6671_v40  ;;  %v6677_v31 = vld [vmem:[%s9715_s1 + $0x158] sm:$0xff]   ;;  %v633_v29 = vrot.slane %v7216_v59, 1  ;;  %v465_v37 = vshll.u32 %v7242_v16, 16  ;;  %v7286_v49 = vpack.c.bf16 %v313_v32, %v312_v24  ;;  %v319_v24 = vld [vmem:[%s7100_s21 + $0x128] sm:$0xff] }
  0x36   : > { %v6678_v40 = vld [vmem:[%s9715_s1 + $0x118] sm:$0xff]   ;;  %v7210_v52 = vsel %vm372_vm1, %v415_v41, %v419_v42  ;;  %v422_v53 = vshrl.u32 %v7171_v30, 16  ;;  %v626_v57 = vrot.slane %v7171_v30, 1  ;;  %v451_v32 = vor.u32 %v450_v21, %v446_v20 }
  0x37   : > { %1325 = vmatmul.mubr.bf16.vlgmr.msra.gmra.mrb[0].mxu0 %v336_v35  ;;  %v7182_v35 = vsel %vm613_vm0, %v620_v22, %v621_v23  ;;  %v308_v22 = vld [vmem:[%s7100_s21 + $0xd0] sm:$0x3]  ;;  %v310_v23 = vld [vmem:[%s7100_s21 + $0xe0] sm:$0xff]  ;;  %v325_v20 = vld [vmem:[%s7100_s21 + $0x158] sm:$0xff] }
  0x38   : > { %1486 = vmatmul.mubr.bf16.vlgmr.msra.gmra.mrb[0].mxu1 %v616_v54  ;;  %5781 = vmatpush3.bf16.msra.mxu0 %v6672_v63  ;;  %v304_v63 = vld [vmem:[%s7100_s21 + $0xb0] sm:$0xff]  ;;  %v7269_v38 = vpack.c.bf16 %v308_v22, %v308_v22  ;;  %v7276_v41 = vsel %vm613_vm0, %v626_v57, %v627_v2  ;;  %v6686_v57 = vld [vmem:[%s9715_s1 + $0x180] sm:$0xff]   ;;  %v7326_v22 = vpack.c.bf16 %v316_v62, %v315_v50 }
  0x39   : > { %1493 = vmatprep.mubr.bf16.mxu1 %v7125_v56  ;;  %1332 = vmatprep.mubr.bf16.mxu0 %v7145_v12  ;;  %v7240_v15 = vpack.c.bf16 %v304_v63, %v303_v60 }
  0x3a   : > { %5782 = vmatprep.subr.bf16.mxu0 %v6673_v8  ;;  %v630_v8 = vrot.slane %v7194_v44, 1  ;;  %v477_v60 = vshll.u32 %v7269_v38, 16 }
  0x3b   : > { %v460_v36 = vshll.u32 %v7240_v15, 16  ;;  %v458_v46 = vshrl.u32 %v7240_v15, 16 }
  0x3c   : > { %5783 = vmatpush3.bf16.msra.mxu0 %v6674_v14  ;;  %v453_v14 = vshll.u32 %v7216_v59, 16  ;;  %v6697_v59 = vld [vmem:[%s9715_s1 + $0x1e8] sm:$0xff]  }
  0x3d   : > { %5784 = vmatprep.subr.bf16.mxu0 %v6675_v19  ;;  %v309_v19 = vld [vmem:[%s7100_s21 + $0xd8] sm:$0xff]  ;;  %v7305_v63 = vrot.slane %v460_v36, 1 }
  0x3e   : > { %v7265_v34 = vrot.slane %v453_v14, 1  ;;  %v7278_v42 = vpack.c.bf16 %v310_v23, %v309_v19  ;;  %v6688_v14 = vld [vmem:[%s9715_s1 + $0x188] sm:$0xff]   ;;  %v639_v19 = vrot.slane %v7269_v38, 1  ;;  %v318_v23 = vld [vmem:[%s7100_s21 + $0x120] sm:$0xff] }
  0x3f   : > { %1333 = vmatmul.mubr.bf16.gmra.mrb[4].mxu0 %v7113_v39  ;;  %v424_v39 = vshll.u32 %v7171_v30, 16  ;;  %v7371_v62 = vpack.c.bf16 %v319_v24, %v318_v23  ;;  %v6692_v23 = vld [vmem:[%s9715_s1 + $0x198] sm:$0xff]  }
  0x40   : > { %1494 = vmatmul.mubr.bf16.gmra.mrb[4].mxu1 %v7149_v13  ;;  %1340 = vmatprep.mubr.bf16.mxu0 %v7169_v27  ;;  %v6693_v24 = vld [vmem:[%s9715_s1 + $0x178] sm:$0xff]  }
  0x41   : > { %1501 = vmatprep.mubr.bf16.mxu1 %v7141_v10  ;;  %5785 = vmatpush3.bf16.msra.mxu0 %v6676_v26  ;;  %v426_v54 = vrot.slane %v424_v39, 1  ;;  %v314_v39 = vld [vmem:[%s7100_s21 + $0x100] sm:$0x3] }
  0x42   : > { %5786 = vmatprep.subr.bf16.mxu0 %v6677_v31  ;;  %v7259_v31 = vpack.c.bf16 %v307_v18, %v306_v17  ;;  %v7301_v61 = vpack.c.bf16 %v314_v39, %v314_v39 }
  0x43   : > { %v427_v5 = vor.u32 %v426_v54, %v422_v53  ;;  %v439_v53 = vor.u32 %v438_v6, %v434_v3  ;;  %v636_v54 = vrot.slane %v7242_v16, 1  ;;  %v484_v3 = vshll.u32 %v7278_v42, 16  ;;  %v6701_v16 = vld [vmem:[%s9715_s1 + $0x1f8] sm:$0xff]  }
  0x44   : > { %v472_v55 = vshll.u32 %v7259_v31, 16  ;;  %v470_v2 = vshrl.u32 %v7259_v31, 16  ;;  %v489_v6 = vshll.u32 %v7284_v48, 16  ;;  %v501_v36 = vshll.u32 %v7301_v61, 16 }
  0x45   : > { %5787 = vmatpush3.bf16.msra.mxu0 %v6678_v40  ;;  %v7255_v26 = vsel %vm372_vm1, %v427_v5, %v431_v1  ;;  %v6684_v40 = vld [vmem:[%s9715_s1 + $0x130] sm:$0xff]   ;;  %v7307_v1 = vrot.slane %v465_v37, 1  ;;  %v638_v5 = vrot.slane %v7259_v31, 1  ;;  %v7321_v17 = vsel %vm372_vm1, %v439_v53, %v7237_v11 }
  0x46   : > { %5788 = vmatprep.subr.bf16.mxu0 %v6679_v47  ;;  %v635_v47 = vrot.slane %v7240_v15, 1  ;;  %v7323_v18 = vrot.slane %v472_v55, 1  ;;  %v7338_v11 = vsel %vm613_vm0, %v629_v7, %v630_v8  ;;  %v320_v37 = vld [vmem:[%s7100_s21 + $0x130] sm:$0x3]  ;;  %v7348_v39 = vrot.slane %v484_v3, 1  ;;  %v6691_v55 = vld [vmem:[%s9715_s1 + $0x1d8] sm:$0xff]  }
  0x47   : > { %1341 = vmatmul.mubr.bf16.gmra.mrb[8].mxu0 %v7125_v56  ;;  %v7353_v8 = vrot.slane %v489_v6, 1  ;;  %v508_v53 = vshll.u32 %v7326_v22, 16  ;;  %v321_v3 = vld [vmem:[%s7100_s21 + $0x138] sm:$0xff]  ;;  %v7376_v6 = vpack.c.bf16 %v320_v37, %v320_v37 }
  0x48   : > { %1502 = vmatmul.mubr.bf16.gmra.mrb[8].mxu1 %v7182_v35  ;;  %1348 = vmatprep.mubr.bf16.mxu0 %v7210_v52 }
  0x49   : > { %1509 = vmatprep.mubr.bf16.mxu1 %v7171_v30  ;;  %5789 = vmatpush3.bf16.msra.mxu0 %v6680_v51  ;;  %v6685_v51 = vld [vmem:[%s9715_s1 + $0x1c0] sm:$0xff]   ;;  %v7392_v37 = vrot.slane %v508_v53, 1 }
  0x4a   : > { %5790 = vmatprep.subr.bf16.mxu0 %v6681_v4  ;;  %5892 = vmatprep.subr.bf16.mxu1 %v6685_v51  ;;  %v317_v4 = vld [vmem:[%s7100_s21 + $0x118] sm:$0x3]  ;;  %v6690_v51 = vld [vmem:[%s9715_s1 + $0x190] sm:$0xff]   ;;  %v6695_v53 = vld [vmem:[%s9715_s1 + $0x1e0] sm:$0xff]  }
  0x4b   : > { %5893 = vmatpush3.bf16.msra.mxu1 %v6686_v57  ;;  %v7358_v50 = vpack.c.bf16 %v317_v4, %v317_v4  ;;  %v7367_v57 = vrot.slane %v501_v36, 1  ;;  %v322_v4 = vld [vmem:[%s7100_s21 + $0x140] sm:$0xff] }
  0x4c   : > { %5894 = vmatprep.subr.bf16.mxu1 %v6687_v58  ;;  %v7396_v58 = vpack.c.bf16 %v322_v4, %v321_v3  ;;  %v525_v3 = vshll.u32 %v7376_v6, 16  ;;  %v7418_v4 = vsel %vm613_vm0, %v632_v28, %v633_v29 }
  0x4d   : > { %5791 = vmatpush3.bf16.msra.mxu0 %v6682_v9  ;;  %v496_v9 = vshll.u32 %v7286_v49, 16  ;;  %v513_v36 = vshll.u32 %v7358_v50, 16 }
  0x4e   : > { %5792 = vmatprep.subr.bf16.mxu0 %v6683_v33  ;;  %v7342_v33 = vrot.slane %v477_v60, 1 }
  0x4f   : > { %1349 = vmatmul.mubr.bf16.gmra.mrb[12].mxu0 %v7141_v10  ;;  %v7356_v21 = vrot.slane %v496_v9, 1  ;;  %5895 = vmatpush3.bf16.msra.mxu1 %v6688_v14  ;;  %v323_v9 = vld [vmem:[%s7100_s21 + $0x148] sm:$0x3]  ;;  %v7381_v14 = vsel %vm372_vm1, %v451_v32, %v7265_v34  ;;  %v7424_v34 = vrot.slane %v513_v36, 1  ;;  %v532_v32 = vshll.u32 %v7396_v58, 16 }
  0x50   : > { %1510 = vmatmul.mubr.bf16.gmra.mrb[12].mxu1 %v7225_v0  ;;  %1356 = vmatprep.mubr.bf16.mxu0 %v7255_v26  ;;  %v7402_v60 = vpack.c.bf16 %v323_v9, %v323_v9  ;;  %v324_v9 = vld [vmem:[%s7100_s21 + $0x150] sm:$0xff] }
  0x51   : > { %1517 = vmatprep.mubr.bf16.mxu1 %v7192_v43  ;;  %5793 = vmatpush3.bf16.msra.mxu0 %v6684_v40  ;;  %v482_v40 = vshrl.u32 %v7278_v42, 16  ;;  %v7452_v28 = vpack.c.bf16 %v325_v20, %v324_v9  ;;  %v7473_v20 = vsel %vm613_vm0, %v635_v47, %v636_v54  ;;  %v475_v9 = vor.u32 %v7323_v18, %v470_v2  ;;  %v6702_v2 = vld [vmem:[%s9715_s1 + $0x1b8] sm:$0xff]  }
  0x52   : > { %5896 = vmatprep.subr.bf16.mxu1 %v6689_v25  ;;  %v520_v25 = vshll.u32 %v7371_v62, 16  ;;  %5794 = vmatprep.subr.bf16.mxu0 %v6693_v24  ;;  %v463_v24 = vor.u32 %v7305_v63, %v458_v46  ;;  %v537_v44 = vshll.u32 %v7402_v60, 16  ;;  %v326_v46 = vld [vmem:[%s7100_s21 + $0x160] sm:$0x3]  ;;  %v7439_v63 = vrot.slane %v525_v3, 1  ;;  %v6699_v3 = vld [vmem:[%s9715_s1 + $0x1f0] sm:$0xff]  }
  0x53   : > { %5897 = vmatpush3.bf16.msra.mxu1 %v6690_v51  ;;  %v6694_v51 = vld [vmem:[%s9715_s1 + $0x138] sm:$0xff]   ;;  %v7459_v36 = vpack.c.bf16 %v326_v46, %v326_v46  ;;  %v656_v54 = vrot.slane %v7452_v28, 1  ;;  %v7499_v18 = vsel %vm372_vm1, %v475_v9, %v7342_v33  ;;  %v7508_v46 = vsel %vm613_vm0, %v638_v5, %v639_v19  ;;  %v327_v9 = vld [vmem:[%s7100_s21 + $0x168] sm:$0xff] }
  0x54   : > { %5898 = vmatprep.subr.bf16.mxu1 %v6691_v55  ;;  %v6696_v55 = vld [vmem:[%s9715_s1 + $0x1a0] sm:$0xff]   ;;  %v7432_v29 = vrot.slane %v520_v25, 1  ;;  %v6698_v25 = vld [vmem:[%s9715_s1 + $0x1a8] sm:$0xff]   ;;  %v7462_v7 = vrot.slane %v537_v44, 1  ;;  %v487_v33 = vor.u32 %v7348_v39, %v482_v40  ;;  %v9763_v5 = vrot.slane %v7284_v48, 1 }
  0x55   : > { %5795 = vmatpush3.bf16.msra.mxu0 %v6694_v51  ;;  %v653_v51 = vrot.slane %v7396_v58, 1  ;;  %v7479_v44 = vld [vmem:[%s9715_s1 + $0x200] sm:$0xff]   ;;  %v549_v47 = vshll.u32 %v7459_v36, 16  ;;  %v9764_v19 = vrot.slane %v7278_v42, 1  ;;  %v9765_v39 = vshrl.u32 %v7286_v49, 16 }
  0x56   : > { %6500 = vmatprep.subr.bf16.mxu0 %v7479_v44  ;;  %v9766_v48 = vrot.slane %v7301_v61, 1 }
  0x57   : > { %1357 = vmatmul.mubr.bf16.gmra.mrb[16].mxu0 %v7171_v30  ;;  %5899 = vmatpush3.bf16.msra.mxu1 %v6692_v23  ;;  %v7450_v23 = vrot.slane %v532_v32, 1  ;;  %v542_v32 = vshrl.u32 %v7452_v28, 16  ;;  %v7526_v40 = vsel %vm613_vm0, %v9764_v19, %v9763_v5  ;;  %v9770_v19 = vrot.slane %v7326_v22, 1 }
  0x58   : > { %1518 = vmatmul.mubr.bf16.gmra.mrb[16].mxu1 %v7276_v41  ;;  %1364 = vmatprep.mubr.bf16.mxu0 %v7321_v17 }
  0x59   : > { %1525 = vmatprep.mubr.bf16.mxu1 %v7197_v45  ;;  %5900 = vmatprep.subr.bf16.mxu1 %v6695_v53  ;;  %v7448_v53 = vsel %vm372_vm1, %v463_v24, %v7307_v1  ;;  %v6700_v1 = vld [vmem:[%s9715_s1 + $0x1b0] sm:$0xff]   ;;  %v544_v24 = vshll.u32 %v7452_v28, 16 }
  0x5b   : > { %5901 = vmatpush3.bf16.msra.mxu1 %v6696_v55  ;;  %v654_v55 = vrot.slane %v7402_v60, 1  ;;  %v546_v38 = vrot.slane %v544_v24, 1  ;;  %v328_v24 = vld [vmem:[%s7100_s21 + $0x170] sm:$0xff] }
  0x5c   : > { %5902 = vmatprep.subr.bf16.mxu1 %v6697_v59  ;;  %v657_v59 = vrot.slane %v7459_v36, 1 }
  0x5e   : > { %v7623_v60 = vsel %vm613_vm0, %v656_v54, %v657_v59  ;;  %v6704_v54 = vld [vmem:[%s9715_s1 + $0x208] sm:$0xff]   ;;  %v6705_v59 = vld [vmem:[%s9715_s1 + $0x210] sm:$0xff]  }
  0x5f   : > { %1365 = vmatmul.mubr.bf16.gmra.mrb[20].mxu0 %v7192_v43  ;;  %5903 = vmatpush3.bf16.msra.mxu1 %v6698_v25  ;;  %v7517_v25 = vsel %vm372_vm1, %v487_v33, %v7353_v8 }
  0x60   : > { %1526 = vmatmul.mubr.bf16.gmra.mrb[20].mxu1 %v7338_v11  ;;  %1372 = vmatprep.mubr.bf16.mxu0 %v7381_v14 }
  0x61   : > { %1533 = vmatprep.mubr.bf16.mxu1 %v7240_v15  ;;  %5904 = vmatprep.subr.bf16.mxu1 %v6699_v3  ;;  %v551_v3 = vrot.slane %v549_v47, 1  ;;  %v9768_v47 = vshrl.u32 %v7326_v22, 16 }
  0x63   : > { %5905 = vmatpush3.bf16.msra.mxu1 %v6700_v1  ;;  %v499_v1 = vor.u32 %v7356_v21, %v9765_v39 }
  0x64   : > { %5906 = vmatprep.subr.bf16.mxu1 %v6701_v16  ;;  %v9767_v16 = vrot.slane %v7286_v49, 1 }
  0x65   : > { %v7535_v8 = vsel %vm372_vm1, %v499_v1, %v7367_v57  ;;  %v7552_v57 = vpack.c.bf16 %v328_v24, %v327_v9  ;;  %v9771_v1 = vshrl.u32 %v7371_v62, 16  ;;  %v329_v24 = vld [vmem:[%s7100_s21 + $0x178] sm:$0x3] }
  0x66   : > { %v7546_v21 = vsel %vm613_vm0, %v9767_v16, %v9766_v48  ;;  %v9773_v48 = vrot.slane %v7371_v62, 1  ;;  %v9774_v16 = vshrl.u32 %v7396_v58, 16 }
  0x67   : > { %1373 = vmatmul.mubr.bf16.gmra.mrb[24].mxu0 %v7197_v45  ;;  %5907 = vmatpush3.bf16.msra.mxu1 %v6702_v2  ;;  %v511_v2 = vor.u32 %v7392_v37, %v9768_v47  ;;  %v554_v61 = vshrl.u32 %v7552_v57, 16  ;;  %v556_v5 = vshll.u32 %v7552_v57, 16  ;;  %v9769_v37 = vrot.slane %v7358_v50, 1 }
  0x68   : > { %1534 = vmatmul.mubr.bf16.gmra.mrb[24].mxu1 %v7418_v4  ;;  %1380 = vmatprep.mubr.bf16.mxu0 %v7448_v53  ;;  %v9772_v50 = vrot.slane %v7376_v6, 1  ;;  %v535_v47 = vor.u32 %v7450_v23, %v9774_v16  ;;  %v7605_v23 = vsel %vm613_vm0, %v653_v51, %v654_v55 }
  0x69   : > { %1541 = vmatprep.mubr.bf16.mxu1 %v7259_v31  ;;  %v7557_v33 = vsel %vm372_vm1, %v511_v2, %v7424_v34  ;;  %v7568_v39 = vsel %vm613_vm0, %v9770_v19, %v9769_v37  ;;  %v523_v34 = vor.u32 %v7432_v29, %v9771_v1  ;;  %v558_v6 = vrot.slane %v556_v5, 1  ;;  %v331_v1 = vld [vmem:[%s7100_s21 + $0x188] sm:$0xff] }
  0x6a   : > { %v7587_v29 = vsel %vm613_vm0, %v9773_v48, %v9772_v50  ;;  %v7596_v2 = vsel %vm372_vm1, %v535_v47, %v7462_v7  ;;  %v547_v19 = vor.u32 %v546_v38, %v542_v32  ;;  %v330_v7 = vld [vmem:[%s7100_s21 + $0x180] sm:$0xff]  ;;  %v659_v38 = vrot.slane %v7552_v57, 1 }
  0x6b   : > { %v7577_v9 = vsel %vm372_vm1, %v523_v34, %v7439_v63  ;;  %v367_v63 = vpack.c.bf16 %v329_v24, %v329_v24  ;;  %v7625_v51 = vpack.c.bf16 %v331_v1, %v330_v7  ;;  %v559_v55 = vor.u32 %v558_v6, %v554_v61  ;;  %v335_v7 = vld [vmem:[%s7100_s21 + $0x1a8] sm:$0x3] }
  0x6c   : > { %v7614_v5 = vsel %vm372_vm1, %v547_v19, %v551_v3 }
  0x6d   : > { %v561_v37 = vshll.u32 %v367_v63, 16  ;;  %v660_v3 = vrot.slane %v367_v63, 1  ;;  %v679_v16 = vshrl.u32 %v7625_v51, 16 }
  0x6f   : > { %1381 = vmatmul.mubr.bf16.gmra.mrb[28].mxu0 %v7240_v15  ;;  %v563_v32 = vrot.slane %v561_v37, 1  ;;  %v7636_v36 = vsel %vm613_vm0, %v659_v38, %v660_v3 }
  0x70   : > { %1542 = vmatmul.mubr.bf16.gmra.mrb[28].mxu1 %v7473_v20  ;;  %1388 = vmatprep.mubr.bf16.mxu0 %v7499_v18 }
  0x71   : > { %1549 = vmatprep.mubr.bf16.mxu1 %v7278_v42  ;;  %v7631_v34 = vsel %vm372_vm1, %v559_v55, %v563_v32 }
  0x77   : > { %1389 = vmatmul.mubr.bf16.gmra.mrb[32].mxu0 %v7259_v31 }
  0x78   : > { %1550 = vmatmul.mubr.bf16.gmra.mrb[32].mxu1 %v7508_v46  ;;  %1396 = vmatprep.mubr.bf16.mxu0 %v7517_v25 }
  0x79   : > { %1557 = vmatprep.mubr.bf16.mxu1 %v7286_v49 }
  0x7f   : > { %1397 = vmatmul.mubr.bf16.gmra.mrb[36].mxu0 %v7278_v42 }
  0x80   : > { %1558 = vmatmul.mubr.bf16.gmra.mrb[36].mxu1 %v7526_v40  ;;  %1404 = vmatprep.mubr.bf16.mxu0 %v7535_v8 }
  0x81   : > { %1565 = vmatprep.mubr.bf16.mxu1 %v7326_v22 }
  0x87   : > { %1405 = vmatmul.mubr.bf16.gmra.mrb[40].mxu0 %v7286_v49 }
  0x88   : > { %1566 = vmatmul.mubr.bf16.gmra.mrb[40].mxu1 %v7546_v21  ;;  %1412 = vmatprep.mubr.bf16.mxu0 %v7557_v33 }
  0x89   : > { %1573 = vmatprep.mubr.bf16.mxu1 %v7371_v62 }
  0x8f   : > { %1413 = vmatmul.mubr.bf16.gmra.mrb[44].mxu0 %v7326_v22 }
  0x90   : > { %1574 = vmatmul.mubr.bf16.gmra.mrb[44].mxu1 %v7568_v39  ;;  %1420 = vmatprep.mubr.bf16.mxu0 %v7577_v9 }
  0x91   : > { %1581 = vmatprep.mubr.bf16.mxu1 %v7396_v58 }
  0x97   : > { %1421 = vmatmul.mubr.bf16.gmra.mrb[48].mxu0 %v7371_v62 }
  0x98   : > { %1582 = vmatmul.mubr.bf16.gmra.mrb[48].mxu1 %v7587_v29  ;;  %1428 = vmatprep.mubr.bf16.mxu0 %v7596_v2 }
  0x99   : > { %1589 = vmatprep.mubr.bf16.mxu1 %v7452_v28 }
  0x9f   : > { %1429 = vmatmul.mubr.bf16.gmra.mrb[52].mxu0 %v7396_v58 }
  0xa0   : > { %1590 = vmatmul.mubr.bf16.gmra.mrb[52].mxu1 %v7605_v23  ;;  %1436 = vmatprep.mubr.bf16.mxu0 %v7614_v5 }
  0xa1   : > { %1597 = vmatprep.mubr.bf16.mxu1 %v7552_v57 }
  0xa7   : > { %1437 = vmatmul.mubr.bf16.gmra.mrb[56].mxu0 %v7452_v28 }
  0xa8   : > { %1598 = vmatmul.mubr.bf16.gmra.mrb[56].mxu1 %v7623_v60  ;;  %1444 = vmatprep.mubr.bf16.mxu0 %v7631_v34 }
  0xa9   : > { %1605 = vmatprep.mubr.bf16.mxu1 %v7625_v51 }
  0xaf   : > { %1445 = vmatmul.mubr.bf16.gmra.mrb[60].mxu0 %v7552_v57 }
  0xb0   : > { %1606 = vmatmul.mubr.bf16.gmra.mrb[60].mxu1 %v7636_v36  ;;  %1646 = vmatprep.mubr.bf16.mxu0 %v7149_v13  ;;  %v6709_v13 = vld [vmem:[%s9715_s1 + $0x230] sm:$0xff]  }
  0xb1   : > { %1807 = vmatprep.mubr.bf16.mxu1 %v7169_v27 }
  0xb7   : > { %1647 = vmatmul.mubr.bf16.vlgmr.msra.gmra.mrb[64].mxu0 %v7145_v12  ;;  %v6707_v12 = vld [vmem:[%s9715_s1 + $0x220] sm:$0xff]  }
  0xb8   : > { %1808 = vmatmul.mubr.bf16.vlgmr.msra.gmra.mrb[64].mxu1 %v7125_v56  ;;  %6501 = vmatpush3.bf16.msra.mxu0 %v7479_v44  ;;  %v6706_v56 = vld [vmem:[%s9715_s1 + $0x218] sm:$0xff]  }
  0xb9   : > { %1815 = vmatprep.mubr.bf16.mxu1 %v7210_v52  ;;  %1654 = vmatprep.mubr.bf16.mxu0 %v7182_v35 }
  0xba   : > { %6502 = vmatprep.subr.bf16.mxu0 %v6704_v54 }
  0xbc   : > { %6503 = vmatpush3.bf16.msra.mxu0 %v6704_v54  ;;  %v7729_v54 = vpack.c.bf16 %v335_v7, %v335_v7 }
  0xbd   : > { %6504 = vmatprep.subr.bf16.mxu0 %v6705_v59 }
  0xbf   : > { %1655 = vmatmul.mubr.bf16.gmra.mrb[68].mxu0 %v7169_v27  ;;  %v6710_v27 = vld [vmem:[%s9715_s1 + $0x238] sm:$0xff]  }
  0xc0   : > { %1816 = vmatmul.mubr.bf16.gmra.mrb[68].mxu1 %v7141_v10  ;;  %1662 = vmatprep.mubr.bf16.mxu0 %v7225_v0  ;;  %v6708_v10 = vld [vmem:[%s9715_s1 + $0x228] sm:$0xff]  }
  0xc1   : > { %1823 = vmatprep.mubr.bf16.mxu1 %v7255_v26  ;;  %6505 = vmatpush3.bf16.msra.mxu0 %v6705_v59 }
  0xc2   : > { %6506 = vmatprep.subr.bf16.mxu0 %v6706_v56 }
  0xc5   : > { %6507 = vmatpush3.bf16.msra.mxu0 %v6706_v56 }
  0xc6   : > { %6508 = vmatprep.subr.bf16.mxu0 %v6707_v12 }
  0xc7   : > { %1663 = vmatmul.mubr.bf16.gmra.mrb[72].mxu0 %v7210_v52 }
  0xc8   : > { %1824 = vmatmul.mubr.bf16.gmra.mrb[72].mxu1 %v7171_v30  ;;  %1670 = vmatprep.mubr.bf16.mxu0 %v7276_v41 }
  0xc9   : > { %1831 = vmatprep.mubr.bf16.mxu1 %v7321_v17  ;;  %6509 = vmatpush3.bf16.msra.mxu0 %v6707_v12 }
  0xca   : > { %6510 = vmatprep.subr.bf16.mxu0 %v6708_v10 }
  0xcd   : > { %6511 = vmatpush3.bf16.msra.mxu0 %v6708_v10 }
  0xce   : > { %6512 = vmatprep.subr.bf16.mxu0 %v6709_v13 }
  0xcf   : > { %1671 = vmatmul.mubr.bf16.gmra.mrb[76].mxu0 %v7255_v26 }
  0xd0   : > { %1832 = vmatmul.mubr.bf16.gmra.mrb[76].mxu1 %v7192_v43  ;;  %1678 = vmatprep.mubr.bf16.mxu0 %v7338_v11 }
  0xd1   : > { %1839 = vmatprep.mubr.bf16.mxu1 %v7381_v14  ;;  %6513 = vmatpush3.bf16.msra.mxu0 %v6709_v13 }
  0xd2   : > { %6514 = vmatprep.subr.bf16.mxu0 %v6710_v27 }
  0xd5   : > { %6515 = vmatpush3.bf16.msra.mxu0 %v6710_v27 }
  0xd7   : > { %1679 = vmatmul.mubr.bf16.gmra.mrb[80].mxu0 %v7321_v17 }
  0xd8   : > { %1840 = vmatmul.mubr.bf16.gmra.mrb[80].mxu1 %v7197_v45  ;;  %1686 = vmatprep.mubr.bf16.mxu0 %v7418_v4 }
  0xd9   : > { %1847 = vmatprep.mubr.bf16.mxu1 %v7448_v53 }
  0xdf   : > { %1687 = vmatmul.mubr.bf16.gmra.mrb[84].mxu0 %v7381_v14 }
  0xe0   : > { %1848 = vmatmul.mubr.bf16.gmra.mrb[84].mxu1 %v7240_v15  ;;  %1694 = vmatprep.mubr.bf16.mxu0 %v7473_v20 }
  0xe1   : > { %1855 = vmatprep.mubr.bf16.mxu1 %v7499_v18 }
  0xe7   : > { %1695 = vmatmul.mubr.bf16.gmra.mrb[88].mxu0 %v7448_v53  ;;  %v681_v53 = vshll.u32 %v7625_v51, 16 }
  0xe8   : > { %1856 = vmatmul.mubr.bf16.gmra.mrb[88].mxu1 %v7259_v31  ;;  %1702 = vmatprep.mubr.bf16.mxu0 %v7508_v46 }
  0xe9   : > { %1863 = vmatprep.mubr.bf16.mxu1 %v7517_v25  ;;  %v683_v47 = vrot.slane %v681_v53, 1 }
  0xeb   : > { %v684_v38 = vor.u32 %v683_v47, %v679_v16  ;;  %v693_v16 = vrot.slane %v7625_v51, 1 }
  0xef   : > { %1703 = vmatmul.mubr.bf16.gmra.mrb[92].mxu0 %v7499_v18 }
  0xf0   : > { %1864 = vmatmul.mubr.bf16.gmra.mrb[92].mxu1 %v7278_v42  ;;  %1710 = vmatprep.mubr.bf16.mxu0 %v7526_v40  ;;  %v332_v42 = vld [vmem:[%s7100_s21 + $0x190] sm:$0x3] }
  0xf1   : > { %1871 = vmatprep.mubr.bf16.mxu1 %v7535_v8  ;;  %v7711_v14 = vpack.c.bf16 %v332_v42, %v332_v42 }
  0xf3   : > { %v686_v63 = vshll.u32 %v7711_v14, 16  ;;  %v694_v47 = vrot.slane %v7711_v14, 1 }
  0xf5   : > { %v688_v3 = vrot.slane %v686_v63, 1 }
  0xf7   : > { %1711 = vmatmul.mubr.bf16.gmra.mrb[96].mxu0 %v7517_v25  ;;  %v333_v25 = vld [vmem:[%s7100_s21 + $0x198] sm:$0xff] }
  0xf8   : > { %1872 = vmatmul.mubr.bf16.gmra.mrb[96].mxu1 %v7286_v49  ;;  %1718 = vmatprep.mubr.bf16.mxu0 %v7546_v21 }
  0xf9   : > { %1879 = vmatprep.mubr.bf16.mxu1 %v7557_v33 }
  0xff   : > { %1719 = vmatmul.mubr.bf16.gmra.mrb[100].mxu0 %v7535_v8  ;;  %v334_v8 = vld [vmem:[%s7100_s21 + $0x1a0] sm:$0xff] }
 0x100   : > { %1880 = vmatmul.mubr.bf16.gmra.mrb[100].mxu1 %v7326_v22  ;;  %1726 = vmatprep.mubr.bf16.mxu0 %v7568_v39  ;;  %v7724_v6 = vpack.c.bf16 %v334_v8, %v333_v25 }
 0x101   : > { %1887 = vmatprep.mubr.bf16.mxu1 %v7577_v9 }
 0x102   : > { %v700_v59 = vshll.u32 %v7724_v6, 16 }
 0x107   : > { %1727 = vmatmul.mubr.bf16.gmra.mrb[104].mxu0 %v7557_v33 }
 0x108   : > { %1888 = vmatmul.mubr.bf16.gmra.mrb[104].mxu1 %v7371_v62  ;;  %1734 = vmatprep.mubr.bf16.mxu0 %v7587_v29 }
 0x109   : > { %1895 = vmatprep.mubr.bf16.mxu1 %v7596_v2 }
 0x10a   : > { %v5572_v26 = vpop.f32.mrb[0].mxu0 }
 0x10b   : > { %v5684_v30 = vpop.f32.mrb[0].mxu1  ;;  %v5573_v49 = vpop.f32.mrb[1].mxu0 }
 0x10c   : > { %v5685_v43 = vpop.f32.mrb[1].mxu1  ;;  %v5574_v17 = vadd.f32 %v5573_v49, %v5572_v26  ;;  %v5575_v22 = vpop.f32.mrb[2].mxu0  ;;  %v705_v26 = vshll.u32 %v7729_v54, 16 }
 0x10d   : > { %v5686_v45 = vadd.f32 %v5685_v43, %v5684_v30  ;;  %v5687_v52 = vpop.f32.mrb[2].mxu1  ;;  %v5576_v62 = vpop.f32.mrb[3].mxu0 }
 0x10e   : > { %v5688_v15 = vpop.f32.mrb[3].mxu1  ;;  %v5577_v44 = vadd.f32 %v5576_v62, %v5575_v22  ;;  %v707_v53 = vrot.slane %v705_v26, 1 }
 0x10f   : > { %v5689_v31 = vadd.f32 %v5688_v15, %v5687_v52  ;;  %v7716_v33 = vadd.f32 %v5686_v45, %v5574_v17  ;;  %1735 = vmatmul.mubr.bf16.gmra.mrb[108].mxu0 %v7577_v9  ;;  %v689_v45 = vsel %vm372_vm1, %v684_v38, %v688_v3  ;;  %v698_v52 = vshrl.u32 %v7724_v6, 16 }
 0x110   : > { %1896 = vmatmul.mubr.bf16.gmra.mrb[108].mxu1 %v7396_v58  ;;  %1742 = vmatprep.mubr.bf16.mxu0 %v7605_v23  ;;  %v702_v15 = vrot.slane %v700_v59, 1 }
 0x111   : > { %1903 = vmatprep.mubr.bf16.mxu1 %v7614_v5  ;;  %v7720_v50 = vadd.f32 %v5689_v31, %v5577_v44 }
 0x112   : > { %v5578_v37 = vpop.f32.mrb[4].mxu0  ;;  %v703_v62 = vor.u32 %v702_v15, %v698_v52 }
 0x113   : > { %v5690_v18 = vpop.f32.mrb[4].mxu1  ;;  %v5579_v1 = vpop.f32.mrb[5].mxu0 }
 0x114   : > { %v5691_v61 = vpop.f32.mrb[5].mxu1  ;;  %v5580_v9 = vadd.f32 %v5579_v1, %v5578_v37  ;;  %v5581_v55 = vpop.f32.mrb[6].mxu0  ;;  %v708_v63 = vsel %vm372_vm1, %v703_v62, %v707_v53  ;;  %v6713_v62 = vld [vmem:[%s9716_s2 + $0x48] sm:$0xff]  }
 0x115   : > { %v5692_v58 = vadd.f32 %v5691_v61, %v5690_v18  ;;  %v5693_v24 = vpop.f32.mrb[6].mxu1  ;;  %v5582_v32 = vpop.f32.mrb[7].mxu0 }
 0x116   : > { %v5694_v48 = vpop.f32.mrb[7].mxu1  ;;  %v5583_v56 = vadd.f32 %v5582_v32, %v5581_v55  ;;  %v7759_v32 = vsel %vm613_vm0, %v693_v16, %v694_v47 }
 0x117   : > { %v5695_v19 = vadd.f32 %v5694_v48, %v5693_v24  ;;  %v7732_v10 = vadd.f32 %v5692_v58, %v5580_v9  ;;  %1743 = vmatmul.mubr.bf16.gmra.mrb[112].mxu0 %v7596_v2 }
 0x118   : > { %1904 = vmatmul.mubr.bf16.gmra.mrb[112].mxu1 %v7452_v28  ;;  %1750 = vmatprep.mubr.bf16.mxu0 %v7623_v60 }
 0x119   : > { %1911 = vmatprep.mubr.bf16.mxu1 %v7631_v34  ;;  %v7736_v30 = vadd.f32 %v5695_v19, %v5583_v56  ;;  %v6712_v19 = vld [vmem:[%s9716_s2] sm:$0xff]  }
 0x11a   : > { %v5584_v31 = vpop.f32.mrb[8].mxu0 }
 0x11b   : > { %v5696_v12 = vpop.f32.mrb[8].mxu1  ;;  %v5585_v49 = vpop.f32.mrb[9].mxu0 }
 0x11c   : > { %v5697_v13 = vpop.f32.mrb[9].mxu1  ;;  %v5586_v2 = vadd.f32 %v5585_v49, %v5584_v31  ;;  %v5587_v17 = vpop.f32.mrb[10].mxu0 }
 0x11d   : > { %v5698_v27 = vadd.f32 %v5697_v13, %v5696_v12  ;;  %v5699_v28 = vpop.f32.mrb[10].mxu1  ;;  %v5588_v22 = vpop.f32.mrb[11].mxu0 }
 0x11e   : > { %v5700_v43 = vpop.f32.mrb[11].mxu1  ;;  %v5589_v44 = vadd.f32 %v5588_v22, %v5587_v17 }
 0x11f   : > { %v5701_v42 = vadd.f32 %v5700_v43, %v5699_v28  ;;  %v7742_v25 = vadd.f32 %v5698_v27, %v5586_v2  ;;  %1751 = vmatmul.mubr.bf16.gmra.mrb[116].mxu0 %v7614_v5 }
 0x120   : > { %1912 = vmatmul.mubr.bf16.gmra.mrb[116].mxu1 %v7552_v57  ;;  %1758 = vmatprep.mubr.bf16.mxu0 %v7636_v36  ;;  %v6711_v57 = vld [vmem:[%s9716_s2 + $0x40] sm:$0xff]  }
 0x121   : > { %1919 = vmatprep.mubr.bf16.mxu1 %v689_v45  ;;  %v7746_v24 = vadd.f32 %v5701_v42, %v5589_v44  ;;  %6028 = vmatprep.subr.bf16.mxu1 %v6711_v57 }
 0x122   : > { %v5590_v37 = vpop.f32.mrb[12].mxu0  ;;  %6029 = vmatpush3.bf16.msra.mxu1 %v6712_v19 }
 0x123   : > { %v5702_v18 = vpop.f32.mrb[12].mxu1  ;;  %v5591_v7 = vpop.f32.mrb[13].mxu0  ;;  %6030 = vmatprep.subr.bf16.mxu1 %v6713_v62 }
 0x124   : > { %v5703_v8 = vpop.f32.mrb[13].mxu1  ;;  %v5592_v1 = vadd.f32 %v5591_v7, %v5590_v37  ;;  %v5593_v9 = vpop.f32.mrb[14].mxu0 }
 0x125   : > { %v5704_v61 = vadd.f32 %v5703_v8, %v5702_v18  ;;  %v5705_v58 = vpop.f32.mrb[14].mxu1  ;;  %v5594_v55 = vpop.f32.mrb[15].mxu0  ;;  %v6714_v8 = vld [vmem:[%s9716_s2 + $0x8] sm:$0xff]  }
 0x126   : > { %v5706_v48 = vpop.f32.mrb[15].mxu1  ;;  %v5595_v14 = vadd.f32 %v5594_v55, %v5593_v9  ;;  %6031 = vmatpush3.bf16.msra.mxu1 %v6714_v8 }
 0x127   : > { %v5707_v5 = vadd.f32 %v5706_v48, %v5705_v58  ;;  %v7761_v3 = vadd.f32 %v5704_v61, %v5592_v1  ;;  %1759 = vmatmul.mubr.bf16.gmra.mrb[120].mxu0 %v7631_v34 }
 0x128   : > { %1920 = vmatmul.mubr.bf16.gmra.mrb[120].mxu1 %v7625_v51  ;;  %1766 = vmatprep.mubr.bf16.mxu0 %v7759_v32 }
 0x129   : > { %1927 = vmatprep.mubr.bf16.mxu1 %v708_v63  ;;  %v7765_v51 = vadd.f32 %v5707_v5, %v5595_v14 }
 0x12a   : > { %v5596_v27 = vpop.f32.mrb[16].mxu0 }
 0x12b   : > { %v5708_v38 = vpop.f32.mrb[16].mxu1  ;;  %v5597_v43 = vpop.f32.mrb[17].mxu0 }
 0x12c   : > { %v5709_v59 = vpop.f32.mrb[17].mxu1  ;;  %v5598_v52 = vadd.f32 %v5597_v43, %v5596_v27  ;;  %v5599_v15 = vpop.f32.mrb[18].mxu0 }
 0x12d   : > { %v5710_v56 = vadd.f32 %v5709_v59, %v5708_v38  ;;  %v5711_v12 = vpop.f32.mrb[18].mxu1  ;;  %v5600_v26 = vpop.f32.mrb[19].mxu0 }
 0x12e   : > { %v5712_v13 = vpop.f32.mrb[19].mxu1  ;;  %v5601_v31 = vadd.f32 %v5600_v26, %v5599_v15  ;;  %v6716_v26 = vld [vmem:[%s9716_s2 + $0x10] sm:$0xff]  }
 0x12f   : > { %v5713_v28 = vadd.f32 %v5712_v13, %v5711_v12  ;;  %v7768_v49 = vadd.f32 %v5710_v56, %v5598_v52  ;;  %1767 = vmatmul.mubr.bf16.gmra.mrb[124].mxu0 %v689_v45 }
 0x130   : > { %1928 = vmatmul.mubr.bf16.gmra.mrb[124].mxu1 %v7724_v6  ;;  %6516 = vmatprep.mubr.bf16.mxu0 %v7182_v35 }
 0x131   : > { %v7771_v22 = vadd.f32 %v5713_v28, %v5601_v31  ;;  %v6715_v28 = vld [vmem:[%s9716_s2 + $0x50] sm:$0xff]  }
 0x132   : > { %v5602_v44 = vpop.f32.mrb[20].mxu0  ;;  %6032 = vmatprep.subr.bf16.mxu1 %v6715_v28 }
 0x133   : > { %v5714_v42 = vpop.f32.mrb[20].mxu1  ;;  %v5603_v45 = vpop.f32.mrb[21].mxu0  ;;  %6033 = vmatpush3.bf16.msra.mxu1 %v6716_v26 }
 0x134   : > { %v5715_v34 = vpop.f32.mrb[21].mxu1  ;;  %v5604_v61 = vadd.f32 %v5603_v45, %v5602_v44  ;;  %v5605_v58 = vpop.f32.mrb[22].mxu0 }
 0x135   : > { %v5716_v2 = vadd.f32 %v5715_v34, %v5714_v42  ;;  %v5717_v17 = vpop.f32.mrb[22].mxu1  ;;  %v5606_v57 = vpop.f32.mrb[23].mxu0 }
 0x136   : > { %v5718_v53 = vpop.f32.mrb[23].mxu1  ;;  %v5607_v35 = vadd.f32 %v5606_v57, %v5605_v58 }
 0x137   : > { %v5719_v18 = vadd.f32 %v5718_v53, %v5717_v17  ;;  %v7779_v16 = vadd.f32 %v5716_v2, %v5604_v61  ;;  %6517 = vmatmul.mubr.bf16.vlgmr.msra.gmra.mrb[128].mxu0 %v7225_v0 }
 0x138   : > { %6520 = vmatprep.mubr.bf16.mxu0 %v7276_v41 }
 0x139   : > { %v7783_v5 = vadd.f32 %v5719_v18, %v5607_v35 }
 0x13a   : > { %v5608_v7 = vpop.f32.mrb[24].mxu0 }
 0x13b   : > { %v5720_v48 = vpop.f32.mrb[24].mxu1  ;;  %v5609_v9 = vpop.f32.mrb[25].mxu0 }
 0x13c   : > { %v5721_v47 = vpop.f32.mrb[25].mxu1  ;;  %v5610_v55 = vadd.f32 %v5609_v9, %v5608_v7  ;;  %v5611_v14 = vpop.f32.mrb[26].mxu0 }
 0x13d   : > { %v5722_v63 = vadd.f32 %v5721_v47, %v5720_v48  ;;  %v5723_v37 = vpop.f32.mrb[26].mxu1  ;;  %v5612_v38 = vpop.f32.mrb[27].mxu0 }
 0x13e   : > { %v5724_v19 = vpop.f32.mrb[27].mxu1  ;;  %v5613_v59 = vadd.f32 %v5612_v38, %v5611_v14  ;;  %v6718_v38 = vld [vmem:[%s9716_s2 + $0x18] sm:$0xff]  }
 0x13f   : > { %v5725_v1 = vadd.f32 %v5724_v19, %v5723_v37  ;;  %v7785_v12 = vadd.f32 %v5722_v63, %v5610_v55  ;;  %6521 = vmatmul.mubr.bf16.gmra.mrb[132].mxu0 %v7338_v11 }
 0x140   : > { %6524 = vmatprep.mubr.bf16.mxu0 %v7418_v4 }
 0x141   : > { %v7789_v41 = vadd.f32 %v5725_v1, %v5613_v59  ;;  %v6717_v1 = vld [vmem:[%s9716_s2 + $0x58] sm:$0xff]  }
 0x142   : > { %v5614_v52 = vpop.f32.mrb[28].mxu0  ;;  %6034 = vmatprep.subr.bf16.mxu1 %v6717_v1 }
 0x143   : > { %v5726_v56 = vpop.f32.mrb[28].mxu1  ;;  %v5615_v11 = vpop.f32.mrb[29].mxu0  ;;  %6035 = vmatpush3.bf16.msra.mxu1 %v6718_v38  ;;  %v712_v38 = vrot.slane %v7724_v6, 1 }
 0x144   : > { %v5727_v0 = vpop.f32.mrb[29].mxu1  ;;  %v5616_v31 = vadd.f32 %v5615_v11, %v5614_v52  ;;  %v5617_v42 = vpop.f32.mrb[30].mxu0 }
 0x145   : > { %v5728_v13 = vadd.f32 %v5727_v0, %v5726_v56  ;;  %v5729_v27 = vpop.f32.mrb[30].mxu1  ;;  %v5618_v34 = vpop.f32.mrb[31].mxu0 }
 0x146   : > { %v5730_v43 = vpop.f32.mrb[31].mxu1  ;;  %v5619_v4 = vadd.f32 %v5618_v34, %v5617_v42 }
 0x147   : > { %v5731_v15 = vadd.f32 %v5730_v43, %v5729_v27  ;;  %v7797_v17 = vadd.f32 %v5728_v13, %v5616_v31  ;;  %6525 = vmatmul.mubr.bf16.gmra.mrb[136].mxu0 %v7473_v20 }
 0x148   : > { %6528 = vmatprep.mubr.bf16.mxu0 %v7508_v46 }
 0x149   : > { %v7801_v18 = vadd.f32 %v5731_v15, %v5619_v4 }
 0x14a   : > { %v5620_v45 = vpop.f32.mrb[32].mxu0 }
 0x14b   : > { %v5732_v2 = vpop.f32.mrb[32].mxu1  ;;  %v5621_v58 = vpop.f32.mrb[33].mxu0 }
 0x14c   : > { %v5733_v62 = vpop.f32.mrb[33].mxu1  ;;  %v5622_v57 = vadd.f32 %v5621_v58, %v5620_v45  ;;  %v5623_v35 = vpop.f32.mrb[34].mxu0 }
 0x14d   : > { %v5734_v53 = vadd.f32 %v5733_v62, %v5732_v2  ;;  %v5735_v44 = vpop.f32.mrb[34].mxu1  ;;  %v5624_v48 = vpop.f32.mrb[35].mxu0 }
 0x14e   : > { %v5736_v8 = vpop.f32.mrb[35].mxu1  ;;  %v5625_v63 = vadd.f32 %v5624_v48, %v5623_v35  ;;  %v6720_v48 = vld [vmem:[%s9716_s2 + $0x20] sm:$0xff]  }
 0x14f   : > { %v5737_v61 = vadd.f32 %v5736_v8, %v5735_v44  ;;  %v7803_v47 = vadd.f32 %v5734_v53, %v5622_v57  ;;  %6529 = vmatmul.mubr.bf16.gmra.mrb[140].mxu0 %v7526_v40 }
 0x150   : > { %6532 = vmatprep.mubr.bf16.mxu0 %v7546_v21 }
 0x151   : > { %v7806_v19 = vadd.f32 %v5737_v61, %v5625_v63 }
 0x152   : > { %v5626_v55 = vpop.f32.mrb[36].mxu0 }
 0x153   : > { %v5738_v37 = vpop.f32.mrb[36].mxu1  ;;  %v5627_v40 = vpop.f32.mrb[37].mxu0 }
 0x154   : > { %v5739_v20 = vpop.f32.mrb[37].mxu1  ;;  %v5628_v59 = vadd.f32 %v5627_v40, %v5626_v55  ;;  %v5629_v56 = vpop.f32.mrb[38].mxu0  ;;  %v713_v40 = vrot.slane %v7729_v54, 1  ;;  %v6721_v54 = vld [vmem:[%s9716_s2 + $0x68] sm:$0xff]  }
 0x155   : > { %v5740_v7 = vadd.f32 %v5739_v20, %v5738_v37  ;;  %v5741_v46 = vpop.f32.mrb[38].mxu1  ;;  %v5630_v0 = vpop.f32.mrb[39].mxu0 }
 0x156   : > { %v5742_v9 = vpop.f32.mrb[39].mxu1  ;;  %v5631_v21 = vadd.f32 %v5630_v0, %v5629_v56 }
 0x157   : > { %v5743_v14 = vadd.f32 %v5742_v9, %v5741_v46  ;;  %v7815_v13 = vadd.f32 %v5740_v7, %v5628_v59  ;;  %6533 = vmatmul.mubr.bf16.gmra.mrb[144].mxu0 %v7568_v39 }
 0x158   : > { %6536 = vmatprep.mubr.bf16.mxu0 %v7587_v29  ;;  %v6719_v29 = vld [vmem:[%s9716_s2 + $0x60] sm:$0xff]  }
 0x159   : > { %v7818_v43 = vadd.f32 %v5743_v14, %v5631_v21  ;;  %6036 = vmatprep.subr.bf16.mxu1 %v6719_v29 }
 0x15a   : > { %v5632_v11 = vpop.f32.mrb[40].mxu0  ;;  %6037 = vmatpush3.bf16.msra.mxu1 %v6720_v48 }
 0x15b   : > { %v5744_v27 = vpop.f32.mrb[40].mxu1  ;;  %v5633_v42 = vpop.f32.mrb[41].mxu0  ;;  %6038 = vmatprep.subr.bf16.mxu1 %v6721_v54 }
 0x15c   : > { %v5745_v28 = vpop.f32.mrb[41].mxu1  ;;  %v5634_v34 = vadd.f32 %v5633_v42, %v5632_v11  ;;  %v5635_v4 = vpop.f32.mrb[42].mxu0 }
 0x15d   : > { %v5746_v52 = vadd.f32 %v5745_v28, %v5744_v27  ;;  %v5747_v15 = vpop.f32.mrb[42].mxu1  ;;  %v5636_v2 = vpop.f32.mrb[43].mxu0 }
 0x15e   : > { %v5748_v26 = vpop.f32.mrb[43].mxu1  ;;  %v5637_v53 = vadd.f32 %v5636_v2, %v5635_v4 }
 0x15f   : > { %v5749_v31 = vadd.f32 %v5748_v26, %v5747_v15  ;;  %v7821_v62 = vadd.f32 %v5746_v52, %v5634_v34  ;;  %6537 = vmatmul.mubr.bf16.gmra.mrb[148].mxu0 %v7605_v23  ;;  %v714_v52 = vsel %vm613_vm0, %v712_v38, %v713_v40 }
 0x160   : > { %6540 = vmatprep.mubr.bf16.mxu0 %v7623_v60 }
 0x161   : > { %v7824_v8 = vadd.f32 %v5749_v31, %v5637_v53  ;;  %v6722_v53 = vld [vmem:[%s9716_s2 + $0x28] sm:$0xff]  }
 0x162   : > { %v5638_v57 = vpop.f32.mrb[44].mxu0  ;;  %6039 = vmatpush3.bf16.msra.mxu1 %v6722_v53  ;;  %v6913_v53 = vmov 0  }
 0x163   : > { %v5750_v44 = vpop.f32.mrb[44].mxu1  ;;  %v5639_v23 = vpop.f32.mrb[45].mxu0  ;;  %2206 = vst [vmem:[#allocation2 + $0x4] sm:$0xf] %v6913_v53  ;;  %2207 = vst [vmem:[#allocation2 + $0x8] sm:$0xf] %v6913_v53 }
 0x164   : > { %v5751_v39 = vpop.f32.mrb[45].mxu1  ;;  %v5640_v63 = vadd.f32 %v5639_v23, %v5638_v57  ;;  %v5641_v37 = vpop.f32.mrb[46].mxu0  ;;  %2205 = vst [vmem:[#allocation2] sm:$0xf] %v6913_v53  ;;  %2215 = vst [vmem:[#allocation2 + $0x110] sm:$0xf] %v6913_v53 }
 0x165   : > { %v5752_v45 = vadd.f32 %v5751_v39, %v5750_v44  ;;  %v5753_v61 = vpop.f32.mrb[46].mxu1  ;;  %v5642_v20 = vpop.f32.mrb[47].mxu0  ;;  %2216 = vst [vmem:[#allocation2 + $0x114] sm:$0xf] %v6913_v53  ;;  %2217 = vst [vmem:[#allocation2 + $0x118] sm:$0xf] %v6913_v53 }
 0x166   : > { %v5754_v58 = vpop.f32.mrb[47].mxu1  ;;  %v5643_v60 = vadd.f32 %v5642_v20, %v5641_v37 }
 0x167   : > { %v5755_v35 = vadd.f32 %v5754_v58, %v5753_v61  ;;  %v7833_v7 = vadd.f32 %v5752_v45, %v5640_v63  ;;  %6541 = vmatmul.mubr.bf16.gmra.mrb[152].mxu0 %v7636_v36 }
 0x168   : > { %6544 = vmatprep.mubr.bf16.mxu0 %v7759_v32 }
 0x169   : > { %v7836_v9 = vadd.f32 %v5755_v35, %v5643_v60 }
 0x16a   : > { %v5644_v56 = vpop.f32.mrb[48].mxu0 }
 0x16b   : > { %v5756_v46 = vpop.f32.mrb[48].mxu1  ;;  %v5645_v21 = vpop.f32.mrb[49].mxu0 }
 0x16c   : > { %v5757_v1 = vpop.f32.mrb[49].mxu1  ;;  %v5646_v27 = vadd.f32 %v5645_v21, %v5644_v56  ;;  %v5647_v28 = vpop.f32.mrb[50].mxu0 }
 0x16d   : > { %v5758_v55 = vadd.f32 %v5757_v1, %v5756_v46  ;;  %v5759_v14 = vpop.f32.mrb[50].mxu1  ;;  %v5648_v36 = vpop.f32.mrb[51].mxu0 }
 0x16e   : > { %v5760_v59 = vpop.f32.mrb[51].mxu1  ;;  %v5649_v26 = vadd.f32 %v5648_v36, %v5647_v28  ;;  %v6723_v28 = vld [vmem:[%s9716_s2 + $0x70] sm:$0xff]  }
 0x16f   : > { %v5761_v0 = vadd.f32 %v5760_v59, %v5759_v14  ;;  %v7842_v15 = vadd.f32 %v5758_v55, %v5646_v27  ;;  %6545 = vmatmul.mubr.bf16.gmra.mrb[156].mxu0 %v714_v52  ;;  %6040 = vmatprep.subr.bf16.mxu1 %v6723_v28 }
 0x171   : > { %v7844_v32 = vadd.f32 %v5761_v0, %v5649_v26 }
 0x172   : > { %v5650_v4 = vpop.f32.mrb[52].mxu0 }
 0x173   : > { %v5762_v11 = vpop.f32.mrb[52].mxu1  ;;  %v5651_v44 = vpop.f32.mrb[53].mxu0 }
 0x174   : > { %v5763_v31 = vpop.f32.mrb[53].mxu1  ;;  %v5652_v39 = vadd.f32 %v5651_v44, %v5650_v4  ;;  %v5653_v45 = vpop.f32.mrb[54].mxu0 }
 0x175   : > { %v5764_v6 = vadd.f32 %v5763_v31, %v5762_v11  ;;  %v5765_v42 = vpop.f32.mrb[54].mxu1  ;;  %v5654_v61 = vpop.f32.mrb[55].mxu0  ;;  %v6724_v11 = vld [vmem:[%s9716_s2 + $0x30] sm:$0xff]  }
 0x176   : > { %v5766_v34 = vpop.f32.mrb[55].mxu1  ;;  %v5655_v58 = vadd.f32 %v5654_v61, %v5653_v45  ;;  %6041 = vmatpush3.bf16.msra.mxu1 %v6724_v11 }
 0x177   : > { %v5767_v2 = vadd.f32 %v5766_v34, %v5765_v42  ;;  %v7852_v29 = vadd.f32 %v5764_v6, %v5652_v39 }
 0x179   : > { %v7854_v48 = vadd.f32 %v5767_v2, %v5655_v58  ;;  %v6725_v58 = vld [vmem:[%s9716_s2 + $0xc0] sm:$0xff]  }
 0x17a   : > { %v5656_v20 = vpop.f32.mrb[56].mxu0  ;;  %6140 = vmatprep.subr.bf16.mxu0 %v6725_v58 }
 0x17b   : > { %v5768_v57 = vpop.f32.mrb[56].mxu1  ;;  %v5657_v46 = vpop.f32.mrb[57].mxu0 }
 0x17c   : > { %v5769_v35 = vpop.f32.mrb[57].mxu1  ;;  %v5658_v1 = vadd.f32 %v5657_v46, %v5656_v20  ;;  %v5659_v55 = vpop.f32.mrb[58].mxu0  ;;  %v6727_v46 = vld [vmem:[%s9716_s2 + $0xc8] sm:$0xff]  }
 0x17d   : > { %v5770_v23 = vadd.f32 %v5769_v35, %v5768_v57  ;;  %v5771_v63 = vpop.f32.mrb[58].mxu1  ;;  %v5660_v14 = vpop.f32.mrb[59].mxu0  ;;  %v6726_v35 = vld [vmem:[%s9716_s2 + $0x80] sm:$0xff]  }
 0x17e   : > { %v5772_v37 = vpop.f32.mrb[59].mxu1  ;;  %v5661_v40 = vadd.f32 %v5660_v14, %v5659_v55  ;;  %6141 = vmatpush3.bf16.msra.mxu0 %v6726_v35  ;;  %v6728_v55 = vld [vmem:[%s9716_s2 + $0x88] sm:$0xff]  }
 0x17f   : > { %v5773_v60 = vadd.f32 %v5772_v37, %v5771_v63  ;;  %v7856_v38 = vadd.f32 %v5770_v23, %v5658_v1  ;;  %6142 = vmatprep.subr.bf16.mxu0 %v6727_v46 }
 0x181   : > { %v7858_v0 = vadd.f32 %v5773_v60, %v5661_v40  ;;  %v2224_v40 = vld [vmem:[#allocation2] sm:$0x8] }
 0x182   : > { %v5662_v36 = vpop.f32.mrb[60].mxu0  ;;  %6143 = vmatpush3.bf16.msra.mxu0 %v6728_v55 }
 0x183   : > { %v5774_v59 = vpop.f32.mrb[60].mxu1  ;;  %v5663_v31 = vpop.f32.mrb[61].mxu0 }
 0x184   : > { %v5775_v56 = vpop.f32.mrb[61].mxu1  ;;  %v5664_v6 = vadd.f32 %v5663_v31, %v5662_v36  ;;  %v5665_v42 = vpop.f32.mrb[62].mxu0  ;;  %v6731_v31 = vld [vmem:[%s9716_s2 + $0xd0] sm:$0xff]  }
 0x185   : > { %v5776_v21 = vadd.f32 %v5775_v56, %v5774_v59  ;;  %v5777_v27 = vpop.f32.mrb[62].mxu1  ;;  %v5666_v54 = vpop.f32.mrb[63].mxu0  ;;  %6144 = vmatprep.subr.bf16.mxu0 %v6731_v31 }
 0x186   : > { %v5778_v52 = vpop.f32.mrb[63].mxu1  ;;  %v5667_v4 = vadd.f32 %v5666_v54, %v5665_v42 }
 0x187   : > { %v5779_v26 = vadd.f32 %v5778_v52, %v5777_v27  ;;  %v7866_v34 = vadd.f32 %v5776_v21, %v5664_v6  ;;  %v2225_v27 = vsel %vm7882_vm4, 0, %v2224_v40  ;;  %v6732_v6 = vld [vmem:[%s9716_s2 + $0x90] sm:$0xff]  }
 0x188   : > { %2226 = vst [vmem:[#allocation2] sm:$0x8] %v2225_v27  ;;  %6145 = vmatpush3.bf16.msra.mxu0 %v6732_v6 }
 0x189   : > { %v7868_v39 = vadd.f32 %v5779_v26, %v5667_v4 }
 0x18a   : > { %v5796_v23 = vpop.f32.mrb[64].mxu0 }
 0x18b   : > { %v5908_v2 = vpop.f32.mrb[64].mxu1  ;;  %v5797_v37 = vpop.f32.mrb[65].mxu0 }
 0x18c   : > { %v5909_v44 = vpop.f32.mrb[65].mxu1  ;;  %v5798_v20 = vadd.f32 %v5797_v37, %v5796_v23  ;;  %v5799_v60 = vpop.f32.mrb[66].mxu0 }
 0x18d   : > { %v5910_v45 = vadd.f32 %v5909_v44, %v5908_v2  ;;  %v5911_v61 = vpop.f32.mrb[66].mxu1  ;;  %v5800_v1 = vpop.f32.mrb[67].mxu0  ;;  %v6733_v44 = vld [vmem:[%s9716_s2 + $0xd8] sm:$0xff]  }
 0x18e   : > { %v5912_v57 = vpop.f32.mrb[67].mxu1  ;;  %v1649_v59 = vadd.f32 %v5798_v20, %v7716_v33  ;;  %v5801_v56 = vadd.f32 %v5800_v1, %v5799_v60  ;;  %6146 = vmatprep.subr.bf16.mxu0 %v6733_v44 }
 0x18f   : > { %v5913_v63 = vadd.f32 %v5912_v57, %v5911_v61  ;;  %v7905_v61 = vld [vmem:[#allocation2 + $0x8] sm:$0xf]  ;;  %v6734_v57 = vld [vmem:[%s9716_s2 + $0x98] sm:$0xff]   ;;  %v2493_v60 = vld [vmem:[#allocation2] sm:$0xf] }
 0x190   : > { %v1652_v52 = vadd.f32 %v5801_v56, %v7720_v50  ;;  %v7890_v11 = vadd.f32 %v5910_v45, %v1649_v59  ;;  %v7903_v45 = vld [vmem:[#allocation2 + $0x4] sm:$0xf]  ;;  %v2582_v23 = vshrl.u32 %v7905_v61, 16  ;;  %6147 = vmatpush3.bf16.msra.mxu0 %v6734_v57  ;;  %v2585_v59 = vshll.u32 %v7905_v61, 16  ;;  %v2227_v57 = vld [vmem:[#allocation2 + $0x10] sm:$0x8] }
 0x191   : > { %v2573_v35 = vshrl.u32 %v7903_v45, 16  ;;  %v2576_v55 = vshll.u32 %v7903_v45, 16 }
 0x192   : > { %v5802_v42 = vpop.f32.mrb[68].mxu0  ;;  %v7898_v4 = vadd.f32 %v5913_v63, %v1652_v52  ;;  %v2584_v40 = vrot.slane %v2582_v23, 7  ;;  %v6735_v52 = vld [vmem:[%s9716_s2 + $0xe0] sm:$0xff]  }
 0x193   : > { %v5914_v21 = vpop.f32.mrb[68].mxu1  ;;  %v5803_v2 = vpop.f32.mrb[69].mxu0  ;;  %v2575_v1 = vrot.slane %v2573_v35, 7  ;;  %6148 = vmatprep.subr.bf16.mxu0 %v6735_v52 }
 0x194   : > { %v5915_v28 = vpop.f32.mrb[69].mxu1  ;;  %v5804_v50 = vadd.f32 %v5803_v2, %v5802_v42  ;;  %v5805_v53 = vpop.f32.mrb[70].mxu0  ;;  %v2587_v42 = vor.u32 %v2585_v59, %v2584_v40 }
 0x195   : > { %v5916_v36 = vadd.f32 %v5915_v28, %v5914_v21  ;;  %v5917_v26 = vpop.f32.mrb[70].mxu1  ;;  %v5806_v58 = vpop.f32.mrb[71].mxu0  ;;  %v6729_v28 = vld [vmem:[%s9716_s2 + $0x78] sm:$0xff]   ;;  %v2580_v6 = vrot.slane %v2575_v1, 4 }
 0x196   : > { %v5918_v33 = vpop.f32.mrb[71].mxu1  ;;  %v1657_v63 = vadd.f32 %v5804_v50, %v7732_v10  ;;  %v5807_v37 = vadd.f32 %v5806_v58, %v5805_v53  ;;  %6042 = vmatprep.subr.bf16.mxu1 %v6729_v28  ;;  %v6739_v28 = vld [vmem:[%s9716_s2 + $0xa8] sm:$0xff]  }
 0x197   : > { %v5919_v54 = vadd.f32 %v5918_v33, %v5917_v26  ;;  %v2568_v26 = vshrl.u32 %v2493_v60, 16  ;;  %v6730_v33 = vld [vmem:[%s9716_s2 + $0x38] sm:$0xff]  }
 0x198   : > { %v1660_v56 = vadd.f32 %v5807_v37, %v7736_v30  ;;  %v7920_v27 = vadd.f32 %v5916_v36, %v1657_v63  ;;  %v6736_v30 = vld [vmem:[%s9716_s2 + $0xa0] sm:$0xff]   ;;  %v2578_v36 = vor.u32 %v2576_v55, %v2575_v1  ;;  %6043 = vmatpush3.bf16.msra.mxu1 %v6730_v33  ;;  %v5406_v37 = vcombine.low %v7903_v45, %v7905_v61  ;;  %v6738_v1 = vld [vmem:[%s9716_s2 + $0xe8] sm:$0xff]   ;;  %v6742_v45 = vld [vmem:[%s9716_s2 + $0xf0] sm:$0xff]  }
 0x199   : > { %v5372_v58 = vrot.slane %v2568_v26, 11  ;;  %6149 = vmatpush3.bf16.msra.mxu0 %v6736_v30  ;;  %v2211_v30 = vld [vmem:[#allocation2 + $0xc] sm:$0x1] }
 0x19a   : > { %v5808_v2 = vpop.f32.mrb[72].mxu0  ;;  %v7934_v53 = vadd.f32 %v5919_v54, %v1660_v56  ;;  %v2228_v54 = vsel %vm7882_vm4, 0, %v2227_v57  ;;  %4078 = vmatprep.mubr.bf16.mxu1 %v5406_v37  ;;  %6150 = vmatprep.subr.bf16.mxu0 %v6738_v1  ;;  %v2923_v37 = vrot.slane %v2576_v55, 5 }
 0x19b   : > { %v5920_v20 = vpop.f32.mrb[72].mxu1  ;;  %v5809_v63 = vpop.f32.mrb[73].mxu0  ;;  %v2579_v40 = vsel %vm7937_vm7, %v5372_v58, %v2578_v36  ;;  %2229 = vst [vmem:[#allocation2 + $0x10] sm:$0x8] %v2228_v54  ;;  %v2928_v54 = vrot.slane %v2582_v23, 4  ;;  %v6744_v23 = vld [vmem:[%s9716_s2 + $0xb0] sm:$0xff]  }
 0x19c   : > { %v5921_v46 = vpop.f32.mrb[73].mxu1  ;;  %v5810_v60 = vadd.f32 %v5809_v63, %v5808_v2  ;;  %v2922_v63 = vrot.slane %v2573_v35, 4 }
 0x19d   : > { %v5922_v10 = vadd.f32 %v5921_v46, %v5920_v20  ;;  %v5923_v21 = vpop.f32.mrb[74].mxu1  ;;  %v2588_v20 = vsel %vm7937_vm7, %v2580_v6, %v2587_v42  ;;  %v5811_v46 = vpop.f32.mrb[74].mxu0  ;;  %6151 = vmatpush3.bf16.msra.mxu0 %v6739_v28  ;;  %v2212_v6 = vsel %vm7957_vm9, 0, %v2211_v30 }
 0x19e   : > { %v5924_v31 = vpop.f32.mrb[75].mxu1  ;;  %v5812_v56 = vpop.f32.mrb[75].mxu0  ;;  %v1665_v52 = vadd.f32 %v5810_v60, %v7742_v25  ;;  %2213 = vst [vmem:[#allocation2 + $0xc] sm:$0x1] %v2212_v6  ;;  %6152 = vmatprep.subr.bf16.mxu0 %v6742_v45  ;;  %v6743_v45 = vld [vmem:[%s9716_s2 + $0x100] sm:$0xff]  }
 0x19f   : > { %v5925_v50 = vadd.f32 %v5924_v31, %v5923_v21  ;;  %v5390_v21 = vcombine.low %v2579_v40, %v2588_v20  ;;  %v5813_v26 = vadd.f32 %v5812_v56, %v5811_v46  ;;  %v7968_v20 = vrot.slane %v2585_v59, 5  ;;  %v2230_v56 = vld [vmem:[#allocation2 + $0x20] sm:$0x8] }
 0x1a0   : > { %v7964_v25 = vadd.f32 %v5922_v10, %v1665_v52  ;;  %v2924_v40 = vor.u32 %v2923_v37, %v2922_v63  ;;  %v2231_v35 = vsel %vm7882_vm4, 0, %v2230_v56 }
 0x1a1   : > { %4079 = vmatmul.mubr.bf16.vlgmr.msra.gmra.mrb[128].mxu1 %v5390_v21  ;;  %v1668_v42 = vadd.f32 %v5813_v26, %v7746_v24  ;;  %v2929_v10 = vor.u32 %v2928_v54, %v7968_v20  ;;  %2232 = vst [vmem:[#allocation2 + $0x20] sm:$0x8] %v2231_v35  ;;  %6153 = vmatpush3.bf16.msra.mxu0 %v6744_v23 }
 0x1a2   : > { %v5814_v60 = vpop.f32.mrb[76].mxu0 }
 0x1a3   : > { %v5926_v31 = vpop.f32.mrb[76].mxu1  ;;  %v7972_v1 = vadd.f32 %v5925_v50, %v1668_v42  ;;  %v5815_v24 = vpop.f32.mrb[77].mxu0  ;;  %v6740_v42 = vld [vmem:[%s9716_s2 + $0x140] sm:$0xff]  }
 0x1a4   : > { %v5927_v36 = vpop.f32.mrb[77].mxu1  ;;  %v5816_v21 = vadd.f32 %v5815_v24, %v5814_v60  ;;  %v5817_v28 = vpop.f32.mrb[78].mxu0  ;;  %6252 = vmatprep.subr.bf16.mxu1 %v6740_v42 }
 0x1a5   : > { %v5928_v2 = vadd.f32 %v5927_v36, %v5926_v31  ;;  %v5929_v58 = vpop.f32.mrb[78].mxu1  ;;  %v5818_v61 = vpop.f32.mrb[79].mxu0  ;;  %v2278_v26 = vld [vmem:[#allocation2 + $0xc] sm:$0x1]  ;;  %6253 = vmatpush3.bf16.msra.mxu1 %v6743_v45 }
 0x1a6   : > { %v5930_v57 = vpop.f32.mrb[79].mxu1  ;;  %v1673_v55 = vadd.f32 %v5816_v21, %v7761_v3  ;;  %v5819_v59 = vadd.f32 %v5818_v61, %v5817_v28  ;;  %v6745_v3 = vld [vmem:[%s9716_s2 + $0xf8] sm:$0xff]  }
 0x1a7   : > { %v5931_v46 = vadd.f32 %v5930_v57, %v5929_v58  ;;  %v2279_v58 = vsel %vm7957_vm9, 0, %v2278_v26  ;;  %v2281_v57 = vld [vmem:[#allocation2 + $0x1c] sm:$0x1]  ;;  %6154 = vmatprep.subr.bf16.mxu0 %v6745_v3 }
 0x1a8   : > { %v1676_v31 = vadd.f32 %v5819_v59, %v7765_v51  ;;  %v7985_v6 = vadd.f32 %v5928_v2, %v1673_v55  ;;  %v6746_v51 = vld [vmem:[%s9716_s2 + $0xb8] sm:$0xff]   ;;  %2280 = vst [vmem:[#allocation2 + $0xc] sm:$0x1] %v2279_v58  ;;  %v2282_v2 = vsel %vm7957_vm9, 0, %v2281_v57  ;;  %v2925_v59 = vrot.slane %v2924_v40, 4 }
 0x1a9   : > { %2283 = vst [vmem:[#allocation2 + $0x1c] sm:$0x1] %v2282_v2  ;;  %6155 = vmatpush3.bf16.msra.mxu0 %v6746_v51  ;;  %v2284_v2 = vld [vmem:[#allocation2 + $0x2c] sm:$0x1] }
 0x1aa   : > { %v5820_v37 = vpop.f32.mrb[80].mxu0  ;;  %v8000_v60 = vadd.f32 %v5931_v46, %v1676_v31  ;;  %v2930_v31 = vrot.slane %v2929_v10, 4 }
 0x1ab   : > { %v5932_v50 = vpop.f32.mrb[80].mxu1  ;;  %v5821_v24 = vpop.f32.mrb[81].mxu0 }
 0x1ac   : > { %v5933_v52 = vpop.f32.mrb[81].mxu1  ;;  %v5822_v56 = vadd.f32 %v5821_v24, %v5820_v37  ;;  %v5823_v21 = vpop.f32.mrb[82].mxu0  ;;  %v2285_v24 = vsel %vm7957_vm9, 0, %v2284_v2 }
 0x1ad   : > { %v5934_v30 = vadd.f32 %v5933_v52, %v5932_v50  ;;  %v5935_v36 = vpop.f32.mrb[82].mxu1  ;;  %v5824_v28 = vpop.f32.mrb[83].mxu0  ;;  %2286 = vst [vmem:[#allocation2 + $0x2c] sm:$0x1] %v2285_v24 }
 0x1ae   : > { %v5936_v63 = vpop.f32.mrb[83].mxu1  ;;  %v1681_v35 = vadd.f32 %v5822_v56, %v7768_v49  ;;  %v5825_v61 = vadd.f32 %v5824_v28, %v5823_v21 }
 0x1af   : > { %v5937_v54 = vadd.f32 %v5936_v63, %v5935_v36  ;;  %v2496_v36 = vld [vmem:[#allocation2 + $0xc] sm:$0x1]  ;;  %v2233_v63 = vld [vmem:[#allocation2 + $0x30] sm:$0x8] }
 0x1b0   : > { %v1684_v46 = vadd.f32 %v5825_v61, %v7771_v22  ;;  %v8007_v26 = vadd.f32 %v5934_v30, %v1681_v35  ;;  %v2932_v3 = vshll.u32 %v2496_v36, 16  ;;  %v2234_v22 = vsel %vm7882_vm4, 0, %v2233_v63 }
 0x1b1   : > { %2235 = vst [vmem:[#allocation2 + $0x30] sm:$0x8] %v2234_v22 }
 0x1b2   : > { %v5826_v58 = vpop.f32.mrb[84].mxu0  ;;  %v8009_v49 = vadd.f32 %v5937_v54, %v1684_v46  ;;  %v2934_v40 = vrot.slane %v2932_v3, 5  ;;  %v2927_v54 = vsel %vm8013_vm12, %v2925_v59, %v7968_v20 }
 0x1b3   : > { %v5938_v23 = vpop.f32.mrb[84].mxu1  ;;  %v5827_v51 = vpop.f32.mrb[85].mxu0 }
 0x1b4   : > { %v5939_v55 = vpop.f32.mrb[85].mxu1  ;;  %v5828_v37 = vadd.f32 %v5827_v51, %v5826_v58  ;;  %v5829_v30 = vpop.f32.mrb[86].mxu0  ;;  %v2935_v21 = vsel %vm8013_vm12, %v2930_v31, %v2934_v40 }
 0x1b5   : > { %v5940_v50 = vadd.f32 %v5939_v55, %v5938_v23  ;;  %v5941_v52 = vpop.f32.mrb[86].mxu1  ;;  %v5830_v56 = vpop.f32.mrb[87].mxu0  ;;  %v8025_v61 = vcombine.low %v2927_v54, %v2935_v21 }
 0x1b6   : > { %v5942_v42 = vpop.f32.mrb[87].mxu1  ;;  %v1689_v28 = vadd.f32 %v5828_v37, %v7779_v16  ;;  %v5831_v45 = vadd.f32 %v5830_v56, %v5829_v30  ;;  %v6748_v16 = vld [vmem:[%s9716_s2 + $0x148] sm:$0xff]  }
 0x1b7   : > { %v5943_v57 = vadd.f32 %v5942_v42, %v5941_v52  ;;  %6254 = vmatprep.subr.bf16.mxu1 %v6748_v16 }
 0x1b8   : > { %v1692_v55 = vadd.f32 %v5831_v45, %v7783_v5  ;;  %v8028_v36 = vadd.f32 %v5940_v50, %v1689_v28  ;;  %v2236_v50 = vld [vmem:[#allocation2 + $0x40] sm:$0x8] }
 0x1b9   : > { %v2237_v37 = vsel %vm7882_vm4, 0, %v2236_v50 }
 0x1ba   : > { %v5832_v3 = vpop.f32.mrb[88].mxu0  ;;  %v8030_v59 = vadd.f32 %v5943_v57, %v1692_v55  ;;  %v6750_v57 = vld [vmem:[%s9716_s2 + $0x108] sm:$0xff]   ;;  %2238 = vst [vmem:[#allocation2 + $0x40] sm:$0x8] %v2237_v37  ;;  %v2239_v37 = vld [vmem:[#allocation2 + $0x50] sm:$0x8] }
 0x1bb   : > { %v5944_v35 = vpop.f32.mrb[88].mxu1  ;;  %v5833_v31 = vpop.f32.mrb[89].mxu0  ;;  %6255 = vmatpush3.bf16.msra.mxu1 %v6750_v57 }
 0x1bc   : > { %v5945_v23 = vpop.f32.mrb[89].mxu1  ;;  %v5834_v58 = vadd.f32 %v5833_v31, %v5832_v3  ;;  %v5835_v63 = vpop.f32.mrb[90].mxu0 }
 0x1bd   : > { %v5946_v46 = vadd.f32 %v5945_v23, %v5944_v35  ;;  %v5947_v52 = vpop.f32.mrb[90].mxu1  ;;  %v5836_v51 = vpop.f32.mrb[91].mxu0  ;;  %v2287_v23 = vld [vmem:[#allocation2 + $0x3c] sm:$0x1] }
 0x1be   : > { %v5948_v42 = vpop.f32.mrb[91].mxu1  ;;  %v1697_v5 = vadd.f32 %v5834_v58, %v7785_v12  ;;  %v5837_v40 = vadd.f32 %v5836_v51, %v5835_v63 }
 0x1bf   : > { %v5949_v20 = vadd.f32 %v5948_v42, %v5947_v52  ;;  %v2288_v42 = vsel %vm7957_vm9, 0, %v2287_v23 }
 0x1c0   : > { %v1700_v30 = vadd.f32 %v5837_v40, %v7789_v41  ;;  %v8042_v54 = vadd.f32 %v5946_v46, %v1697_v5  ;;  %2289 = vst [vmem:[#allocation2 + $0x3c] sm:$0x1] %v2288_v42  ;;  %v2290_v5 = vld [vmem:[#allocation2 + $0x4c] sm:$0x1] }
 0x1c2   : > { %v5838_v12 = vpop.f32.mrb[92].mxu0  ;;  %v8044_v45 = vadd.f32 %v5949_v20, %v1700_v30  ;;  %v2240_v30 = vsel %vm7882_vm4, 0, %v2239_v37 }
 0x1c3   : > { %v5950_v22 = vpop.f32.mrb[92].mxu1  ;;  %v5839_v35 = vpop.f32.mrb[93].mxu0  ;;  %2241 = vst [vmem:[#allocation2 + $0x50] sm:$0x8] %v2240_v30 }
 0x1c4   : > { %v5951_v2 = vpop.f32.mrb[93].mxu1  ;;  %v5840_v55 = vadd.f32 %v5839_v35, %v5838_v12  ;;  %v5841_v52 = vpop.f32.mrb[94].mxu0 }
 0x1c5   : > { %v5952_v24 = vadd.f32 %v5951_v2, %v5950_v22  ;;  %v5953_v56 = vpop.f32.mrb[94].mxu1  ;;  %v5842_v3 = vpop.f32.mrb[95].mxu0  ;;  %v2291_v22 = vsel %vm7957_vm9, 0, %v2290_v5 }
 0x1c6   : > { %v5954_v21 = vpop.f32.mrb[95].mxu1  ;;  %v1705_v41 = vadd.f32 %v5840_v55, %v7797_v17  ;;  %v5843_v46 = vadd.f32 %v5842_v3, %v5841_v52  ;;  %2292 = vst [vmem:[#allocation2 + $0x4c] sm:$0x1] %v2291_v22 }
 0x1c7   : > { %v5955_v28 = vadd.f32 %v5954_v21, %v5953_v56 }
 0x1c8   : > { %v1708_v58 = vadd.f32 %v5843_v46, %v7801_v18  ;;  %v8050_v20 = vadd.f32 %v5952_v24, %v1705_v41 }
 0x1ca   : > { %v5844_v50 = vpop.f32.mrb[96].mxu0  ;;  %v8054_v57 = vadd.f32 %v5955_v28, %v1708_v58  ;;  %v6752_v28 = vld [vmem:[%s9716_s2 + $0x150] sm:$0xff]   ;;  %v2242_v58 = vld [vmem:[#allocation2 + $0x60] sm:$0x8] }
 0x1cb   : > { %v5956_v16 = vpop.f32.mrb[96].mxu1  ;;  %v5845_v17 = vpop.f32.mrb[97].mxu0  ;;  %6256 = vmatprep.subr.bf16.mxu1 %v6752_v28 }
 0x1cc   : > { %v5957_v31 = vpop.f32.mrb[97].mxu1  ;;  %v5846_v18 = vadd.f32 %v5845_v17, %v5844_v50  ;;  %v5847_v56 = vpop.f32.mrb[98].mxu0  ;;  %v6754_v17 = vld [vmem:[%s9716_s2 + $0x110] sm:$0xff]  }
 0x1cd   : > { %v5958_v63 = vadd.f32 %v5957_v31, %v5956_v16  ;;  %v5959_v51 = vpop.f32.mrb[98].mxu1  ;;  %v5848_v24 = vpop.f32.mrb[99].mxu0  ;;  %6257 = vmatpush3.bf16.msra.mxu1 %v6754_v17 }
 0x1ce   : > { %v5960_v40 = vpop.f32.mrb[99].mxu1  ;;  %v1713_v21 = vadd.f32 %v5846_v18, %v7803_v47  ;;  %v5849_v12 = vadd.f32 %v5848_v24, %v5847_v56 }
 0x1cf   : > { %v5961_v2 = vadd.f32 %v5960_v40, %v5959_v51  ;;  %v2243_v40 = vsel %vm7882_vm4, 0, %v2242_v58 }
 0x1d0   : > { %v1716_v55 = vadd.f32 %v5849_v12, %v7806_v19  ;;  %v8063_v3 = vadd.f32 %v5958_v63, %v1713_v21  ;;  %2244 = vst [vmem:[#allocation2 + $0x60] sm:$0x8] %v2243_v40  ;;  %v2293_v21 = vld [vmem:[#allocation2 + $0x5c] sm:$0x1] }
 0x1d2   : > { %v5850_v46 = vpop.f32.mrb[100].mxu0  ;;  %v8065_v31 = vadd.f32 %v5961_v2, %v1716_v55  ;;  %v2296_v2 = vld [vmem:[#allocation2 + $0x6c] sm:$0x1] }
 0x1d3   : > { %v5962_v35 = vpop.f32.mrb[100].mxu1  ;;  %v5851_v47 = vpop.f32.mrb[101].mxu0  ;;  %v2297_v12 = vsel %vm7957_vm9, 0, %v2296_v2  ;;  %v6756_v2 = vld [vmem:[%s9716_s2 + $0x158] sm:$0xff]  }
 0x1d4   : > { %v5963_v23 = vpop.f32.mrb[101].mxu1  ;;  %v5852_v51 = vadd.f32 %v5851_v47, %v5850_v46  ;;  %v5853_v5 = vpop.f32.mrb[102].mxu0  ;;  %2298 = vst [vmem:[#allocation2 + $0x6c] sm:$0x1] %v2297_v12  ;;  %6258 = vmatprep.subr.bf16.mxu1 %v6756_v2 }
 0x1d5   : > { %v5964_v52 = vadd.f32 %v5963_v23, %v5962_v35  ;;  %v5965_v42 = vpop.f32.mrb[102].mxu1  ;;  %v5854_v22 = vpop.f32.mrb[103].mxu0 }
 0x1d6   : > { %v5966_v41 = vpop.f32.mrb[103].mxu1  ;;  %v1721_v19 = vadd.f32 %v5852_v51, %v7815_v13  ;;  %v5855_v50 = vadd.f32 %v5854_v22, %v5853_v5  ;;  %v2294_v13 = vsel %vm7957_vm9, 0, %v2293_v21  ;;  %v2248_v22 = vld [vmem:[#allocation2 + $0x80] sm:$0x8] }
 0x1d7   : > { %v5967_v16 = vadd.f32 %v5966_v41, %v5965_v42  ;;  %2295 = vst [vmem:[#allocation2 + $0x5c] sm:$0x1] %v2294_v13 }
 0x1d8   : > { %v1724_v30 = vadd.f32 %v5855_v50, %v7818_v43  ;;  %v8074_v24 = vadd.f32 %v5964_v52, %v1721_v19  ;;  %v2245_v52 = vld [vmem:[#allocation2 + $0x70] sm:$0x8] }
 0x1d9   : > { %v2246_v47 = vsel %vm7882_vm4, 0, %v2245_v52 }
 0x1da   : > { %v5856_v23 = vpop.f32.mrb[104].mxu0  ;;  %v8080_v55 = vadd.f32 %v5967_v16, %v1724_v30  ;;  %2247 = vst [vmem:[#allocation2 + $0x70] sm:$0x8] %v2246_v47 }
 0x1db   : > { %v5968_v63 = vpop.f32.mrb[104].mxu1  ;;  %v5857_v43 = vpop.f32.mrb[105].mxu0 }
 0x1dc   : > { %v5969_v37 = vpop.f32.mrb[105].mxu1  ;;  %v5858_v42 = vadd.f32 %v5857_v43, %v5856_v23  ;;  %v5859_v41 = vpop.f32.mrb[106].mxu0 }
 0x1dd   : > { %v5970_v18 = vadd.f32 %v5969_v37, %v5968_v63  ;;  %v5971_v56 = vpop.f32.mrb[106].mxu1  ;;  %v5860_v46 = vpop.f32.mrb[107].mxu0  ;;  %v2249_v37 = vsel %vm7882_vm4, 0, %v2248_v22  ;;  %v2251_v22 = vld [vmem:[#allocation2 + $0x90] sm:$0x8] }
 0x1de   : > { %v5972_v35 = vpop.f32.mrb[107].mxu1  ;;  %v1729_v58 = vadd.f32 %v5858_v42, %v7821_v62  ;;  %v5861_v51 = vadd.f32 %v5860_v46, %v5859_v41  ;;  %2250 = vst [vmem:[#allocation2 + $0x80] sm:$0x8] %v2249_v37 }
 0x1df   : > { %v5973_v28 = vadd.f32 %v5972_v35, %v5971_v56 }
 0x1e0   : > { %v1732_v19 = vadd.f32 %v5861_v51, %v7824_v8  ;;  %v8086_v63 = vadd.f32 %v5970_v18, %v1729_v58  ;;  %v2302_v8 = vld [vmem:[#allocation2 + $0x8c] sm:$0x1]  ;;  %v2299_v18 = vld [vmem:[#allocation2 + $0x7c] sm:$0x1] }
 0x1e1   : > { %v2303_v13 = vsel %vm7957_vm9, 0, %v2302_v8  ;;  %v2300_v43 = vsel %vm7957_vm9, 0, %v2299_v18  ;;  %v2308_v18 = vld [vmem:[#allocation2 + $0xac] sm:$0x1] }
 0x1e2   : > { %v5862_v62 = vpop.f32.mrb[108].mxu0  ;;  %v8093_v56 = vadd.f32 %v5973_v28, %v1732_v19  ;;  %2304 = vst [vmem:[#allocation2 + $0x8c] sm:$0x1] %v2303_v13  ;;  %2301 = vst [vmem:[#allocation2 + $0x7c] sm:$0x1] %v2300_v43 }
 0x1e3   : > { %v5974_v5 = vpop.f32.mrb[108].mxu1  ;;  %v5863_v21 = vpop.f32.mrb[109].mxu0 }
 0x1e4   : > { %v5975_v40 = vpop.f32.mrb[109].mxu1  ;;  %v5864_v12 = vadd.f32 %v5863_v21, %v5862_v62  ;;  %v5865_v35 = vpop.f32.mrb[110].mxu0 }
 0x1e5   : > { %v5976_v16 = vadd.f32 %v5975_v40, %v5974_v5  ;;  %v5977_v50 = vpop.f32.mrb[110].mxu1  ;;  %v5866_v23 = vpop.f32.mrb[111].mxu0  ;;  %v6758_v5 = vld [vmem:[%s9716_s2 + $0x118] sm:$0xff]  }
 0x1e6   : > { %v5978_v17 = vpop.f32.mrb[111].mxu1  ;;  %v1737_v42 = vadd.f32 %v5864_v12, %v7833_v7  ;;  %v5867_v41 = vadd.f32 %v5866_v23, %v5865_v35  ;;  %6259 = vmatpush3.bf16.msra.mxu1 %v6758_v5  ;;  %v2252_v7 = vsel %vm7882_vm4, 0, %v2251_v22 }
 0x1e7   : > { %v5979_v30 = vadd.f32 %v5978_v17, %v5977_v50  ;;  %2253 = vst [vmem:[#allocation2 + $0x90] sm:$0x8] %v2252_v7  ;;  %v2257_v7 = vld [vmem:[#allocation2 + $0xb0] sm:$0x8] }
 0x1e8   : > { %v1740_v46 = vadd.f32 %v5867_v41, %v7836_v9  ;;  %v8101_v51 = vadd.f32 %v5976_v16, %v1737_v42  ;;  %v2254_v9 = vld [vmem:[#allocation2 + $0xa0] sm:$0x8]  ;;  %v2305_v41 = vld [vmem:[#allocation2 + $0x9c] sm:$0x1] }
 0x1e9   : > { %v2255_v62 = vsel %vm7882_vm4, 0, %v2254_v9  ;;  %v2258_v9 = vsel %vm7882_vm4, 0, %v2257_v7 }
 0x1ea   : > { %v5868_v19 = vpop.f32.mrb[112].mxu0  ;;  %v8106_v37 = vadd.f32 %v5979_v30, %v1740_v46  ;;  %2256 = vst [vmem:[#allocation2 + $0xa0] sm:$0x8] %v2255_v62  ;;  %v2306_v46 = vsel %vm7957_vm9, 0, %v2305_v41  ;;  %2259 = vst [vmem:[#allocation2 + $0xb0] sm:$0x8] %v2258_v9 }
 0x1eb   : > { %v5980_v52 = vpop.f32.mrb[112].mxu1  ;;  %v5869_v17 = vpop.f32.mrb[113].mxu0  ;;  %2307 = vst [vmem:[#allocation2 + $0x9c] sm:$0x1] %v2306_v46 }
 0x1ec   : > { %v5981_v28 = vpop.f32.mrb[113].mxu1  ;;  %v5870_v2 = vadd.f32 %v5869_v17, %v5868_v19  ;;  %v5871_v16 = vpop.f32.mrb[114].mxu0 }
 0x1ed   : > { %v5982_v47 = vadd.f32 %v5981_v28, %v5980_v52  ;;  %v5983_v58 = vpop.f32.mrb[114].mxu1  ;;  %v5872_v21 = vpop.f32.mrb[115].mxu0  ;;  %v6760_v28 = vld [vmem:[%s9716_s2 + $0x1c0] sm:$0xff]  }
 0x1ee   : > { %v5984_v40 = vpop.f32.mrb[115].mxu1  ;;  %v1745_v8 = vadd.f32 %v5870_v2, %v7842_v15  ;;  %v5873_v12 = vadd.f32 %v5872_v21, %v5871_v16  ;;  %v6762_v15 = vld [vmem:[%s9716_s2 + $0x160] sm:$0xff]   ;;  %6364 = vmatprep.subr.bf16.mxu0 %v6760_v28 }
 0x1ef   : > { %v5985_v50 = vadd.f32 %v5984_v40, %v5983_v58  ;;  %6260 = vmatprep.subr.bf16.mxu1 %v6762_v15  ;;  %v2260_v21 = vld [vmem:[#allocation2 + $0xc0] sm:$0x8] }
 0x1f0   : > { %v1748_v13 = vadd.f32 %v5873_v12, %v7844_v32  ;;  %v8114_v42 = vadd.f32 %v5982_v47, %v1745_v8  ;;  %v2309_v47 = vsel %vm7957_vm9, 0, %v2308_v18  ;;  %v6764_v18 = vld [vmem:[%s9716_s2 + $0x120] sm:$0xff]  }
 0x1f1   : > { %2310 = vst [vmem:[#allocation2 + $0xac] sm:$0x1] %v2309_v47  ;;  %6261 = vmatpush3.bf16.msra.mxu1 %v6764_v18 }
 0x1f2   : > { %v5874_v58 = vpop.f32.mrb[116].mxu0  ;;  %v8124_v32 = vadd.f32 %v5985_v50, %v1748_v13  ;;  %v2261_v13 = vsel %vm7882_vm4, 0, %v2260_v21  ;;  %v6768_v21 = vld [vmem:[%s9716_s2 + $0x168] sm:$0xff]  }
 0x1f3   : > { %v5986_v35 = vpop.f32.mrb[116].mxu1  ;;  %v5875_v40 = vpop.f32.mrb[117].mxu0  ;;  %2262 = vst [vmem:[#allocation2 + $0xc0] sm:$0x8] %v2261_v13  ;;  %6262 = vmatprep.subr.bf16.mxu1 %v6768_v21  ;;  %v2269_v21 = vld [vmem:[#allocation2 + $0xf0] sm:$0x8] }
 0x1f4   : > { %v5987_v30 = vpop.f32.mrb[117].mxu1  ;;  %v5876_v22 = vadd.f32 %v5875_v40, %v5874_v58  ;;  %v5877_v19 = vpop.f32.mrb[118].mxu0 }
 0x1f5   : > { %v5988_v23 = vadd.f32 %v5987_v30, %v5986_v35  ;;  %v5989_v43 = vpop.f32.mrb[118].mxu1  ;;  %v5878_v17 = vpop.f32.mrb[119].mxu0 }
 0x1f6   : > { %v5990_v52 = vpop.f32.mrb[119].mxu1  ;;  %v1753_v2 = vadd.f32 %v5876_v22, %v7852_v29  ;;  %v5879_v16 = vadd.f32 %v5878_v17, %v5877_v19 }
 0x1f7   : > { %v5991_v5 = vadd.f32 %v5990_v52, %v5989_v43 }
 0x1f8   : > { %v1756_v8 = vadd.f32 %v5879_v16, %v7854_v48  ;;  %v8132_v30 = vadd.f32 %v5988_v23, %v1753_v2  ;;  %v2314_v48 = vld [vmem:[#allocation2 + $0xcc] sm:$0x1]  ;;  %v2311_v23 = vld [vmem:[#allocation2 + $0xbc] sm:$0x1] }
 0x1f9   : > { %v2315_v58 = vsel %vm7957_vm9, 0, %v2314_v48  ;;  %v2312_v40 = vsel %vm7957_vm9, 0, %v2311_v23 }
 0x1fa   : > { %v5880_v29 = vpop.f32.mrb[120].mxu0  ;;  %v8139_v52 = vadd.f32 %v5991_v5, %v1756_v8  ;;  %2316 = vst [vmem:[#allocation2 + $0xcc] sm:$0x1] %v2315_v58  ;;  %2313 = vst [vmem:[#allocation2 + $0xbc] sm:$0x1] %v2312_v40 }
 0x1fb   : > { %v5992_v50 = vpop.f32.mrb[120].mxu1  ;;  %v5881_v28 = vpop.f32.mrb[121].mxu0 }
 0x1fc   : > { %v5993_v62 = vpop.f32.mrb[121].mxu1  ;;  %v5882_v15 = vadd.f32 %v5881_v28, %v5880_v29  ;;  %v5883_v46 = vpop.f32.mrb[122].mxu0 }
 0x1fd   : > { %v5994_v12 = vadd.f32 %v5993_v62, %v5992_v50  ;;  %v5995_v35 = vpop.f32.mrb[122].mxu1  ;;  %v5884_v47 = vpop.f32.mrb[123].mxu0  ;;  %v2263_v50 = vld [vmem:[#allocation2 + $0xd0] sm:$0x8] }
 0x1fe   : > { %v5996_v43 = vpop.f32.mrb[123].mxu1  ;;  %v1761_v22 = vadd.f32 %v5882_v15, %v7856_v38  ;;  %v5885_v19 = vadd.f32 %v5884_v47, %v5883_v46  ;;  %v2264_v8 = vsel %vm7882_vm4, 0, %v2263_v50  ;;  %v2320_v46 = vld [vmem:[#allocation2 + $0xec] sm:$0x1]  ;;  %v2317_v47 = vld [vmem:[#allocation2 + $0xdc] sm:$0x1] }
 0x1ff   : > { %v5997_v41 = vadd.f32 %v5996_v43, %v5995_v35  ;;  %2265 = vst [vmem:[#allocation2 + $0xd0] sm:$0x8] %v2264_v8  ;;  %v2321_v40 = vsel %vm7957_vm9, 0, %v2320_v46  ;;  %v2500_v46 = vld [vmem:[#allocation2 + $0x1c] sm:$0x1] }
 0x200   : > { %v1764_v17 = vadd.f32 %v5885_v19, %v7858_v0  ;;  %v8147_v16 = vadd.f32 %v5994_v12, %v1761_v22  ;;  %v2266_v0 = vld [vmem:[#allocation2 + $0xe0] sm:$0x8]  ;;  %v2318_v22 = vsel %vm7957_vm9, 0, %v2317_v47  ;;  %2322 = vst [vmem:[#allocation2 + $0xec] sm:$0x1] %v2321_v40 }
 0x201   : > { %v2267_v29 = vsel %vm7882_vm4, 0, %v2266_v0  ;;  %2319 = vst [vmem:[#allocation2 + $0xdc] sm:$0x1] %v2318_v22  ;;  %v2505_v40 = vld [vmem:[#allocation2 + $0x30] sm:$0xf] }
 0x202   : > { %v5886_v38 = vpop.f32.mrb[124].mxu0  ;;  %v8154_v18 = vadd.f32 %v5997_v41, %v1764_v17  ;;  %2268 = vst [vmem:[#allocation2 + $0xe0] sm:$0x8] %v2267_v29  ;;  %v6770_v41 = vld [vmem:[%s9716_s2 + $0x128] sm:$0xff]   ;;  %v2497_v17 = vld [vmem:[#allocation2 + $0x10] sm:$0xf] }
 0x203   : > { %v5998_v7 = vpop.f32.mrb[124].mxu1  ;;  %v5887_v13 = vpop.f32.mrb[125].mxu0  ;;  %6263 = vmatpush3.bf16.msra.mxu1 %v6770_v41  ;;  %v6774_v22 = vld [vmem:[%s9716_s2 + $0x170] sm:$0xff]  }
 0x204   : > { %v5999_v5 = vpop.f32.mrb[125].mxu1  ;;  %v5888_v43 = vadd.f32 %v5887_v13, %v5886_v38  ;;  %v5889_v12 = vpop.f32.mrb[126].mxu0  ;;  %6264 = vmatprep.subr.bf16.mxu1 %v6774_v22  ;;  %v2513_v22 = vld [vmem:[#allocation2 + $0x50] sm:$0xf] }
 0x205   : > { %v6000_v9 = vadd.f32 %v5999_v5, %v5998_v7  ;;  %v6001_v2 = vpop.f32.mrb[126].mxu1  ;;  %v5890_v28 = vpop.f32.mrb[127].mxu0 }
 0x206   : > { %v6002_v62 = vpop.f32.mrb[127].mxu1  ;;  %v1769_v48 = vadd.f32 %v5888_v43, %v7866_v34  ;;  %v5891_v15 = vadd.f32 %v5890_v28, %v5889_v12  ;;  %v8172_v34 = vld [vmem:[%s9717_s3] ss:$0 sm:$0xff]  ;;  %v2590_v43 = vshrl.u32 %v2497_v17, 16 }
 0x207   : > { %v6003_v35 = vadd.f32 %v6002_v62, %v6001_v2  ;;  %v8180_v2 = vld [vmem:[%s9718_s4] ss:$0 sm:$0xff] }
 0x208   : > { %v1772_v23 = vadd.f32 %v5891_v15, %v7868_v39  ;;  %v8160_v58 = vadd.f32 %v6000_v9, %v1769_v48  ;;  %v2272_v9 = vld [vmem:[#allocation2 + $0x100] sm:$0x8] }
 0x209   : > { %v2273_v12 = vsel %vm7882_vm4, 0, %v2272_v9  ;;  %v2501_v28 = vld [vmem:[#allocation2 + $0x20] sm:$0xf]  ;;  %v8204_v9 = vrot.slane %v2590_v43, 11 }
 0x20a   : > { %v6518_v39 = vpop.f32.mrb[128].mxu0  ;;  %v8174_v19 = vadd.f32 %v6003_v35, %v1772_v23  ;;  %2274 = vst [vmem:[#allocation2 + $0x100] sm:$0x8] %v2273_v12  ;;  %v2323_v23 = vld [vmem:[#allocation2 + $0xfc] sm:$0x1] }
 0x20b   : > { %v1979_v7 = vadd.f32 %v6518_v39, %v7920_v27  ;;  %v1970_v5 = vpop.f32.mrb[129].mxu0  ;;  %v2270_v27 = vsel %vm7882_vm4, 0, %v2269_v21  ;;  %v2324_v39 = vsel %vm7957_vm9, 0, %v2323_v23 }
 0x20c   : > { %v1971_v50 = vadd.f32 %v1970_v5, %v7890_v11  ;;  %v6519_v62 = vpop.f32.mrb[130].mxu0  ;;  %2271 = vst [vmem:[#allocation2 + $0xf0] sm:$0x8] %v2270_v27  ;;  %2325 = vst [vmem:[#allocation2 + $0xfc] sm:$0x1] %v2324_v39  ;;  %v2946_v27 = vshll.u32 %v2500_v46, 16 }
 0x20d   : > { %v2105_v8 = vmul.f32 %v8172_v34, %v1979_v7  ;;  %v1982_v38 = vadd.f32 %v6519_v62, %v7934_v53  ;;  %v1973_v35 = vpop.f32.mrb[131].mxu0  ;;  %v2326_v53 = vld [vmem:[#allocation2 + $0x10c] sm:$0x1] }
 0x20e   : > { %v2103_v13 = vmul.f32 %v8172_v34, %v1971_v50  ;;  %v1974_v0 = vadd.f32 %v1973_v35, %v7898_v4  ;;  %v2327_v4 = vsel %vm7957_vm9, 0, %v2326_v53  ;;  %v2612_v50 = vshrl.u32 %v2501_v28, 16  ;;  %v2504_v62 = vld [vmem:[#allocation2 + $0x2c] sm:$0x1] }
 0x20f   : > { %v2143_v11 = vadd.f32 %v8180_v2, %v2105_v8  ;;  %v2106_v29 = vmul.f32 %v8172_v34, %v1982_v38  ;;  %2328 = vst [vmem:[#allocation2 + $0x10c] sm:$0x1] %v2327_v4  ;;  %v2634_v53 = vshrl.u32 %v2505_v40, 16  ;;  %v2960_v23 = vshll.u32 %v2504_v62, 16  ;;  %v2508_v4 = vld [vmem:[#allocation2 + $0x3c] sm:$0x1] }
 0x210   : > { %v2141_v48 = vadd.f32 %v8180_v2, %v2103_v13  ;;  %v2104_v15 = vmul.f32 %v8172_v34, %v1974_v0  ;;  %v2509_v13 = vld [vmem:[#allocation2 + $0x40] sm:$0xf]  ;;  %v8214_v39 = vrot.slane %v2612_v50, 11 }
 0x211   : > { %v2175_v41 = vmax.f32 %v2143_v11, 0.0  ;;  %v2144_v47 = vadd.f32 %v8180_v2, %v2106_v29  ;;  %v8220_v62 = vrot.slane %v2634_v53, 11 }
 0x212   : > { %v2173_v7 = vmax.f32 %v2141_v48, 0.0  ;;  %v2142_v5 = vadd.f32 %v8180_v2, %v2104_v15  ;;  %v6522_v17 = vpop.f32.mrb[132].mxu0 }
 0x213   : > { %v5525_v21 = vpack.c.bf16 %v2175_v41, %v2175_v41  ;;  %v2176_v8 = vmax.f32 %v2144_v47, 0.0  ;;  %v1995_v38 = vadd.f32 %v6522_v17, %v7985_v6  ;;  %v1986_v35 = vpop.f32.mrb[133].mxu0  ;;  %v2656_v47 = vshrl.u32 %v2509_v13, 16 }
 0x214   : > { %v5523_v0 = vpack.c.bf16 %v2173_v7, %v2173_v7  ;;  %v2174_v12 = vmax.f32 %v2142_v5, 0.0  ;;  %v1987_v11 = vadd.f32 %v1986_v35, %v7964_v25  ;;  %v6523_v29 = vpop.f32.mrb[134].mxu0  ;;  %v8216_v7 = vrot.slane %v2946_v27, 5 }
 0x215   : > { %2463 = vst [vmem:[#allocation2 + $0x24] sm:$0xf] %v5525_v21  ;;  %v5526_v43 = vpack.c.bf16 %v2176_v8, %v2176_v8  ;;  %v2109_v28 = vmul.f32 %v8172_v34, %v1995_v38  ;;  %v1998_v48 = vadd.f32 %v6523_v29, %v8000_v60  ;;  %v1989_v15 = vpop.f32.mrb[135].mxu0  ;;  %v2512_v60 = vld [vmem:[#allocation2 + $0x4c] sm:$0x1]  ;;  %v6776_v8 = vld [vmem:[%s9716_s2 + $0x130] sm:$0xff]  }
 0x216   : > { %2461 = vst [vmem:[#allocation2 + $0x14] sm:$0xf] %v5523_v0  ;;  %v5524_v6 = vpack.c.bf16 %v2174_v12, %v2174_v12  ;;  %v2107_v46 = vmul.f32 %v8172_v34, %v1987_v11  ;;  %v1990_v41 = vadd.f32 %v1989_v15, %v7972_v1  ;;  %v2974_v1 = vshll.u32 %v2508_v4, 16  ;;  %v2517_v21 = vld [vmem:[#allocation2 + $0x60] sm:$0xf]  ;;  %6265 = vmatpush3.bf16.msra.mxu1 %v6776_v8 }
 0x217   : > { %2464 = vst [vmem:[#allocation2 + $0x28] sm:$0xf] %v5526_v43  ;;  %v2147_v25 = vadd.f32 %v8180_v2, %v2109_v28  ;;  %v2110_v40 = vmul.f32 %v8172_v34, %v1998_v48  ;;  %v8226_v35 = vrot.slane %v2960_v23, 5  ;;  %v2678_v27 = vshrl.u32 %v2513_v22, 16 }
 0x218   : > { %2462 = vst [vmem:[#allocation2 + $0x18] sm:$0xf] %v5524_v6  ;;  %v2145_v5 = vadd.f32 %v8180_v2, %v2107_v46  ;;  %v2108_v17 = vmul.f32 %v8172_v34, %v1990_v41  ;;  %v8229_v11 = vrot.slane %v2656_v47, 11  ;;  %v2988_v29 = vshll.u32 %v2512_v60, 16 }
 0x219   : > { %v2179_v38 = vmax.f32 %v2147_v25, 0.0  ;;  %v2148_v50 = vadd.f32 %v8180_v2, %v2110_v40  ;;  %v2700_v15 = vshrl.u32 %v2517_v21, 16  ;;  %v8233_v41 = vrot.slane %v2974_v1, 5 }
 0x21a   : > { %v2177_v13 = vmax.f32 %v2145_v5, 0.0  ;;  %v2146_v0 = vadd.f32 %v8180_v2, %v2108_v17  ;;  %v6526_v12 = vpop.f32.mrb[136].mxu0  ;;  %v8239_v5 = vrot.slane %v2678_v27, 11  ;;  %v8252_v27 = vrot.slane %v2988_v29, 5 }
 0x21b   : > { %v5529_v53 = vpack.c.bf16 %v2179_v38, %v2179_v38  ;;  %v2180_v43 = vmax.f32 %v2148_v50, 0.0  ;;  %v2011_v28 = vadd.f32 %v6526_v12, %v8028_v36  ;;  %v2002_v48 = vpop.f32.mrb[137].mxu0  ;;  %v8241_v36 = vld [vmem:[#allocation2 + $0x5c] sm:$0x1] }
 0x21c   : > { %v5527_v4 = vpack.c.bf16 %v2177_v13, %v2177_v13  ;;  %v2178_v6 = vmax.f32 %v2146_v0, 0.0  ;;  %v2003_v23 = vadd.f32 %v2002_v48, %v8007_v26  ;;  %v6527_v46 = vpop.f32.mrb[138].mxu0  ;;  %v8246_v8 = vld [vmem:[#allocation2 + $0x24] sm:$0xf]  ;;  %v8254_v13 = vrot.slane %v2700_v15, 11  ;;  %v6780_v15 = vld [vmem:[%s9716_s2 + $0x178] sm:$0xff]  }
 0x21d   : > { %2467 = vst [vmem:[#allocation2 + $0x44] sm:$0xf] %v5529_v53  ;;  %v5530_v22 = vpack.c.bf16 %v2180_v43, %v2180_v43  ;;  %v2113_v47 = vmul.f32 %v8172_v34, %v2011_v28  ;;  %v2014_v25 = vadd.f32 %v6527_v46, %v8030_v59  ;;  %v2005_v40 = vpop.f32.mrb[139].mxu0  ;;  %v8237_v60 = vld [vmem:[#allocation2 + $0x14] sm:$0xf]  ;;  %v2617_v29 = vshrl.u32 %v8246_v8, 16  ;;  %6266 = vmatprep.subr.bf16.mxu1 %v6780_v15 }
 0x21e   : > { %2465 = vst [vmem:[#allocation2 + $0x34] sm:$0xf] %v5527_v4  ;;  %v5528_v17 = vpack.c.bf16 %v2178_v6, %v2178_v6  ;;  %v2111_v26 = vmul.f32 %v8172_v34, %v2003_v23  ;;  %v2006_v1 = vadd.f32 %v2005_v40, %v8009_v49  ;;  %v2595_v21 = vshrl.u32 %v8237_v60, 16  ;;  %v8284_v15 = vld [vmem:[#allocation2 + $0x28] sm:$0xf] }
 0x21f   : > { %2468 = vst [vmem:[#allocation2 + $0x48] sm:$0xf] %v5530_v22  ;;  %v2151_v59 = vadd.f32 %v8180_v2, %v2113_v47  ;;  %v2114_v38 = vmul.f32 %v8172_v34, %v2014_v25  ;;  %v8250_v50 = vld [vmem:[#allocation2 + $0x18] sm:$0xf]  ;;  %v2598_v46 = vshll.u32 %v8237_v60, 16 }
 0x220   : > { %2466 = vst [vmem:[#allocation2 + $0x38] sm:$0xf] %v5528_v17  ;;  %v2149_v0 = vadd.f32 %v8180_v2, %v2111_v26  ;;  %v2112_v49 = vmul.f32 %v8172_v34, %v2006_v1  ;;  %v9722_v12 = vshrl.u32 %v8250_v50, 16  ;;  %v2597_v48 = vrot.slane %v2595_v21, 7  ;;  %v8273_v1 = vld [vmem:[#allocation2 + $0x70] sm:$0xf] }
 0x221   : > { %v2183_v43 = vmax.f32 %v2151_v59, 0.0  ;;  %v2152_v28 = vadd.f32 %v8180_v2, %v2114_v38  ;;  %v2607_v22 = vshll.u32 %v8250_v50, 16 }
 0x222   : > { %v2181_v4 = vmax.f32 %v2149_v0, 0.0  ;;  %v2150_v6 = vadd.f32 %v8180_v2, %v2112_v49  ;;  %v6530_v23 = vpop.f32.mrb[140].mxu0  ;;  %v2606_v17 = vrot.slane %v9722_v12, 7  ;;  %v8277_v0 = vcombine.low %v8237_v60, %v8250_v50 }
 0x223   : > { %v5533_v47 = vpack.c.bf16 %v2183_v43, %v2183_v43  ;;  %v2184_v25 = vmax.f32 %v2152_v28, 0.0  ;;  %v2027_v40 = vadd.f32 %v6530_v23, %v8050_v20  ;;  %v2018_v26 = vpop.f32.mrb[141].mxu0  ;;  %v2600_v12 = vor.u32 %v2598_v46, %v2597_v48 }
 0x224   : > { %v5531_v59 = vpack.c.bf16 %v2181_v4, %v2181_v4  ;;  %v2182_v38 = vmax.f32 %v2150_v6, 0.0  ;;  %v2019_v49 = vadd.f32 %v2018_v26, %v8042_v54  ;;  %v6531_v53 = vpop.f32.mrb[142].mxu0  ;;  %4086 = vmatprep.mubr.bf16.mxu1 %v8277_v0  ;;  %v9783_v60 = vshrl.u32 %v8250_v50, 16  ;;  %v6783_v50 = vld [vmem:[%s9716_s2 + $0x1e0] sm:$0xff]  }
 0x225   : > { %2471 = vst [vmem:[#allocation2 + $0x64] sm:$0xf] %v5533_v47  ;;  %v5534_v43 = vpack.c.bf16 %v2184_v25, %v2184_v25  ;;  %v2117_v20 = vmul.f32 %v8172_v34, %v2027_v40  ;;  %v2030_v28 = vadd.f32 %v6531_v53, %v8054_v57  ;;  %v2021_v23 = vpop.f32.mrb[143].mxu0  ;;  %v2602_v53 = vrot.slane %v2597_v48, 4 }
 0x226   : > { %2469 = vst [vmem:[#allocation2 + $0x54] sm:$0xf] %v5531_v59  ;;  %v5532_v4 = vpack.c.bf16 %v2182_v38, %v2182_v38  ;;  %v2115_v6 = vmul.f32 %v8172_v34, %v2019_v49  ;;  %v2022_v54 = vadd.f32 %v2021_v23, %v8044_v45  ;;  %v2609_v40 = vor.u32 %v2607_v22, %v2606_v17  ;;  %v6782_v49 = vld [vmem:[%s9716_s2 + $0x138] sm:$0xff]  }
 0x227   : > { %2472 = vst [vmem:[#allocation2 + $0x68] sm:$0xf] %v5534_v43  ;;  %v2155_v25 = vadd.f32 %v8180_v2, %v2117_v20  ;;  %v2118_v57 = vmul.f32 %v8172_v34, %v2030_v28  ;;  %v2619_v38 = vrot.slane %v2617_v29, 7  ;;  %v9725_v45 = vshrl.u32 %v8284_v15, 16  ;;  %6267 = vmatpush3.bf16.msra.mxu1 %v6782_v49  ;;  %v6766_v49 = vld [vmem:[%s9716_s2 + $0x1c8] sm:$0xff]  }
 0x228   : > { %2470 = vst [vmem:[#allocation2 + $0x58] sm:$0xf] %v5532_v4  ;;  %v2153_v26 = vadd.f32 %v8180_v2, %v2115_v6  ;;  %v2116_v59 = vmul.f32 %v8172_v34, %v2022_v54  ;;  %v2601_v17 = vsel %vm7937_vm7, %v8204_v9, %v2600_v12  ;;  %v2610_v20 = vsel %vm7937_vm7, %v2602_v53, %v2609_v40 }
 0x229   : > { %v2187_v43 = vmax.f32 %v2155_v25, 0.0  ;;  %v2156_v48 = vadd.f32 %v8180_v2, %v2118_v57  ;;  %v5391_v4 = vcombine.low %v2601_v17, %v2610_v20  ;;  %v2628_v54 = vrot.slane %v9725_v45, 7  ;;  %v6761_v25 = vld [vmem:[%s9716_s2 + $0x180] sm:$0xff]  }
 0x22a   : > { %v2185_v28 = vmax.f32 %v2153_v26, 0.0  ;;  %v2154_v23 = vadd.f32 %v8180_v2, %v2116_v59  ;;  %v6534_v6 = vpop.f32.mrb[144].mxu0  ;;  %v8316_v9 = vrot.slane %v2595_v21, 4  ;;  %v2620_v17 = vshll.u32 %v8246_v8, 16 }
 0x22b   : > { %v5537_v57 = vpack.c.bf16 %v2187_v43, %v2187_v43  ;;  %v2188_v12 = vmax.f32 %v2156_v48, 0.0  ;;  %v2043_v53 = vadd.f32 %v6534_v6, %v8074_v24  ;;  %v2034_v40 = vpop.f32.mrb[145].mxu0  ;;  %4087 = vmatmul.mubr.bf16.gmra.mrb[132].mxu1 %v5391_v4  ;;  %4239 = vmatprep.mubr.bf16.mxu0 %v5391_v4  ;;  %v9723_v20 = vshll.u32 %v8284_v15, 16 }
 0x22c   : > { %v5535_v26 = vpack.c.bf16 %v2185_v28, %v2185_v28  ;;  %v2186_v59 = vmax.f32 %v2154_v23, 0.0  ;;  %v6535_v47 = vpop.f32.mrb[146].mxu0  ;;  %v8327_v24 = vcombine.low %v8246_v8, %v8284_v15  ;;  %4240 = vmatmul.mubr.bf16.vlgmr.msra.gmra.mrb[160].mxu0 %v8025_v61  ;;  %v2035_v48 = vadd.f32 %v2034_v40, %v8063_v3  ;;  %v8331_v23 = vld [vmem:[#allocation2 + $0x34] sm:$0xf] }
 0x22d   : > { %2475 = vst [vmem:[#allocation2 + $0x84] sm:$0xf] %v5537_v57  ;;  %v5538_v21 = vpack.c.bf16 %v2188_v12, %v2188_v12  ;;  %v2121_v43 = vmul.f32 %v8172_v34, %v2043_v53  ;;  %v2037_v28 = vpop.f32.mrb[147].mxu0  ;;  %v2622_v6 = vor.u32 %v2620_v17, %v2619_v38  ;;  %v2624_v57 = vrot.slane %v2619_v38, 4  ;;  %6365 = vmatpush3.bf16.msra.mxu0 %v6761_v25  ;;  %v6767_v53 = vld [vmem:[%s9716_s2 + $0x188] sm:$0xff]  }
 0x22e   : > { %2473 = vst [vmem:[#allocation2 + $0x74] sm:$0xf] %v5535_v26  ;;  %v5536_v4 = vpack.c.bf16 %v2186_v59, %v2186_v59  ;;  %v2631_v12 = vor.u32 %v9723_v20, %v2628_v54  ;;  %4094 = vmatprep.mubr.bf16.mxu1 %v8327_v24  ;;  %v2119_v3 = vmul.f32 %v8172_v34, %v2035_v48  ;;  %v8345_v38 = vld [vmem:[#allocation2 + $0x38] sm:$0xf]  ;;  %v6772_v54 = vld [vmem:[%s9716_s2 + $0x1d0] sm:$0xff]   ;;  %v2937_v25 = vrot.slane %v2598_v46, 5 }
 0x22f   : > { %2476 = vst [vmem:[#allocation2 + $0x88] sm:$0xf] %v5538_v21  ;;  %v2159_v61 = vadd.f32 %v8180_v2, %v2121_v43  ;;  %v2046_v40 = vadd.f32 %v6535_v47, %v8080_v55  ;;  %v2038_v26 = vadd.f32 %v2037_v28, %v8065_v31  ;;  %v2623_v59 = vsel %vm7937_vm7, %v8214_v39, %v2622_v6 }
 0x230   : > { %2474 = vst [vmem:[#allocation2 + $0x78] sm:$0xf] %v5536_v4  ;;  %v2632_v21 = vsel %vm7937_vm7, %v2624_v57, %v2631_v12  ;;  %v9724_v55 = vshrl.u32 %v8331_v23, 16  ;;  %6366 = vmatprep.subr.bf16.mxu0 %v6766_v49  ;;  %v2157_v47 = vadd.f32 %v8180_v2, %v2119_v3  ;;  %v2942_v46 = vrot.slane %v9783_v60, 4  ;;  %v6773_v49 = vld [vmem:[%s9716_s2 + $0x190] sm:$0xff]   ;;  %v6787_v57 = vld [vmem:[%s9716_s2 + $0x200] sm:$0xff]  }
 0x231   : > { %v2191_v31 = vmax.f32 %v2159_v61, 0.0  ;;  %v8359_v43 = vcombine.low %v2623_v59, %v2632_v21  ;;  %v2122_v48 = vmul.f32 %v8172_v34, %v2046_v40  ;;  %v2120_v28 = vmul.f32 %v8172_v34, %v2038_v26  ;;  %6367 = vmatpush3.bf16.msra.mxu0 %v6767_v53  ;;  %v6778_v53 = vld [vmem:[%s9716_s2 + $0x1d8] sm:$0xff]   ;;  %6548 = vmatprep.subr.bf16.mxu1 %v6787_v57 }
 0x232   : > { %v6538_v4 = vpop.f32.mrb[148].mxu0  ;;  %v2641_v39 = vrot.slane %v9724_v55, 7  ;;  %v2648_v6 = vshrl.u32 %v8345_v38, 16  ;;  %v2189_v61 = vmax.f32 %v2157_v47, 0.0  ;;  %6368 = vmatprep.subr.bf16.mxu0 %v6772_v54  ;;  %v8382_v59 = vrot.slane %v2617_v29, 4  ;;  %v6779_v57 = vld [vmem:[%s9716_s2 + $0x198] sm:$0xff]  }
 0x233   : > { %v5541_v12 = vpack.c.bf16 %v2191_v31, %v2191_v31  ;;  %4247 = vmatprep.mubr.bf16.mxu0 %v8359_v43  ;;  %v2160_v3 = vadd.f32 %v8180_v2, %v2122_v48  ;;  %v2059_v40 = vadd.f32 %v6538_v4, %v8101_v51  ;;  %v2050_v26 = vpop.f32.mrb[149].mxu0  ;;  %v2158_v21 = vadd.f32 %v8180_v2, %v2120_v28 }
 0x234   : > { %4095 = vmatmul.mubr.bf16.gmra.mrb[136].mxu1 %v8359_v43  ;;  %v2642_v31 = vshll.u32 %v8331_v23, 16  ;;  %v2651_v47 = vshll.u32 %v8345_v38, 16  ;;  %v6539_v48 = vpop.f32.mrb[150].mxu0  ;;  %v5539_v51 = vpack.c.bf16 %v2189_v61, %v2189_v61  ;;  %v2650_v4 = vrot.slane %v2648_v6, 7 }
 0x235   : > { %2479 = vst [vmem:[#allocation2 + $0xa4] sm:$0xf] %v5541_v12  ;;  %v2192_v54 = vmax.f32 %v2160_v3, 0.0  ;;  %v2125_v60 = vmul.f32 %v8172_v34, %v2059_v40  ;;  %v2053_v29 = vpop.f32.mrb[151].mxu0  ;;  %v2190_v20 = vmax.f32 %v2158_v21, 0.0  ;;  %v8393_v28 = vcombine.low %v8331_v23, %v8345_v38  ;;  %6369 = vmatpush3.bf16.msra.mxu0 %v6773_v49 }
 0x236   : > { %v2938_v55 = vor.u32 %v2937_v25, %v8316_v9  ;;  %v2940_v45 = vrot.slane %v2607_v22, 5  ;;  %2477 = vst [vmem:[#allocation2 + $0x94] sm:$0xf] %v5539_v51  ;;  %v2051_v3 = vadd.f32 %v2050_v26, %v8086_v63  ;;  %v2644_v40 = vor.u32 %v2642_v31, %v2641_v39  ;;  %6370 = vmatprep.subr.bf16.mxu0 %v6778_v53 }
 0x237   : > { %v5542_v12 = vpack.c.bf16 %v2192_v54, %v2192_v54  ;;  %v2163_v61 = vadd.f32 %v8180_v2, %v2125_v60  ;;  %v5540_v22 = vpack.c.bf16 %v2190_v20, %v2190_v20  ;;  %4102 = vmatprep.mubr.bf16.mxu1 %v8393_v28  ;;  %v2646_v49 = vrot.slane %v2641_v39, 4  ;;  %v8419_v54 = vld [vmem:[#allocation2 + $0x44] sm:$0xf] }
 0x238   : > { %v2939_v9 = vrot.slane %v2938_v55, 4  ;;  %v2943_v25 = vor.u32 %v2942_v46, %v2940_v45  ;;  %v2123_v51 = vmul.f32 %v8172_v34, %v2051_v3  ;;  %v2645_v63 = vsel %vm7937_vm7, %v8220_v62, %v2644_v40  ;;  %v6784_v62 = vld [vmem:[%s9716_s2 + $0x1a0] sm:$0xff]  }
 0x239   : > { %2480 = vst [vmem:[#allocation2 + $0xa8] sm:$0xf] %v5542_v12  ;;  %v2195_v21 = vmax.f32 %v2163_v61, 0.0  ;;  %v2653_v26 = vor.u32 %v2651_v47, %v2650_v4  ;;  %2478 = vst [vmem:[#allocation2 + $0x98] sm:$0xf] %v5540_v22  ;;  %v2062_v55 = vadd.f32 %v6539_v48, %v8106_v37  ;;  %v2054_v46 = vadd.f32 %v2053_v29, %v8093_v56  ;;  %v6785_v56 = vld [vmem:[%s9716_s2 + $0x1e8] sm:$0xff]  }
 0x23a   : > { %v2941_v20 = vsel %vm8013_vm12, %v2939_v9, %v2940_v45  ;;  %v2944_v53 = vrot.slane %v2943_v25, 4  ;;  %v6542_v39 = vpop.f32.mrb[152].mxu0  ;;  %6371 = vmatpush3.bf16.msra.mxu0 %v6779_v57  ;;  %v2161_v4 = vadd.f32 %v8180_v2, %v2123_v51  ;;  %v8428_v61 = vld [vmem:[#allocation2 + $0x48] sm:$0xf]  ;;  %v2661_v9 = vshrl.u32 %v8419_v54, 16 }
 0x23b   : > { %v5545_v60 = vpack.c.bf16 %v2195_v21, %v2195_v21  ;;  %v2654_v12 = vsel %vm7937_vm7, %v2646_v49, %v2653_v26  ;;  %v2075_v45 = vadd.f32 %v6542_v39, %v8132_v30  ;;  %v2066_v37 = vpop.f32.mrb[153].mxu0  ;;  %6372 = vmatprep.subr.bf16.mxu0 %v6783_v50  ;;  %v2126_v57 = vmul.f32 %v8172_v34, %v2062_v55  ;;  %v6788_v55 = vld [vmem:[%s9716_s2 + $0x1f0] sm:$0xff]  }
 0x23c   : > { %v2949_v48 = vsel %vm8013_vm12, %v2944_v53, %v8216_v7  ;;  %v8436_v29 = vcombine.low %v2645_v63, %v2654_v12  ;;  %v2124_v3 = vmul.f32 %v8172_v34, %v2054_v46  ;;  %v6543_v40 = vpop.f32.mrb[154].mxu0  ;;  %v2193_v22 = vmax.f32 %v2161_v4, 0.0  ;;  %v6786_v63 = vld [vmem:[%s9716_s2 + $0x1a8] sm:$0xff]  }
 0x23d   : > { %2483 = vst [vmem:[#allocation2 + $0xc4] sm:$0xf] %v5545_v60  ;;  %v8440_v30 = vcombine.low %v2941_v20, %v2949_v48  ;;  %v2129_v50 = vmul.f32 %v8172_v34, %v2075_v45  ;;  %v2069_v25 = vpop.f32.mrb[155].mxu0  ;;  %v2951_v49 = vrot.slane %v2620_v17, 5  ;;  %v2164_v7 = vadd.f32 %v8180_v2, %v2126_v57 }
 0x23e   : > { %v2162_v21 = vadd.f32 %v8180_v2, %v2124_v3  ;;  %4103 = vmatmul.mubr.bf16.gmra.mrb[140].mxu1 %v8436_v29  ;;  %v2670_v51 = vshrl.u32 %v8428_v61, 16  ;;  %6373 = vmatpush3.bf16.msra.mxu0 %v6784_v62  ;;  %v9784_v26 = vshrl.u32 %v8284_v15, 16  ;;  %v5543_v8 = vpack.c.bf16 %v2193_v22, %v2193_v22 }
 0x23f   : > { %4248 = vmatmul.mubr.bf16.gmra.mrb[164].mxu0 %v8440_v30  ;;  %v2167_v17 = vadd.f32 %v8180_v2, %v2129_v50  ;;  %v2663_v53 = vrot.slane %v2661_v9, 7  ;;  %6374 = vmatprep.subr.bf16.mxu0 %v6785_v56  ;;  %v9785_v46 = vshrl.u32 %v8331_v23, 16  ;;  %v2196_v62 = vmax.f32 %v2164_v7, 0.0 }
 0x240   : > { %v2956_v20 = vrot.slane %v9784_v26, 4  ;;  %4255 = vmatprep.mubr.bf16.mxu0 %v8436_v29  ;;  %v2194_v60 = vmax.f32 %v2162_v21, 0.0  ;;  %v2672_v4 = vrot.slane %v2670_v51, 7  ;;  %2481 = vst [vmem:[#allocation2 + $0xb4] sm:$0xf] %v5543_v8  ;;  %v2664_v45 = vshll.u32 %v8419_v54, 16 }
 0x241   : > { %v8464_v39 = vrot.slane %v9785_v46, 4  ;;  %v2199_v12 = vmax.f32 %v2167_v17, 0.0  ;;  %v2673_v56 = vshll.u32 %v8428_v61, 16  ;;  %v8473_v48 = vcombine.low %v8419_v54, %v8428_v61  ;;  %v6789_v26 = vld [vmem:[%s9716_s2 + $0x1b0] sm:$0xff]  }
 0x242   : > { %v5546_v57 = vpack.c.bf16 %v2196_v62, %v2196_v62  ;;  %v5544_v3 = vpack.c.bf16 %v2194_v60, %v2194_v60  ;;  %v2952_v22 = vor.u32 %v2951_v49, %v8382_v59  ;;  %v9786_v50 = vshll.u32 %v8284_v15, 16  ;;  %v6546_v21 = vpop.f32.mrb[156].mxu0  ;;  %6375 = vmatpush3.bf16.msra.mxu0 %v6786_v63  ;;  %v6790_v15 = vld [vmem:[%s9716_s2 + $0x1f8] sm:$0xff]  }
 0x243   : > { %v5549_v8 = vpack.c.bf16 %v2199_v12, %v2199_v12  ;;  %4110 = vmatprep.mubr.bf16.mxu1 %v8473_v48  ;;  %v2067_v17 = vadd.f32 %v2066_v37, %v8114_v42  ;;  %v2666_v46 = vor.u32 %v2664_v45, %v2663_v53  ;;  %v2668_v62 = vrot.slane %v2663_v53, 4  ;;  %v2082_v60 = vpop.f32.mrb[157].mxu0  ;;  %6376 = vmatprep.subr.bf16.mxu0 %v6788_v55 }
 0x244   : > { %v2954_v7 = vrot.slane %v9786_v50, 5  ;;  %2484 = vst [vmem:[#allocation2 + $0xc8] sm:$0xf] %v5546_v57  ;;  %2482 = vst [vmem:[#allocation2 + $0xb8] sm:$0xf] %v5544_v3  ;;  %v2953_v59 = vrot.slane %v2952_v22, 4  ;;  %v2675_v63 = vor.u32 %v2673_v56, %v2672_v4  ;;  %v2078_v12 = vadd.f32 %v6543_v40, %v8139_v52 }
 0x245   : > { %v6547_v42 = vpop.f32.mrb[158].mxu0  ;;  %v2965_v37 = vrot.slane %v2642_v31, 5  ;;  %2487 = vst [vmem:[#allocation2 + $0xe4] sm:$0xf] %v5549_v8  ;;  %v2127_v53 = vmul.f32 %v8172_v34, %v2067_v17  ;;  %v2070_v55 = vadd.f32 %v2069_v25, %v8124_v32  ;;  %v2091_v50 = vadd.f32 %v6546_v21, %v8160_v58  ;;  %v8496_v57 = vld [vmem:[#allocation2 + $0x54] sm:$0xf] }
 0x246   : > { %v2957_v49 = vor.u32 %v2956_v20, %v2954_v7  ;;  %v2085_v3 = vpop.f32.mrb[159].mxu0  ;;  %v2667_v4 = vsel %vm7937_vm7, %v8229_v11, %v2666_v46  ;;  %v2676_v52 = vsel %vm7937_vm7, %v2668_v62, %v2675_v63  ;;  %v2130_v23 = vmul.f32 %v8172_v34, %v2078_v12  ;;  %6377 = vmatpush3.bf16.msra.mxu0 %v6789_v26  ;;  %v6791_v32 = vld [vmem:[%s9716_s2 + $0x1b8] sm:$0xff]  }
 0x247   : > { %v2165_v58 = vadd.f32 %v8180_v2, %v2127_v53  ;;  %v8508_v31 = vcombine.low %v2667_v4, %v2676_v52  ;;  %v2128_v40 = vmul.f32 %v8172_v34, %v2070_v55  ;;  %v2133_v25 = vmul.f32 %v8172_v34, %v2091_v50  ;;  %v8512_v22 = vld [vmem:[#allocation2 + $0x58] sm:$0xf]  ;;  %6378 = vmatprep.subr.bf16.mxu0 %v6790_v15 }
 0x248   : > { %v2958_v20 = vrot.slane %v2957_v49, 4  ;;  %v2955_v11 = vsel %vm8013_vm12, %v2953_v59, %v2954_v7  ;;  %v2168_v26 = vadd.f32 %v8180_v2, %v2130_v23  ;;  %v2683_v8 = vshrl.u32 %v8496_v57, 16 }
 0x249   : > { %v2197_v46 = vmax.f32 %v2165_v58, 0.0  ;;  %v2166_v62 = vadd.f32 %v8180_v2, %v2128_v40  ;;  %4111 = vmatmul.mubr.bf16.gmra.mrb[144].mxu1 %v8508_v31  ;;  %v2171_v15 = vadd.f32 %v8180_v2, %v2133_v25  ;;  %v2970_v7 = vrot.slane %v2648_v6, 4  ;;  %v8544_v58 = vld [vmem:[#allocation2 + $0x64] sm:$0xf] }
 0x24a   : > { %v2963_v21 = vsel %vm8013_vm12, %v2958_v20, %v8226_v35  ;;  %v2200_v59 = vmax.f32 %v2168_v26, 0.0  ;;  %v2685_v49 = vrot.slane %v2683_v8, 7  ;;  %v2692_v35 = vshrl.u32 %v8512_v22, 16  ;;  %6379 = vmatpush3.bf16.msra.mxu0 %v6791_v32 }
 0x24b   : > { %v8521_v17 = vcombine.low %v2955_v11, %v2963_v21  ;;  %v8531_v63 = vrot.slane %v2661_v9, 4  ;;  %v5547_v12 = vpack.c.bf16 %v2197_v46, %v2197_v46  ;;  %v2198_v53 = vmax.f32 %v2166_v62, 0.0 }
 0x24c   : > { %v2203_v55 = vmax.f32 %v2171_v15, 0.0  ;;  %v5550_v50 = vpack.c.bf16 %v2200_v59, %v2200_v59  ;;  %v2686_v20 = vshll.u32 %v8496_v57, 16  ;;  %v2694_v6 = vrot.slane %v2692_v35, 7 }
 0x24d   : > { %4256 = vmatmul.mubr.bf16.gmra.mrb[168].mxu0 %v8521_v17  ;;  %v2695_v4 = vshll.u32 %v8512_v22, 16  ;;  %2485 = vst [vmem:[#allocation2 + $0xd4] sm:$0xf] %v5547_v12  ;;  %v5548_v52 = vpack.c.bf16 %v2198_v53, %v2198_v53  ;;  %v8541_v9 = vcombine.low %v8496_v57, %v8512_v22  ;;  %v2966_v32 = vor.u32 %v2965_v37, %v8464_v39 }
 0x24e   : > { %4263 = vmatprep.mubr.bf16.mxu0 %v8508_v31  ;;  %v5553_v23 = vpack.c.bf16 %v2203_v55, %v2203_v55  ;;  %v2979_v40 = vrot.slane %v2664_v45, 5  ;;  %2488 = vst [vmem:[#allocation2 + $0xe8] sm:$0xf] %v5550_v50  ;;  %v2968_v25 = vrot.slane %v2651_v47, 5  ;;  %v2083_v11 = vadd.f32 %v2082_v60, %v8147_v16  ;;  %v8559_v16 = vld [vmem:[#allocation2 + $0x68] sm:$0xf] }
 0x24f   : > { %v2688_v21 = vor.u32 %v2686_v20, %v2685_v49  ;;  %2486 = vst [vmem:[#allocation2 + $0xd8] sm:$0xf] %v5548_v52  ;;  %4118 = vmatprep.mubr.bf16.mxu1 %v8541_v9  ;;  %v2690_v26 = vrot.slane %v2685_v49, 4  ;;  %v2697_v39 = vor.u32 %v2695_v4, %v2694_v6  ;;  %v2094_v54 = vadd.f32 %v6547_v42, %v8174_v19  ;;  %v8591_v52 = vld [vmem:[#allocation2 + $0x74] sm:$0xf] }
 0x250   : > { %2491 = vst [vmem:[#allocation2 + $0x104] sm:$0xf] %v5553_v23  ;;  %v2086_v45 = vadd.f32 %v2085_v3, %v8154_v18  ;;  %v2967_v37 = vrot.slane %v2966_v32, 4  ;;  %v2971_v38 = vor.u32 %v2970_v7, %v2968_v25  ;;  %v2131_v47 = vmul.f32 %v8172_v34, %v2083_v11  ;;  %v8599_v11 = vld [vmem:[#allocation2 + $0x78] sm:$0xf] }
 0x251   : > { %v2705_v60 = vshrl.u32 %v8544_v58, 16  ;;  %v2689_v46 = vsel %vm7937_vm7, %v8239_v5, %v2688_v21  ;;  %v2698_v62 = vsel %vm7937_vm7, %v2690_v26, %v2697_v39  ;;  %v2134_v15 = vmul.f32 %v8172_v34, %v2094_v54 }
 0x252   : > { %v2132_v19 = vmul.f32 %v8172_v34, %v2086_v45  ;;  %v2984_v18 = vrot.slane %v2670_v51, 4  ;;  %v2972_v42 = vrot.slane %v2971_v38, 4  ;;  %v2169_v3 = vadd.f32 %v8180_v2, %v2131_v47 }
 0x253   : > { %v8572_v7 = vcombine.low %v2689_v46, %v2698_v62  ;;  %v8574_v59 = vrot.slane %v2683_v8, 4  ;;  %v2172_v49 = vadd.f32 %v8180_v2, %v2134_v15  ;;  %v2714_v12 = vshrl.u32 %v8559_v16, 16 }
 0x254   : > { %v2170_v5 = vadd.f32 %v8180_v2, %v2132_v19  ;;  %v2969_v53 = vsel %vm8013_vm12, %v2967_v37, %v2968_v25  ;;  %v2977_v34 = vsel %vm8013_vm12, %v2972_v42, %v8233_v41  ;;  %v2201_v51 = vmax.f32 %v2169_v3, 0.0  ;;  %v8627_v3 = vld [vmem:[#allocation2 + $0x84] sm:$0xf] }
 0x255   : > { %4119 = vmatmul.mubr.bf16.gmra.mrb[148].mxu1 %v8572_v7  ;;  %v2707_v8 = vrot.slane %v2705_v60, 7  ;;  %v8587_v55 = vcombine.low %v2969_v53, %v2977_v34  ;;  %v2204_v50 = vmax.f32 %v2172_v49, 0.0  ;;  %v2716_v2 = vrot.slane %v2714_v12, 7  ;;  %v2525_v34 = vld [vmem:[#allocation2 + $0x80] sm:$0xf] }
 0x256   : > { %v2202_v6 = vmax.f32 %v2170_v5, 0.0  ;;  %v5551_v23 = vpack.c.bf16 %v2201_v51, %v2201_v51  ;;  %v2708_v32 = vshll.u32 %v8544_v58, 16  ;;  %v2717_v41 = vshll.u32 %v8559_v16, 16 }
 0x257   : > { %v8597_v25 = vcombine.low %v8544_v58, %v8559_v16  ;;  %4264 = vmatmul.mubr.bf16.gmra.mrb[172].mxu0 %v8587_v55  ;;  %v5554_v21 = vpack.c.bf16 %v2204_v50, %v2204_v50  ;;  %v2980_v39 = vor.u32 %v2979_v40, %v8531_v63  ;;  %v2982_v54 = vrot.slane %v2673_v56, 5  ;;  %v2529_v16 = vld [vmem:[#allocation2 + $0x90] sm:$0xf] }
 0x258   : > { %v5552_v26 = vpack.c.bf16 %v2202_v6, %v2202_v6  ;;  %2489 = vst [vmem:[#allocation2 + $0xf4] sm:$0xf] %v5551_v23  ;;  %4271 = vmatprep.mubr.bf16.mxu0 %v8572_v7  ;;  %v2710_v45 = vor.u32 %v2708_v32, %v2707_v8  ;;  %v2712_v37 = vrot.slane %v2707_v8, 4  ;;  %v2719_v38 = vor.u32 %v2717_v41, %v2716_v2  ;;  %v8647_v2 = vld [vmem:[#allocation2 + $0x88] sm:$0xf] }
 0x259   : > { %4126 = vmatprep.mubr.bf16.mxu1 %v8597_v25  ;;  %v2727_v47 = vshrl.u32 %v8591_v52, 16  ;;  %v2993_v46 = vrot.slane %v2686_v20, 5  ;;  %2492 = vst [vmem:[#allocation2 + $0x108] sm:$0xf] %v5554_v21  ;;  %v2981_v63 = vrot.slane %v2980_v39, 4  ;;  %v2985_v61 = vor.u32 %v2984_v18, %v2982_v54 }
 0x25a   : > { %2490 = vst [vmem:[#allocation2 + $0xf8] sm:$0xf] %v5552_v26  ;;  %v2736_v56 = vshrl.u32 %v8599_v11, 16  ;;  %v2998_v40 = vrot.slane %v2692_v35, 4  ;;  %v2711_v62 = vsel %vm7937_vm7, %v8254_v13, %v2710_v45  ;;  %v2720_v15 = vsel %vm7937_vm7, %v2712_v37, %v2719_v38 }
 0x25b   : > { %v2729_v57 = vrot.slane %v2727_v47, 7  ;;  %v2986_v20 = vrot.slane %v2985_v61, 4  ;;  %v8622_v19 = vcombine.low %v2711_v62, %v2720_v15  ;;  %v2730_v18 = vshll.u32 %v8591_v52, 16 }
 0x25c   : > { %v2738_v42 = vrot.slane %v2736_v56, 7  ;;  %v2983_v35 = vsel %vm8013_vm12, %v2981_v63, %v2982_v54  ;;  %v2739_v13 = vshll.u32 %v8599_v11, 16  ;;  %v8634_v49 = vcombine.low %v8591_v52, %v8599_v11 }
 0x25d   : > { %9787 = vst [vmem:[#allocation6_spill] sm:$0xff] %v8622_v19  ;;  %v9788_v5 = vshrl.u32 %v8273_v1, 16  ;;  %v2991_v51 = vsel %vm8013_vm12, %v2986_v20, %v8252_v27  ;;  %4127 = vmatmul.mubr.bf16.gmra.mrb[152].mxu1 %v8622_v19  ;;  %v2994_v8 = vor.u32 %v2993_v46, %v8574_v59  ;;  %v2996_v50 = vrot.slane %v2695_v4, 5  ;;  %v2520_v4 = vld [vmem:[#allocation2 + $0x6c] sm:$0x1] }
 0x25e   : > { %v2732_v6 = vor.u32 %v2730_v18, %v2729_v57  ;;  %v8649_v23 = vcombine.low %v2983_v35, %v2991_v51  ;;  %4134 = vmatprep.mubr.bf16.mxu1 %v8634_v49  ;;  %v2734_v1 = vrot.slane %v2729_v57, 4  ;;  %v2741_v27 = vor.u32 %v2739_v13, %v2738_v42  ;;  %v8680_v20 = vld [vmem:[#allocation2 + $0x94] sm:$0xf]  ;;  %v8682_v42 = vld [vmem:[#allocation2 + $0x98] sm:$0xf] }
 0x25f   : > { %v5379_v53 = vrot.slane %v9788_v5, 11  ;;  %v2749_v21 = vshrl.u32 %v8627_v3, 16  ;;  %v2999_v26 = vor.u32 %v2998_v40, %v2996_v50  ;;  %v9789_v59 = vshll.u32 %v8241_v36, 16 }
 0x260   : > { %v2744_v39 = vshrl.u32 %v2525_v34, 16  ;;  %v3006_v54 = vrot.slane %v2705_v60, 4  ;;  %v3007_v45 = vrot.slane %v2708_v32, 5  ;;  %4272 = vmatmul.mubr.bf16.gmra.mrb[176].mxu0 %v8649_v23  ;;  %v2742_v37 = vsel %vm7937_vm7, %v2734_v1, %v2741_v27 }
 0x261   : > { %v3004_v22 = vrot.slane %v9789_v59, 5  ;;  %v2758_v38 = vshrl.u32 %v8647_v2, 16  ;;  %v3012_v46 = vrot.slane %v2714_v12, 4  ;;  %4279 = vmatprep.mubr.bf16.mxu0 %v8622_v19  ;;  %v2995_v36 = vrot.slane %v2994_v8, 4 }
 0x262   : > { %v3000_v63 = vrot.slane %v2999_v26, 4  ;;  %v2751_v61 = vrot.slane %v2749_v21, 7  ;;  %v2733_v58 = vsel %vm7937_vm7, %v5379_v53, %v2732_v6  ;;  %v2761_v32 = vshll.u32 %v8647_v2, 16 }
 0x263   : > { %v2760_v60 = vrot.slane %v2758_v38, 7  ;;  %v3016_v40 = vshll.u32 %v2520_v4, 16  ;;  %v8675_v12 = vcombine.low %v2733_v58, %v2742_v37  ;;  %v2752_v15 = vshll.u32 %v8627_v3, 16 }
 0x264   : > { %v3005_v62 = vsel %vm8013_vm12, %v3000_v63, %v3004_v22  ;;  %v3010_v57 = vrot.slane %v2717_v41, 5  ;;  %v8686_v35 = vcombine.low %v8627_v3, %v8647_v2  ;;  %v5380_v5 = vrot.slane %v2744_v39, 11  ;;  %v8710_v63 = vld [vmem:[#allocation2 + $0xa8] sm:$0xf]  ;;  %v9837_v33 = vld [vmem:[#allocation6_spill] sm:$0xff] }
 0x265   : > { %9790 = vst [vmem:[#allocation7_spill] sm:$0xff] %v8675_v12  ;;  %v2763_v53 = vor.u32 %v2761_v32, %v2760_v60  ;;  %v2997_v34 = vsel %vm8013_vm12, %v2995_v36, %v2996_v50  ;;  %4135 = vmatmul.mubr.bf16.gmra.mrb[156].mxu1 %v8675_v12  ;;  %v3008_v51 = vor.u32 %v3007_v45, %v3006_v54  ;;  %v2756_v1 = vrot.slane %v2751_v61, 4  ;;  %v2524_v54 = vld [vmem:[#allocation2 + $0x7c] sm:$0x1] }
 0x266   : > { %9791 = vst [vmem:[#allocation8_spill] sm:$0xff] %v8686_v35  ;;  %v3013_v8 = vor.u32 %v3012_v46, %v3010_v57  ;;  %v2754_v6 = vor.u32 %v2752_v15, %v2751_v61  ;;  %v8691_v41 = vcombine.low %v2997_v34, %v3005_v62  ;;  %4142 = vmatprep.mubr.bf16.mxu1 %v8686_v35  ;;  %v9728_v27 = vshrl.u32 %v8680_v20, 16  ;;  %v8721_v62 = vld [vmem:[#allocation2 + $0xa4] sm:$0xf] }
 0x267   : > { %v2780_v26 = vshrl.u32 %v8682_v42, 16  ;;  %v3026_v59 = vrot.slane %v2736_v56, 4  ;;  %v3018_v50 = vrot.slane %v3016_v40, 5  ;;  %v2764_v4 = vsel %vm7937_vm7, %v2756_v1, %v2763_v53 }
 0x268   : > { %v3014_v22 = vrot.slane %v3013_v8, 4  ;;  %4280 = vmatmul.mubr.bf16.gmra.mrb[180].mxu0 %v8691_v41  ;;  %v2766_v45 = vshrl.u32 %v2529_v16, 16  ;;  %v3020_v37 = vrot.slane %v2727_v47, 4  ;;  %v3021_v46 = vrot.slane %v2730_v18, 5 }
 0x269   : > { %v2782_v39 = vrot.slane %v2780_v26, 7  ;;  %4287 = vmatprep.mubr.bf16.mxu0 %v8675_v12  ;;  %v3009_v56 = vrot.slane %v3008_v51, 4  ;;  %v3024_v36 = vrot.slane %v2739_v13, 5  ;;  %v2755_v61 = vsel %vm7937_vm7, %v5380_v5, %v2754_v6 }
 0x26a   : > { %v2773_v58 = vrot.slane %v9728_v27, 7  ;;  %v2783_v60 = vshll.u32 %v8682_v42, 16  ;;  %v3019_v52 = vsel %vm8013_vm12, %v3014_v22, %v3018_v50  ;;  %v8719_v47 = vcombine.low %v2755_v61, %v2764_v4  ;;  %v2533_v22 = vld [vmem:[#allocation2 + $0xa0] sm:$0xf]  ;;  %v8748_v61 = vld [vmem:[#allocation2 + $0xb8] sm:$0xf] }
 0x26b   : > { %v3027_v18 = vor.u32 %v3026_v59, %v3024_v36  ;;  %v3030_v40 = vshll.u32 %v2524_v54, 16  ;;  %v2774_v11 = vshll.u32 %v8680_v20, 16  ;;  %v8726_v13 = vcombine.low %v8680_v20, %v8682_v42 }
 0x26c   : > { %9792 = vst [vmem:[#allocation9_spill] sm:$0xff] %v8719_v47  ;;  %v2785_v5 = vor.u32 %v2783_v60, %v2782_v39  ;;  %v9727_v53 = vshrl.u32 %v8710_v63, 16  ;;  %v3011_v34 = vsel %vm8013_vm12, %v3009_v56, %v3010_v57  ;;  %v3022_v51 = vor.u32 %v3021_v46, %v3020_v37  ;;  %v2528_v37 = vld [vmem:[#allocation2 + $0x8c] sm:$0x1] }
 0x26d   : > { %9793 = vst [vmem:[#allocation10_spill] sm:$0xff] %v8726_v13  ;;  %4143 = vmatmul.mubr.bf16.gmra.mrb[160].mxu1 %v8719_v47  ;;  %v5381_v8 = vrot.slane %v2766_v45, 11  ;;  %v8732_v6 = vcombine.low %v3011_v34, %v3019_v52  ;;  %v2776_v16 = vor.u32 %v2774_v11, %v2773_v58  ;;  %v2778_v1 = vrot.slane %v2773_v58, 4 }
 0x26e   : > { %4150 = vmatprep.mubr.bf16.mxu1 %v8726_v13  ;;  %v9726_v59 = vshrl.u32 %v8721_v62, 16  ;;  %v3040_v50 = vrot.slane %v2758_v38, 4  ;;  %v3028_v4 = vrot.slane %v3027_v18, 4  ;;  %v3032_v39 = vrot.slane %v3030_v40, 5  ;;  %v2532_v18 = vld [vmem:[#allocation2 + $0x9c] sm:$0x1] }
 0x26f   : > { %v8738_v54 = vrot.slane %v2761_v32, 5  ;;  %v2786_v57 = vsel %vm7937_vm7, %v2778_v1, %v2785_v5  ;;  %v2804_v45 = vrot.slane %v9727_v53, 7  ;;  %v3034_v46 = vrot.slane %v2749_v21, 4  ;;  %v8760_v5 = vld [vmem:[#allocation2 + $0xb4] sm:$0xf] }
 0x270   : > { %4288 = vmatmul.mubr.bf16.gmra.mrb[184].mxu0 %v8732_v6  ;;  %v3035_v56 = vrot.slane %v2752_v15, 5  ;;  %v3023_v2 = vrot.slane %v3022_v51, 4  ;;  %v2788_v38 = vshrl.u32 %v2533_v22, 16  ;;  %v2777_v32 = vsel %vm7937_vm7, %v5381_v8, %v2776_v16 }
 0x271   : > { %4295 = vmatprep.mubr.bf16.mxu0 %v8719_v47  ;;  %v2795_v58 = vrot.slane %v9726_v59, 7  ;;  %v2805_v52 = vshll.u32 %v8710_v63, 16  ;;  %v3033_v3 = vsel %vm8013_vm12, %v3028_v4, %v3032_v39  ;;  %v8757_v21 = vcombine.low %v2777_v32, %v2786_v57  ;;  %v2537_v59 = vld [vmem:[#allocation2 + $0xb0] sm:$0xf] }
 0x272   : > { %v3041_v15 = vor.u32 %v3040_v50, %v8738_v54  ;;  %v3044_v40 = vshll.u32 %v2528_v37, 16  ;;  %v2796_v34 = vshll.u32 %v8721_v62, 16  ;;  %v8765_v51 = vcombine.low %v8721_v62, %v8710_v63 }
 0x273   : > { %9794 = vst [vmem:[#allocation11_spill] sm:$0xff] %v8757_v21  ;;  %v2807_v8 = vor.u32 %v2805_v52, %v2804_v45  ;;  %v9731_v16 = vshrl.u32 %v8748_v61, 16  ;;  %v3025_v1 = vsel %vm8013_vm12, %v3023_v2, %v3024_v36  ;;  %v3036_v22 = vor.u32 %v3035_v56, %v3034_v46  ;;  %v2536_v2 = vld [vmem:[#allocation2 + $0xac] sm:$0x1] }
 0x274   : > { %9795 = vst [vmem:[#allocation12_spill] sm:$0xff] %v8765_v51  ;;  %v5382_v4 = vrot.slane %v2788_v38, 11  ;;  %v3058_v50 = vshll.u32 %v2532_v18, 16  ;;  %v8771_v39 = vcombine.low %v3025_v1, %v3033_v3  ;;  %v2798_v57 = vor.u32 %v2796_v34, %v2795_v58  ;;  %v8787_v3 = vld [vmem:[#allocation2 + $0xc8] sm:$0xf] }
 0x275   : > { %4151 = vmatmul.mubr.bf16.gmra.mrb[164].mxu1 %v8757_v21  ;;  %v2800_v37 = vrot.slane %v2795_v58, 4  ;;  %v9729_v32 = vshrl.u32 %v8760_v5, 16  ;;  %v3054_v45 = vrot.slane %v2780_v26, 4  ;;  %v3042_v53 = vrot.slane %v3041_v15, 4  ;;  %v2541_v1 = vld [vmem:[#allocation2 + $0xc0] sm:$0xf] }
 0x276   : > { %4158 = vmatprep.mubr.bf16.mxu1 %v8765_v51  ;;  %v3046_v27 = vrot.slane %v3044_v40, 5  ;;  %v8777_v36 = vrot.slane %v2783_v60, 5  ;;  %v2826_v56 = vrot.slane %v9731_v16, 7  ;;  %v9796_v38 = vshrl.u32 %v8680_v20, 16 }
 0x277   : > { %v2808_v46 = vsel %vm7937_vm7, %v2800_v37, %v2807_v8  ;;  %v3049_v18 = vrot.slane %v2774_v11, 5  ;;  %v3037_v42 = vrot.slane %v3036_v22, 4  ;;  %v2810_v26 = vshrl.u32 %v2537_v59, 16  ;;  %v8799_v59 = vld [vmem:[#allocation2 + $0xc4] sm:$0xf] }
 0x278   : > { %4296 = vmatmul.mubr.bf16.gmra.mrb[188].mxu0 %v8771_v39  ;;  %v3048_v58 = vrot.slane %v9796_v38, 4  ;;  %v2799_v60 = vsel %vm7937_vm7, %v5382_v4, %v2798_v57  ;;  %v2817_v15 = vrot.slane %v9729_v32, 7  ;;  %v9730_v40 = vshll.u32 %v8748_v61, 16 }
 0x279   : > { %4303 = vmatprep.mubr.bf16.mxu0 %v8757_v21  ;;  %v3060_v8 = vrot.slane %v3058_v50, 5  ;;  %v3047_v20 = vsel %vm8013_vm12, %v3042_v53, %v3046_v27  ;;  %v8796_v11 = vcombine.low %v2799_v60, %v2808_v46  ;;  %v3055_v22 = vor.u32 %v3054_v45, %v8777_v36 }
 0x27a   : > { %v3072_v37 = vshll.u32 %v2536_v2, 16  ;;  %v9732_v38 = vshll.u32 %v8760_v5, 16  ;;  %v8804_v4 = vcombine.low %v8760_v5, %v8748_v61  ;;  %v2829_v50 = vor.u32 %v9730_v40, %v2826_v56  ;;  %v2540_v40 = vld [vmem:[#allocation2 + $0xbc] sm:$0x1]  ;;  %v8835_v56 = vpop.f32.mrb[128].mxu1 }
 0x27b   : > { %9797 = vst [vmem:[#allocation13_spill] sm:$0xff] %v8796_v11  ;;  %v3039_v27 = vsel %vm8013_vm12, %v3037_v42, %v8738_v54  ;;  %v3050_v53 = vor.u32 %v3049_v18, %v3048_v58  ;;  %v5383_v45 = vrot.slane %v2810_v26, 11  ;;  %v2832_v46 = vshrl.u32 %v2541_v1, 16  ;;  %v2544_v18 = vld [vmem:[#allocation2 + $0xcc] sm:$0x1] }
 0x27c   : > { %9798 = vst [vmem:[#allocation14_spill] sm:$0xff] %v8804_v4  ;;  %v8813_v2 = vcombine.low %v3039_v27, %v3047_v20  ;;  %v2820_v60 = vor.u32 %v9732_v38, %v2817_v15  ;;  %v2822_v32 = vrot.slane %v2817_v15, 4  ;;  %v9799_v16 = vshrl.u32 %v8710_v63, 16  ;;  %v8832_v63 = vld [vmem:[#allocation2 + $0xd8] sm:$0xf] }
 0x27d   : > { %4159 = vmatmul.mubr.bf16.gmra.mrb[168].mxu1 %v8796_v11  ;;  %v3056_v54 = vrot.slane %v3055_v22, 4  ;;  %v8821_v42 = vrot.slane %v2805_v52, 5  ;;  %v8823_v58 = vrot.slane %v3072_v37, 5  ;;  %v9800_v26 = vshrl.u32 %v8721_v62, 16  ;;  %v2545_v37 = vld [vmem:[#allocation2 + $0xd0] sm:$0xf] }
 0x27e   : > { %4166 = vmatprep.mubr.bf16.mxu1 %v8804_v4  ;;  %v3068_v57 = vrot.slane %v9799_v16, 4  ;;  %v3063_v20 = vrot.slane %v2796_v34, 5  ;;  %v2830_v15 = vsel %vm7937_vm7, %v2822_v32, %v2829_v50  ;;  %v9801_v27 = vshrl.u32 %v8787_v3, 16  ;;  %v8842_v50 = vld [vmem:[#allocation2 + $0xd4] sm:$0xf] }
 0x27f   : > { %v3062_v1 = vrot.slane %v9800_v26, 4  ;;  %v3051_v52 = vrot.slane %v3050_v53, 4  ;;  %v5384_v16 = vrot.slane %v2832_v46, 11  ;;  %v3086_v22 = vshll.u32 %v2540_v40, 16  ;;  %v2549_v4 = vld [vmem:[#allocation2 + $0xe0] sm:$0xf] }
 0x280   : > { %4304 = vmatmul.mubr.bf16.gmra.mrb[192].mxu0 %v8813_v2  ;;  %v2848_v38 = vrot.slane %v9801_v27, 7  ;;  %v2821_v62 = vsel %vm7937_vm7, %v5383_v45, %v2820_v60  ;;  %v9802_v34 = vshrl.u32 %v8799_v59, 16  ;;  %v9737_v32 = vshll.u32 %v8787_v3, 16 }
 0x281   : > { %4311 = vmatprep.mubr.bf16.mxu0 %v8796_v11  ;;  %v3100_v27 = vshll.u32 %v2544_v18, 16  ;;  %v3061_v11 = vsel %vm8013_vm12, %v3056_v54, %v3060_v8  ;;  %v8846_v53 = vcombine.low %v2821_v62, %v2830_v15  ;;  %v3069_v40 = vor.u32 %v3068_v57, %v8821_v42  ;;  %v2548_v62 = vld [vmem:[#allocation2 + $0xdc] sm:$0x1] }
 0x282   : > { %v2839_v26 = vrot.slane %v9802_v34, 7  ;;  %v2840_v45 = vshll.u32 %v8799_v59, 16  ;;  %v8853_v60 = vcombine.low %v8799_v59, %v8787_v3  ;;  %v3064_v34 = vor.u32 %v3063_v20, %v3062_v1 }
 0x283   : > { %9803 = vst [vmem:[#allocation15_spill] sm:$0xff] %v8846_v53  ;;  %v2851_v18 = vor.u32 %v9737_v32, %v2848_v38  ;;  %v3053_v8 = vsel %vm8013_vm12, %v3051_v52, %v8777_v36  ;;  %v2859_v57 = vshrl.u32 %v8842_v50, 16  ;;  %v8862_v54 = vrot.slane %v3086_v22, 5 }
 0x284   : > { %9804 = vst [vmem:[#allocation16_spill] sm:$0xff] %v8853_v60  ;;  %v2854_v15 = vshrl.u32 %v2545_v37, 16  ;;  %v8864_v46 = vcombine.low %v3053_v8, %v3061_v11  ;;  %v2842_v1 = vor.u32 %v2840_v45, %v2839_v26  ;;  %v2844_v20 = vrot.slane %v2839_v26, 4  ;;  %v8878_v8 = vld [vmem:[#allocation2 + $0xe8] sm:$0xf] }
 0x285   : > { %4167 = vmatmul.mubr.bf16.gmra.mrb[172].mxu1 %v8846_v53  ;;  %v2876_v21 = vshrl.u32 %v2549_v4, 16  ;;  %v9806_v38 = vshrl.u32 %v8748_v61, 16  ;;  %v3070_v51 = vrot.slane %v3069_v40, 4  ;;  %v9807_v36 = vshrl.u32 %v8832_v63, 16 }
 0x286   : > { %9805 = vst [vmem:[#allocation17_spill] sm:$0xff] %v8864_v46  ;;  %4174 = vmatprep.mubr.bf16.mxu1 %v8853_v60  ;;  %v9808_v47 = vshll.u32 %v8748_v61, 16  ;;  %v3065_v11 = vrot.slane %v3064_v34, 4  ;;  %v2852_v37 = vsel %vm7937_vm7, %v2844_v20, %v2851_v18  ;;  %v8880_v4 = vrot.slane %v3100_v27, 5  ;;  %v8895_v20 = vld [vmem:[#allocation2 + $0xe4] sm:$0xf] }
 0x287   : > { %v3082_v32 = vrot.slane %v9806_v38, 4  ;;  %v2870_v52 = vrot.slane %v9807_v36, 7  ;;  %v3114_v26 = vshll.u32 %v2548_v62, 16  ;;  %v8882_v38 = vpop.f32.mrb[129].mxu1  ;;  %v9809_v40 = vshrl.u32 %v8760_v5, 16 }
 0x288   : > { %v8873_v22 = vrot.slane %v9808_v47, 5  ;;  %4312 = vmatmul.mubr.bf16.gmra.mrb[196].mxu0 %v8864_v46  ;;  %v9810_v61 = vshll.u32 %v8760_v5, 16  ;;  %v2861_v60 = vrot.slane %v2859_v57, 7  ;;  %v8890_v13 = vpop.f32.mrb[130].mxu1  ;;  %v2843_v27 = vsel %vm7937_vm7, %v5384_v16, %v2842_v1  ;;  %v8907_v16 = vld [vmem:[#allocation2 + $0xf0] sm:$0xf] }
 0x289   : > { %v3076_v36 = vrot.slane %v9809_v40, 4  ;;  %4319 = vmatprep.mubr.bf16.mxu0 %v8846_v53  ;;  %v2862_v18 = vshll.u32 %v8842_v50, 16  ;;  %v5385_v62 = vrot.slane %v2854_v15, 11  ;;  %v8897_v12 = vrot.slane %v2876_v21, 11  ;;  %v6048_v40 = vpop.f32.mrb[131].mxu1 }
 0x28a   : > { %v3077_v47 = vrot.slane %v9810_v61, 5  ;;  %v3075_v5 = vsel %vm8013_vm12, %v3070_v51, %v8823_v58  ;;  %v8902_v61 = vcombine.low %v2843_v27, %v2852_v37  ;;  %v3083_v34 = vor.u32 %v3082_v32, %v8873_v22  ;;  %v8909_v1 = vld [vmem:[#allocation2 + $0x10c] sm:$0x1] }
 0x28b   : > { %v9812_v53 = vshll.u32 %v8832_v63, 16  ;;  %v3067_v21 = vsel %vm8013_vm12, %v3065_v11, %v8821_v42  ;;  %v8916_v15 = vcombine.low %v8842_v50, %v8832_v63  ;;  %v8919_v58 = vrot.slane %v3114_v26, 5 }
 0x28c   : > { %9811 = vst [vmem:[#allocation18_spill] sm:$0xff] %v8902_v61  ;;  %v3078_v32 = vor.u32 %v3077_v47, %v3076_v36  ;;  %v9753_v37 = vshrl.u32 %v8895_v20, 16  ;;  %v9814_v27 = vshrl.u32 %v8799_v59, 16  ;;  %v8925_v19 = vcombine.low %v3067_v21, %v3075_v5  ;;  %v8938_v59 = vld [vmem:[#allocation2 + $0x104] sm:$0xf] }
 0x28d   : > { %v2873_v46 = vor.u32 %v9812_v53, %v2870_v52  ;;  %9813 = vst [vmem:[#allocation19_spill] sm:$0xff] %v8916_v15  ;;  %4175 = vmatmul.mubr.bf16.gmra.mrb[176].mxu1 %v8902_v61  ;;  %v2864_v53 = vor.u32 %v2862_v18, %v2861_v60  ;;  %v2866_v52 = vrot.slane %v2861_v60, 4  ;;  %v3178_v50 = vshll.u32 %v8909_v1, 16 }
 0x28e   : > { %v3090_v35 = vrot.slane %v9814_v27, 4  ;;  %9815 = vst [vmem:[#allocation20_spill] sm:$0xff] %v8925_v19  ;;  %4182 = vmatprep.mubr.bf16.mxu1 %v8916_v15  ;;  %v9816_v11 = vshrl.u32 %v8787_v3, 16  ;;  %v3084_v51 = vrot.slane %v3083_v34, 4  ;;  %v9817_v36 = vshll.u32 %v8787_v3, 16 }
 0x28f   : > { %v2874_v60 = vsel %vm7937_vm7, %v2866_v52, %v2873_v46  ;;  %v3091_v5 = vrot.slane %v2840_v45, 5  ;;  %v8941_v21 = vrot.slane %v2859_v57, 4  ;;  %v8943_v27 = vrot.slane %v2862_v18, 5  ;;  %v8947_v34 = vld [vmem:[#allocation2 + $0xf8] sm:$0xf] }
 0x290   : > { %v3096_v26 = vrot.slane %v9816_v11, 4  ;;  %v8936_v47 = vrot.slane %v9817_v36, 5  ;;  %4320 = vmatmul.mubr.bf16.gmra.mrb[200].mxu0 %v8925_v19  ;;  %v9818_v1 = vshrl.u32 %v8878_v8, 16  ;;  %v9819_v3 = vshrl.u32 %v8832_v63, 16  ;;  %v8958_v18 = vld [vmem:[#allocation2 + $0x108] sm:$0xf] }
 0x291   : > { %4327 = vmatprep.mubr.bf16.mxu0 %v8902_v61  ;;  %v3079_v52 = vrot.slane %v3078_v32, 4  ;;  %v2865_v45 = vsel %vm7937_vm7, %v5385_v62, %v2864_v53  ;;  %v2883_v57 = vrot.slane %v9753_v37, 7  ;;  %v2893_v42 = vshll.u32 %v8878_v8, 16  ;;  %v8972_v53 = vld [vmem:[#allocation2 + $0xf4] sm:$0xf] }
 0x292   : > { %v2892_v11 = vrot.slane %v9818_v1, 7  ;;  %v8952_v46 = vrot.slane %v9819_v3, 4  ;;  %v8960_v36 = vcombine.low %v2865_v45, %v2874_v60  ;;  %v8966_v61 = vcombine.low %v8895_v20, %v8878_v8 }
 0x293   : > { %v3089_v32 = vsel %vm8013_vm12, %v3084_v51, %v8862_v54  ;;  %v3097_v62 = vor.u32 %v3096_v26, %v8936_v47  ;;  %v9758_v3 = vshrl.u32 %v8938_v59, 16  ;;  %v3081_v19 = vsel %vm8013_vm12, %v3079_v52, %v8873_v22 }
 0x294   : > { %v2895_v45 = vor.u32 %v2893_v42, %v2892_v11  ;;  %v3092_v54 = vor.u32 %v3091_v5, %v3090_v35  ;;  %v9820_v51 = vshll.u32 %v8895_v20, 16  ;;  %v8987_v60 = vadd.f32 %v8882_v38, %v8835_v56 }
 0x295   : > { %4183 = vmatmul.mubr.bf16.gmra.mrb[180].mxu1 %v8960_v36  ;;  %v8989_v11 = vcombine.low %v3081_v19, %v3089_v32  ;;  %v2888_v1 = vrot.slane %v2883_v57, 4  ;;  %v9759_v15 = vshrl.u32 %v8972_v53, 16  ;;  %v8994_v37 = vadd.f32 %v6048_v40, %v8890_v13 }
 0x296   : > { %v2886_v26 = vor.u32 %v9820_v51, %v2883_v57  ;;  %4190 = vmatprep.mubr.bf16.mxu1 %v8966_v61  ;;  %v3098_v22 = vrot.slane %v3097_v62, 4  ;;  %v9821_v35 = vshll.u32 %v8832_v63, 16  ;;  %v3168_v52 = vrot.slane %v9758_v3, 4 }
 0x297   : > { %v9822_v56 = vshll.u32 %v8938_v59, 16  ;;  %v2896_v19 = vsel %vm7937_vm7, %v2888_v1, %v2895_v45  ;;  %v9823_v57 = vshrl.u32 %v8947_v34, 16  ;;  %v9824_v13 = vshll.u32 %v8958_v18, 16 }
 0x298   : > { %v3108_v5 = vrot.slane %v9821_v35, 5  ;;  %4328 = vmatmul.mubr.bf16.gmra.mrb[204].mxu0 %v8989_v11  ;;  %v9825_v63 = vshrl.u32 %v8958_v18, 16  ;;  %v3093_v51 = vrot.slane %v3092_v54, 4  ;;  %v2887_v35 = vsel %vm7937_vm7, %v8897_v12, %v2886_v26 }
 0x299   : > { %v3169_v38 = vrot.slane %v9822_v56, 5  ;;  %v2914_v32 = vrot.slane %v9823_v57, 7  ;;  %v3172_v40 = vrot.slane %v9824_v13, 5  ;;  %4335 = vmatprep.mubr.bf16.mxu0 %v8960_v36  ;;  %v9017_v1 = vcombine.low %v8938_v59, %v8958_v18 }
 0x29a   : > { %v3174_v62 = vrot.slane %v9825_v63, 4  ;;  %v2905_v45 = vrot.slane %v9759_v15, 7  ;;  %v2915_v57 = vshll.u32 %v8947_v34, 16  ;;  %v3180_v3 = vrot.slane %v3178_v50, 5 }
 0x29b   : > { %v3170_v56 = vor.u32 %v3169_v38, %v3168_v52  ;;  %9826 = vst [vmem:[#allocation21_spill] sm:$0xff] %v9017_v1  ;;  %v3103_v54 = vsel %vm8013_vm12, %v3098_v22, %v8880_v4  ;;  %v9025_v63 = vcombine.low %v2887_v35, %v2896_v19  ;;  %v3111_v12 = vor.u32 %v8952_v46, %v3108_v5 }
 0x29c   : > { %v3175_v13 = vor.u32 %v3174_v62, %v3172_v40  ;;  %v2906_v52 = vshll.u32 %v8972_v53, 16  ;;  %v9031_v38 = vcombine.low %v8972_v53, %v8947_v34  ;;  %v2917_v15 = vor.u32 %v2915_v57, %v2914_v32 }
 0x29d   : > { %v3171_v26 = vrot.slane %v3170_v56, 4  ;;  %v3095_v50 = vsel %vm8013_vm12, %v3093_v51, %v8936_v47  ;;  %4191 = vmatmul.mubr.bf16.gmra.mrb[184].mxu1 %v9025_v63  ;;  %v3106_v4 = vor.u32 %v8943_v27, %v8941_v21  ;;  %v9827_v46 = vshrl.u32 %v8907_v16, 16 }
 0x29e   : > { %v3176_v1 = vrot.slane %v3175_v13, 4  ;;  %v9043_v62 = vcombine.low %v3095_v50, %v3103_v54  ;;  %4198 = vmatprep.mubr.bf16.mxu1 %v9031_v38  ;;  %v2908_v32 = vor.u32 %v2906_v52, %v2905_v45  ;;  %v2910_v35 = vrot.slane %v2905_v45, 4 }
 0x29f   : > { %v5387_v22 = vrot.slane %v9827_v46, 11  ;;  %v3173_v19 = vsel %vm8013_vm12, %v3171_v26, %v3172_v40  ;;  %v9828_v51 = vshrl.u32 %v8878_v8, 16  ;;  %v3112_v13 = vrot.slane %v3111_v12, 4  ;;  %v2552_v40 = vld [vmem:[#allocation2 + $0xec] sm:$0x1] }
 0x2a0   : > { %v3181_v47 = vsel %vm8013_vm12, %v3176_v1, %v3180_v3  ;;  %v3122_v21 = vrot.slane %v2893_v42, 5  ;;  %4336 = vmatmul.mubr.bf16.gmra.mrb[208].mxu0 %v9043_v62  ;;  %v2918_v16 = vsel %vm7937_vm7, %v2910_v35, %v2917_v15  ;;  %v9829_v54 = vshrl.u32 %v8895_v20, 16  ;;  %v2557_v46 = vld [vmem:[#allocation2 + $0x100] sm:$0xf] }
 0x2a1   : > { %v3124_v56 = vrot.slane %v9828_v51, 4  ;;  %v9050_v27 = vcombine.low %v3173_v19, %v3181_v47  ;;  %v9830_v45 = vshll.u32 %v8895_v20, 16  ;;  %4343 = vmatprep.mubr.bf16.mxu0 %v9025_v63  ;;  %v3107_v8 = vrot.slane %v3106_v4, 4 }
 0x2a2   : > { %v3118_v26 = vrot.slane %v9829_v54, 4  ;;  %v2909_v42 = vsel %vm7937_vm7, %v5387_v22, %v2908_v32  ;;  %v3117_v3 = vsel %vm8013_vm12, %v3112_v13, %v8919_v58  ;;  %v3128_v12 = vshll.u32 %v2552_v40, 16 }
 0x2a3   : > { %v3119_v50 = vrot.slane %v9830_v45, 5  ;;  %v9065_v1 = vcombine.low %v2909_v42, %v2918_v16  ;;  %v3125_v15 = vor.u32 %v3124_v56, %v3122_v21  ;;  %v9831_v19 = vshrl.u32 %v8958_v18, 16 }
 0x2a4   : > { %v3109_v20 = vsel %vm8013_vm12, %v3107_v8, %v3108_v5  ;;  %v3147_v22 = vshrl.u32 %v2557_v46, 16  ;;  %v9832_v58 = vshrl.u32 %v8938_v59, 16  ;;  %v9833_v51 = vshrl.u32 %v8947_v34, 16 }
 0x2a5   : > { %v3163_v35 = vrot.slane %v9831_v19, 7  ;;  %4199 = vmatmul.mubr.bf16.gmra.mrb[188].mxu1 %v9065_v1  ;;  %v3120_v4 = vor.u32 %v3119_v50, %v3118_v26  ;;  %v9072_v47 = vcombine.low %v3109_v20, %v3117_v3  ;;  %v3126_v13 = vrot.slane %v3125_v15, 4  ;;  %v2556_v26 = vld [vmem:[#allocation2 + $0xfc] sm:$0x1]  ;;  %v6800_v20 = vld [vmem:[%s9716_s2 + $0x200] sm:$0xff]  }
 0x2a6   : > { %4400 = vmatprep.mubr.bf16.mxu1 %v8440_v30  ;;  %v3154_v32 = vrot.slane %v9832_v58, 7  ;;  %v3138_v56 = vrot.slane %v9833_v51, 4  ;;  %v3130_v16 = vrot.slane %v3128_v12, 5  ;;  %v3136_v40 = vrot.slane %v2915_v57, 5  ;;  %v6794_v51 = vld [vmem:[%s9716_s2 + $0x218] sm:$0xff]  }
 0x2a7   : > { %v9834_v5 = vshll.u32 %v8958_v18, 16  ;;  %v9835_v45 = vshrl.u32 %v8972_v53, 16  ;;  %v3133_v30 = vrot.slane %v2906_v52, 5  ;;  %v3121_v8 = vrot.slane %v3120_v4, 4  ;;  %v6792_v18 = vld [vmem:[%s9716_s2 + $0x208] sm:$0xff]  }
 0x2a8   : > { %4344 = vmatmul.mubr.bf16.gmra.mrb[212].mxu0 %v9072_v47  ;;  %v5388_v42 = vrot.slane %v3147_v22, 11  ;;  %v9836_v34 = vshll.u32 %v8938_v59, 16  ;;  %v3159_v15 = vrot.slane %v3154_v32, 4  ;;  %v3131_v57 = vsel %vm8013_vm12, %v3126_v13, %v3130_v16  ;;  %v6795_v16 = vld [vmem:[%s9716_s2 + $0x220] sm:$0xff]  }
 0x2a9   : > { %v3166_v54 = vor.u32 %v9834_v5, %v3163_v35  ;;  %v3132_v50 = vrot.slane %v9835_v45, 4  ;;  %4351 = vmatprep.mubr.bf16.mxu0 %v9065_v1  ;;  %v3139_v12 = vor.u32 %v3138_v56, %v3136_v40  ;;  %v3142_v46 = vshll.u32 %v2556_v26, 16  ;;  %v2218_v5 = vld [vmem:[#allocation2 + $0x11c] sm:$0x1]  ;;  %v6796_v45 = vld [vmem:[%s9716_s2 + $0x228] sm:$0xff]  }
 0x2aa   : > { %v3157_v3 = vor.u32 %v9836_v34, %v3154_v32  ;;  %v3123_v52 = vsel %vm8013_vm12, %v3121_v8, %v3122_v21 }
 0x2ab   : > { %v3167_v53 = vsel %vm7937_vm7, %v3159_v15, %v3166_v54  ;;  %v3134_v59 = vor.u32 %v3133_v30, %v3132_v50  ;;  %v9097_v19 = vcombine.low %v3123_v52, %v3131_v57  ;;  %v3140_v22 = vrot.slane %v3139_v12, 4  ;;  %v2275_v54 = vld [vmem:[#allocation2 + $0x110] sm:$0x8]  ;;  %v6798_v50 = vld [vmem:[%s9716_s2 + $0x238] sm:$0xff]  }
 0x2ac   : > { %v3158_v35 = vsel %vm7937_vm7, %v5388_v42, %v3157_v3  ;;  %v3144_v58 = vrot.slane %v3142_v46, 5  ;;  %v2276_v26 = vsel %vm7882_vm4, 0, %v2275_v54  ;;  %v9847_v42 = vld [vmem:[#allocation13_spill] sm:$0xff]  ;;  %v9851_v54 = vld [vmem:[#allocation18_spill] sm:$0xff] }
 0x2ad   : > { %4401 = vmatmul.mubr.bf16.vlgmr.msra.gmra.mrb[192].mxu1 %v8277_v0  ;;  %v9105_v4 = vcombine.low %v3158_v35, %v3167_v53  ;;  %v6793_v0 = vld [vmem:[%s9716_s2 + $0x210] sm:$0xff]   ;;  %v3135_v21 = vrot.slane %v3134_v59, 4  ;;  %2277 = vst [vmem:[#allocation2 + $0x110] sm:$0x8] %v2276_v26 }
 0x2ae   : > { %4408 = vmatprep.mubr.bf16.mxu1 %v8521_v17  ;;  %6549 = vmatpush3.bf16.msra.mxu1 %v6800_v20  ;;  %v3145_v32 = vsel %vm8013_vm12, %v3140_v22, %v3144_v58  ;;  %v9848_v22 = vld [vmem:[#allocation16_spill] sm:$0xff] }
 0x2af   : > { %6550 = vmatprep.subr.bf16.mxu1 %v6792_v18  ;;  %v3137_v56 = vsel %vm8013_vm12, %v3135_v21, %v3136_v40  ;;  %v2219_v40 = vsel %vm7957_vm9, 0, %v2218_v5  ;;  %v9849_v21 = vld [vmem:[#allocation15_spill] sm:$0xff] }
 0x2b0   : > { %4352 = vmatmul.mubr.bf16.gmra.mrb[216].mxu0 %v9097_v19  ;;  %v9120_v13 = vcombine.low %v3137_v56, %v3145_v32  ;;  %2220 = vst [vmem:[#allocation2 + $0x11c] sm:$0x1] %v2219_v40 }
 0x2b1   : > { %4359 = vmatprep.mubr.bf16.mxu0 %v9105_v4 }
 0x2b2   : > { %6551 = vmatpush3.bf16.msra.mxu1 %v6792_v18 }
 0x2b3   : > { %6552 = vmatprep.subr.bf16.mxu1 %v6793_v0 }
 0x2b5   : > { %4409 = vmatmul.mubr.bf16.gmra.mrb[196].mxu1 %v8327_v24 }
 0x2b6   : > { %4416 = vmatprep.mubr.bf16.mxu1 %v8587_v55  ;;  %6553 = vmatpush3.bf16.msra.mxu1 %v6793_v0 }
 0x2b7   : > { %6554 = vmatprep.subr.bf16.mxu1 %v6794_v51  ;;  %v2329_v14 = vld [vmem:[#allocation2 + $0x11c] sm:$0x1] }
 0x2b8   : > { %4360 = vmatmul.mubr.bf16.gmra.mrb[220].mxu0 %v9120_v13  ;;  %v2330_v30 = vsel %vm7957_vm9, 0, %v2329_v14 }
 0x2b9   : > { %4561 = vmatprep.mubr.bf16.mxu0 %v8327_v24  ;;  %v6797_v24 = vld [vmem:[%s9716_s2 + $0x230] sm:$0xff]   ;;  %2331 = vst [vmem:[#allocation2 + $0x11c] sm:$0x1] %v2330_v30 }
 0x2ba   : > { %6555 = vmatpush3.bf16.msra.mxu1 %v6794_v51 }
 0x2bb   : > { %6556 = vmatprep.subr.bf16.mxu1 %v6795_v16 }
 0x2bd   : > { %4417 = vmatmul.mubr.bf16.gmra.mrb[200].mxu1 %v8393_v28 }
 0x2be   : > { %4424 = vmatprep.mubr.bf16.mxu1 %v8649_v23  ;;  %6557 = vmatpush3.bf16.msra.mxu1 %v6795_v16 }
 0x2bf   : > { %6558 = vmatprep.subr.bf16.mxu1 %v6796_v45 }
 0x2c0   : > { %4562 = vmatmul.mubr.bf16.vlgmr.msra.gmra.mrb[224].mxu0 %v8359_v43  ;;  %v9838_v43 = vld [vmem:[#allocation8_spill] sm:$0xff] }
 0x2c1   : > { %4569 = vmatprep.mubr.bf16.mxu0 %v8393_v28  ;;  %v9839_v28 = vld [vmem:[#allocation17_spill] sm:$0xff] }
 0x2c2   : > { %6559 = vmatpush3.bf16.msra.mxu1 %v6796_v45 }
 0x2c3   : > { %6560 = vmatprep.subr.bf16.mxu1 %v6797_v24 }
 0x2c5   : > { %4425 = vmatmul.mubr.bf16.gmra.mrb[204].mxu1 %v8473_v48 }
 0x2c6   : > { %4432 = vmatprep.mubr.bf16.mxu1 %v8691_v41  ;;  %6561 = vmatpush3.bf16.msra.mxu1 %v6797_v24 }
 0x2c7   : > { %6562 = vmatprep.subr.bf16.mxu1 %v6798_v50 }
 0x2c8   : > { %4570 = vmatmul.mubr.bf16.gmra.mrb[228].mxu0 %v8436_v29  ;;  %v9840_v29 = vld [vmem:[#allocation7_spill] sm:$0xff] }
 0x2c9   : > { %4577 = vmatprep.mubr.bf16.mxu0 %v8473_v48  ;;  %v9841_v48 = vld [vmem:[#allocation10_spill] sm:$0xff] }
 0x2ca   : > { %6563 = vmatpush3.bf16.msra.mxu1 %v6798_v50 }
 0x2cd   : > { %4433 = vmatmul.mubr.bf16.gmra.mrb[208].mxu1 %v8541_v9 }
 0x2ce   : > { %4440 = vmatprep.mubr.bf16.mxu1 %v8732_v6 }
 0x2d0   : > { %4578 = vmatmul.mubr.bf16.gmra.mrb[232].mxu0 %v8508_v31  ;;  %v9842_v31 = vld [vmem:[#allocation20_spill] sm:$0xff] }
 0x2d1   : > { %4585 = vmatprep.mubr.bf16.mxu0 %v8541_v9  ;;  %v9843_v9 = vld [vmem:[#allocation9_spill] sm:$0xff] }
 0x2d5   : > { %4441 = vmatmul.mubr.bf16.gmra.mrb[212].mxu1 %v8597_v25 }
 0x2d6   : > { %4448 = vmatprep.mubr.bf16.mxu1 %v8771_v39 }
 0x2d8   : > { %4586 = vmatmul.mubr.bf16.gmra.mrb[236].mxu0 %v8572_v7  ;;  %v9844_v7 = vld [vmem:[#allocation12_spill] sm:$0xff] }
 0x2d9   : > { %4593 = vmatprep.mubr.bf16.mxu0 %v8597_v25  ;;  %v9845_v25 = vld [vmem:[#allocation11_spill] sm:$0xff] }
 0x2dd   : > { %4449 = vmatmul.mubr.bf16.gmra.mrb[216].mxu1 %v8634_v49 }
 0x2de   : > { %4456 = vmatprep.mubr.bf16.mxu1 %v8813_v2 }
 0x2e0   : > { %4594 = vmatmul.mubr.bf16.gmra.mrb[240].mxu0 %v9837_v33 }
 0x2e1   : > { %4601 = vmatprep.mubr.bf16.mxu0 %v8634_v49  ;;  %v9846_v49 = vld [vmem:[#allocation14_spill] sm:$0xff] }
 0x2e5   : > { %4457 = vmatmul.mubr.bf16.gmra.mrb[220].mxu1 %v9838_v43 }
 0x2e6   : > { %4464 = vmatprep.mubr.bf16.mxu1 %v9839_v28 }
 0x2e8   : > { %4602 = vmatmul.mubr.bf16.gmra.mrb[244].mxu0 %v9840_v29 }
 0x2e9   : > { %4609 = vmatprep.mubr.bf16.mxu0 %v9838_v43 }
 0x2ed   : > { %4465 = vmatmul.mubr.bf16.gmra.mrb[224].mxu1 %v9841_v48 }
 0x2ee   : > { %4472 = vmatprep.mubr.bf16.mxu1 %v9842_v31 }
 0x2f0   : > { %4610 = vmatmul.mubr.bf16.gmra.mrb[248].mxu0 %v9843_v9 }
 0x2f1   : > { %4617 = vmatprep.mubr.bf16.mxu0 %v9841_v48 }
 0x2f5   : > { %4473 = vmatmul.mubr.bf16.gmra.mrb[228].mxu1 %v9844_v7 }
 0x2f6   : > { %4480 = vmatprep.mubr.bf16.mxu1 %v8989_v11 }
 0x2f8   : > { %4618 = vmatmul.mubr.bf16.gmra.mrb[252].mxu0 %v9845_v25 }
 0x2f9   : > { %4625 = vmatprep.mubr.bf16.mxu0 %v9844_v7 }
 0x2fd   : > { %4481 = vmatmul.mubr.bf16.gmra.mrb[232].mxu1 %v9846_v49 }
 0x2fe   : > { %4488 = vmatprep.mubr.bf16.mxu1 %v9043_v62  ;;  %v6050_v8 = vpop.f32.mrb[132].mxu1 }
 0x2ff   : > { %v6051_v34 = vpop.f32.mrb[133].mxu1  ;;  %v6156_v3 = vpop.f32.mrb[160].mxu0 }
 0x300   : > { %4626 = vmatmul.mubr.bf16.gmra.mrb[0].mxu0 %v9847_v42  ;;  %v6052_v15 = vadd.f32 %v6051_v34, %v6050_v8  ;;  %v6053_v57 = vpop.f32.mrb[134].mxu1  ;;  %v6157_v12 = vpop.f32.mrb[161].mxu0 }
 0x301   : > { %4633 = vmatprep.mubr.bf16.mxu0 %v9846_v49  ;;  %v6158_v46 = vadd.f32 %v6157_v12, %v6156_v3  ;;  %v6054_v18 = vpop.f32.mrb[135].mxu1  ;;  %v6159_v53 = vpop.f32.mrb[162].mxu0 }
 0x302   : > { %v6055_v52 = vadd.f32 %v6054_v18, %v6053_v57  ;;  %v6160_v59 = vpop.f32.mrb[163].mxu0 }
 0x303   : > { %v9180_v35 = vadd.f32 %v6158_v46, %v8987_v60  ;;  %v6161_v20 = vadd.f32 %v6160_v59, %v6159_v53  ;;  %v9850_v60 = vld [vmem:[#allocation19_spill] sm:$0xff]  ;;  %v9213_v53 = vld [vmem:[#allocation2 + $0x114] sm:$0xf] }
 0x305   : > { %4489 = vmatmul.mubr.bf16.gmra.mrb[236].mxu1 %v9848_v22  ;;  %v9185_v58 = vadd.f32 %v6161_v20, %v8994_v37  ;;  %v9852_v20 = vld [vmem:[#allocation21_spill] sm:$0xff] }
 0x306   : > { %4496 = vmatprep.mubr.bf16.mxu1 %v9072_v47 }
 0x307   : > { %v6056_v0 = vpop.f32.mrb[136].mxu1 }
 0x308   : > { %4634 = vmatmul.mubr.bf16.gmra.mrb[4].mxu0 %v9849_v21  ;;  %v6057_v32 = vpop.f32.mrb[137].mxu1 }
 0x309   : > { %4641 = vmatprep.mubr.bf16.mxu0 %v9848_v22  ;;  %v6058_v51 = vadd.f32 %v6057_v32, %v6056_v0  ;;  %v6059_v56 = vpop.f32.mrb[138].mxu1  ;;  %v2561_v0 = vld [vmem:[#allocation2 + $0x110] sm:$0xf]  ;;  %v3191_v32 = vshll.u32 %v9213_v53, 16 }
 0x30a   : > { %v6060_v16 = vpop.f32.mrb[139].mxu1 }
 0x30b   : > { %v6061_v5 = vadd.f32 %v6060_v16, %v6059_v56 }
 0x30d   : > { %4497 = vmatmul.mubr.bf16.gmra.mrb[240].mxu1 %v9850_v60 }
 0x30e   : > { %4504 = vmatprep.mubr.bf16.mxu1 %v9097_v19 }
 0x310   : > { %4642 = vmatmul.mubr.bf16.gmra.mrb[8].mxu0 %v9851_v54 }
 0x311   : > { %4649 = vmatprep.mubr.bf16.mxu0 %v9850_v60  ;;  %v6062_v37 = vpop.f32.mrb[140].mxu1 }
 0x312   : > { %v6162_v40 = vpop.f32.mrb[164].mxu0  ;;  %v6063_v26 = vpop.f32.mrb[141].mxu1 }
 0x313   : > { %v6163_v45 = vpop.f32.mrb[165].mxu0  ;;  %v9193_v24 = vadd.f32 %v6063_v26, %v6062_v37  ;;  %v6065_v14 = vpop.f32.mrb[142].mxu1 }
 0x314   : > { %v6164_v50 = vadd.f32 %v6163_v45, %v6162_v40  ;;  %v6165_v30 = vpop.f32.mrb[166].mxu0  ;;  %v6066_v33 = vpop.f32.mrb[143].mxu1 }
 0x315   : > { %v6166_v43 = vpop.f32.mrb[167].mxu0  ;;  %4505 = vmatmul.mubr.bf16.gmra.mrb[244].mxu1 %v8966_v61  ;;  %v6067_v29 = vadd.f32 %v6066_v33, %v6065_v14 }
 0x316   : > { %v9196_v48 = vadd.f32 %v6164_v50, %v6052_v15  ;;  %v6167_v9 = vadd.f32 %v6166_v43, %v6165_v30  ;;  %4512 = vmatprep.mubr.bf16.mxu1 %v9120_v13 }
 0x318   : > { %4650 = vmatmul.mubr.bf16.gmra.mrb[12].mxu0 %v8960_v36  ;;  %v9200_v7 = vadd.f32 %v6167_v9, %v6055_v52  ;;  %v9215_v52 = vld [vmem:[#allocation2 + $0x118] sm:$0xf] }
 0x319   : > { %4657 = vmatprep.mubr.bf16.mxu0 %v8966_v61  ;;  %v3197_v22 = vshrl.u32 %v9215_v52, 16  ;;  %v5442_v14 = vcombine.low %v9213_v53, %v9215_v52 }
 0x31c   : > { %v6068_v25 = vpop.f32.mrb[144].mxu1 }
 0x31d   : > { %4513 = vmatmul.mubr.bf16.gmra.mrb[248].mxu1 %v9031_v38  ;;  %v6069_v49 = vpop.f32.mrb[145].mxu1 }
 0x31e   : > { %4520 = vmatprep.mubr.bf16.mxu1 %v9050_v27  ;;  %v9205_v42 = vadd.f32 %v6069_v49, %v6068_v25  ;;  %v6071_v34 = vpop.f32.mrb[146].mxu1 }
 0x31f   : > { %v6072_v15 = vpop.f32.mrb[147].mxu1 }
 0x320   : > { %v6168_v8 = vpop.f32.mrb[168].mxu0  ;;  %4658 = vmatmul.mubr.bf16.gmra.mrb[16].mxu0 %v9025_v63  ;;  %v9208_v12 = vadd.f32 %v6072_v15, %v6071_v34  ;;  %v3188_v63 = vshrl.u32 %v9213_v53, 16 }
 0x321   : > { %v6169_v3 = vpop.f32.mrb[169].mxu0  ;;  %4665 = vmatprep.mubr.bf16.mxu0 %v9031_v38 }
 0x322   : > { %v6170_v57 = vadd.f32 %v6169_v3, %v6168_v8  ;;  %v6171_v36 = vpop.f32.mrb[170].mxu0  ;;  %v3190_v60 = vrot.slane %v3188_v63, 7 }
 0x323   : > { %v6172_v61 = vpop.f32.mrb[171].mxu0 }
 0x324   : > { %v9211_v46 = vadd.f32 %v6170_v57, %v6058_v51  ;;  %v6173_v18 = vadd.f32 %v6172_v61, %v6171_v36  ;;  %v3200_v51 = vshll.u32 %v9215_v52, 16  ;;  %v3193_v33 = vor.u32 %v3191_v32, %v3190_v60 }
 0x325   : > { %4521 = vmatmul.mubr.bf16.gmra.mrb[252].mxu1 %v9852_v20  ;;  %v3195_v43 = vrot.slane %v3190_v60, 4 }
 0x326   : > { %v9217_v59 = vadd.f32 %v6173_v18, %v6061_v5  ;;  %6564 = vmatprep.mubr.bf16.mxu1 %v8521_v17  ;;  %v3183_v5 = vshrl.u32 %v2561_v0, 16  ;;  %v3199_v17 = vrot.slane %v3197_v22, 7 }
 0x328   : > { %v6074_v38 = vpop.f32.mrb[148].mxu1  ;;  %4666 = vmatmul.mubr.bf16.gmra.mrb[20].mxu0 %v9065_v1  ;;  %v5389_v30 = vrot.slane %v3183_v5, 11  ;;  %v3202_v9 = vor.u32 %v3200_v51, %v3199_v17 }
 0x329   : > { %v6075_v21 = vpop.f32.mrb[149].mxu1  ;;  %4673 = vmatprep.mubr.bf16.mxu0 %v9852_v20 }
 0x32a   : > { %v6076_v56 = vadd.f32 %v6075_v21, %v6074_v38  ;;  %v6077_v16 = vpop.f32.mrb[150].mxu1  ;;  %v6174_v54 = vpop.f32.mrb[172].mxu0  ;;  %v3194_v3 = vsel %vm7937_vm7, %v5389_v30, %v3193_v33  ;;  %v3203_v15 = vsel %vm7937_vm7, %v3195_v43, %v3202_v9 }
 0x32b   : > { %v6078_v37 = vpop.f32.mrb[151].mxu1  ;;  %v6175_v40 = vpop.f32.mrb[173].mxu0  ;;  %v5441_v20 = vcombine.low %v3194_v3, %v3203_v15 }
 0x32c   : > { %v6079_v1 = vadd.f32 %v6078_v37, %v6077_v16  ;;  %v6176_v26 = vadd.f32 %v6175_v40, %v6174_v54  ;;  %v6177_v45 = vpop.f32.mrb[174].mxu0 }
 0x32d   : > { %v6178_v50 = vpop.f32.mrb[175].mxu0  ;;  %6565 = vmatmul.mubr.bf16.vlgmr.msra.gmra.mrb[0].mxu1 %v8587_v55 }
 0x32e   : > { %v9239_v25 = vadd.f32 %v6176_v26, %v9193_v24  ;;  %v6179_v49 = vadd.f32 %v6178_v50, %v6177_v45  ;;  %6568 = vmatprep.mubr.bf16.mxu1 %v8649_v23 }
 0x330   : > { %v9242_v8 = vadd.f32 %v6179_v49, %v6067_v29  ;;  %4674 = vmatmul.mubr.bf16.gmra.mrb[24].mxu0 %v9105_v4  ;;  %v6080_v34 = vpop.f32.mrb[152].mxu1 }
 0x331   : > { %4681 = vmatprep.mubr.bf16.mxu0 %v5442_v14  ;;  %v6081_v57 = vpop.f32.mrb[153].mxu1 }
 0x332   : > { %v6082_v55 = vadd.f32 %v6081_v57, %v6080_v34  ;;  %v6083_v36 = vpop.f32.mrb[154].mxu1 }
 0x333   : > { %v6180_v24 = vpop.f32.mrb[176].mxu0  ;;  %v6084_v61 = vpop.f32.mrb[155].mxu1 }
 0x334   : > { %v6181_v18 = vpop.f32.mrb[177].mxu0  ;;  %v6085_v23 = vadd.f32 %v6084_v61, %v6083_v36 }
 0x335   : > { %v6182_v29 = vadd.f32 %v6181_v18, %v6180_v24  ;;  %v6183_v0 = vpop.f32.mrb[178].mxu0  ;;  %6569 = vmatmul.mubr.bf16.gmra.mrb[4].mxu1 %v8691_v41 }
 0x336   : > { %v6184_v4 = vpop.f32.mrb[179].mxu0  ;;  %6572 = vmatprep.mubr.bf16.mxu1 %v8732_v6 }
 0x337   : > { %v9252_v38 = vadd.f32 %v6182_v29, %v9205_v42  ;;  %v6185_v44 = vadd.f32 %v6184_v4, %v6183_v0 }
 0x338   : > { %4682 = vmatmul.mubr.bf16.gmra.mrb[28].mxu0 %v5441_v20  ;;  %v6086_v21 = vpop.f32.mrb[156].mxu1 }
 0x339   : > { %v9255_v16 = vadd.f32 %v6185_v44, %v9208_v12  ;;  %v6087_v5 = vpop.f32.mrb[157].mxu1 }
 0x33a   : > { %v6088_v60 = vadd.f32 %v6087_v5, %v6086_v21  ;;  %v6089_v17 = vpop.f32.mrb[158].mxu1 }
 0x33b   : > { %v6186_v54 = vpop.f32.mrb[180].mxu0  ;;  %v6090_v37 = vpop.f32.mrb[159].mxu1 }
 0x33c   : > { %v6187_v40 = vpop.f32.mrb[181].mxu0  ;;  %v6091_v26 = vadd.f32 %v6090_v37, %v6089_v17  ;;  %v3205_v37 = vrot.slane %v3191_v32, 5 }
 0x33d   : > { %v6188_v41 = vadd.f32 %v6187_v40, %v6186_v54  ;;  %v6189_v45 = vpop.f32.mrb[182].mxu0  ;;  %6573 = vmatmul.mubr.bf16.gmra.mrb[8].mxu1 %v8771_v39  ;;  %v3208_v40 = vrot.slane %v3200_v51, 5 }
 0x33e   : > { %v6190_v6 = vpop.f32.mrb[183].mxu0  ;;  %6576 = vmatprep.mubr.bf16.mxu1 %v8813_v2 }
 0x33f   : > { %v9259_v42 = vadd.f32 %v6188_v41, %v6076_v56  ;;  %v6191_v14 = vadd.f32 %v6190_v6, %v6189_v45  ;;  %v2564_v41 = vld [vmem:[#allocation2 + $0x11c] sm:$0x1] }
 0x340   : > { %v6092_v50 = vpop.f32.mrb[160].mxu1  ;;  %v3214_v32 = vshll.u32 %v2564_v41, 16 }
 0x341   : > { %v9261_v12 = vadd.f32 %v6191_v14, %v6079_v1  ;;  %v6093_v30 = vpop.f32.mrb[161].mxu1 }
 0x342   : > { %v6094_v33 = vadd.f32 %v6093_v30, %v6092_v50  ;;  %v6095_v43 = vpop.f32.mrb[162].mxu1 }
 0x343   : > { %v6192_v9 = vpop.f32.mrb[184].mxu0  ;;  %v6096_v49 = vpop.f32.mrb[163].mxu1 }
 0x344   : > { %v6193_v34 = vpop.f32.mrb[185].mxu0  ;;  %v6097_v3 = vadd.f32 %v6096_v49, %v6095_v43 }
 0x345   : > { %v6194_v15 = vadd.f32 %v6193_v34, %v6192_v9  ;;  %v6195_v57 = vpop.f32.mrb[186].mxu0  ;;  %6577 = vmatmul.mubr.bf16.gmra.mrb[12].mxu1 %v9839_v28 }
 0x346   : > { %v6196_v39 = vpop.f32.mrb[187].mxu0  ;;  %6580 = vmatprep.mubr.bf16.mxu1 %v9842_v31 }
 0x347   : > { %v9265_v2 = vadd.f32 %v6194_v15, %v6082_v55  ;;  %v6197_v56 = vadd.f32 %v6196_v39, %v6195_v57  ;;  %v3216_v57 = vrot.slane %v3214_v32, 5 }
 0x348   : > { %v6098_v36 = vpop.f32.mrb[164].mxu1 }
 0x349   : > { %v9267_v1 = vadd.f32 %v6197_v56, %v6085_v23  ;;  %v6099_v24 = vpop.f32.mrb[165].mxu1  ;;  %v3204_v23 = vrot.slane %v3188_v63, 4 }
 0x34a   : > { %v6100_v61 = vadd.f32 %v6099_v24, %v6098_v36  ;;  %v6101_v18 = vpop.f32.mrb[166].mxu1 }
 0x34b   : > { %v6198_v20 = vpop.f32.mrb[188].mxu0  ;;  %v6102_v29 = vpop.f32.mrb[167].mxu1  ;;  %v3206_v30 = vor.u32 %v3205_v37, %v3204_v23 }
 0x34c   : > { %v6199_v0 = vpop.f32.mrb[189].mxu0  ;;  %v6103_v4 = vadd.f32 %v6102_v29, %v6101_v18 }
 0x34d   : > { %v6200_v44 = vadd.f32 %v6199_v0, %v6198_v20  ;;  %v6201_v21 = vpop.f32.mrb[190].mxu0  ;;  %6581 = vmatmul.mubr.bf16.gmra.mrb[16].mxu1 %v8989_v11  ;;  %v3210_v11 = vrot.slane %v3197_v22, 4  ;;  %v3207_v34 = vrot.slane %v3206_v30, 4 }
 0x34e   : > { %v6202_v28 = vpop.f32.mrb[191].mxu0  ;;  %6584 = vmatprep.mubr.bf16.mxu1 %v9043_v62 }
 0x34f   : > { %v9271_v31 = vadd.f32 %v6200_v44, %v6088_v60  ;;  %v6203_v55 = vadd.f32 %v6202_v28, %v6201_v21  ;;  %v3211_v53 = vor.u32 %v3210_v11, %v3208_v40 }
 0x350   : > { %v6104_v5 = vpop.f32.mrb[168].mxu1 }
 0x351   : > { %v9275_v17 = vadd.f32 %v6203_v55, %v6091_v26  ;;  %v6105_v54 = vpop.f32.mrb[169].mxu1  ;;  %v3212_v15 = vrot.slane %v3211_v53, 4 }
 0x352   : > { %v6106_v62 = vadd.f32 %v6105_v54, %v6104_v5  ;;  %v6107_v60 = vpop.f32.mrb[170].mxu1 }
 0x353   : > { %v6204_v45 = vpop.f32.mrb[192].mxu0  ;;  %v6108_v6 = vpop.f32.mrb[171].mxu1 }
 0x354   : > { %v6205_v14 = vpop.f32.mrb[193].mxu0  ;;  %v6109_v50 = vadd.f32 %v6108_v6, %v6107_v60 }
 0x355   : > { %v6206_v63 = vadd.f32 %v6205_v14, %v6204_v45  ;;  %v6207_v26 = vpop.f32.mrb[194].mxu0  ;;  %6585 = vmatmul.mubr.bf16.gmra.mrb[20].mxu1 %v9072_v47 }
 0x356   : > { %v6208_v43 = vpop.f32.mrb[195].mxu0  ;;  %6588 = vmatprep.mubr.bf16.mxu1 %v9097_v19  ;;  %v3209_v19 = vsel %vm8013_vm12, %v3207_v34, %v3208_v40 }
 0x357   : > { %v9285_v51 = vadd.f32 %v6206_v63, %v6094_v33  ;;  %v6209_v52 = vadd.f32 %v6208_v43, %v6207_v26  ;;  %v3217_v33 = vsel %vm8013_vm12, %v3212_v15, %v3216_v57 }
 0x358   : > { %v6110_v22 = vpop.f32.mrb[172].mxu1  ;;  %v5443_v28 = vcombine.low %v3209_v19, %v3217_v33 }
 0x359   : > { %v9287_v9 = vadd.f32 %v6209_v52, %v6097_v3  ;;  %v6111_v49 = vpop.f32.mrb[173].mxu1 }
 0x35a   : > { %v6112_v39 = vadd.f32 %v6111_v49, %v6110_v22  ;;  %v6113_v56 = vpop.f32.mrb[174].mxu1 }
 0x35b   : > { %v6210_v36 = vpop.f32.mrb[196].mxu0  ;;  %v6114_v47 = vpop.f32.mrb[175].mxu1 }
 0x35c   : > { %v6211_v24 = vpop.f32.mrb[197].mxu0  ;;  %v6115_v18 = vadd.f32 %v6114_v47, %v6113_v56 }
 0x35d   : > { %v6212_v20 = vadd.f32 %v6211_v24, %v6210_v36  ;;  %v6213_v29 = vpop.f32.mrb[198].mxu0  ;;  %6589 = vmatmul.mubr.bf16.gmra.mrb[24].mxu1 %v9120_v13 }
 0x35e   : > { %v6214_v3 = vpop.f32.mrb[199].mxu0  ;;  %6592 = vmatprep.mubr.bf16.mxu1 %v9050_v27 }
 0x35f   : > { %v9295_v0 = vadd.f32 %v6212_v20, %v6100_v61  ;;  %v6215_v44 = vadd.f32 %v6214_v3, %v6213_v29 }
 0x360   : > { %v6116_v21 = vpop.f32.mrb[176].mxu1 }
 0x361   : > { %v9297_v55 = vadd.f32 %v6215_v44, %v6103_v4  ;;  %v6117_v5 = vpop.f32.mrb[177].mxu1 }
 0x362   : > { %v6118_v23 = vadd.f32 %v6117_v5, %v6116_v21  ;;  %v6119_v54 = vpop.f32.mrb[178].mxu1 }
 0x363   : > { %v6216_v13 = vpop.f32.mrb[200].mxu0  ;;  %v6120_v37 = vpop.f32.mrb[179].mxu1 }
 0x364   : > { %v6217_v11 = vpop.f32.mrb[201].mxu0  ;;  %v6121_v40 = vadd.f32 %v6120_v37, %v6119_v54 }
 0x365   : > { %v6218_v60 = vadd.f32 %v6217_v11, %v6216_v13  ;;  %v6219_v10 = vpop.f32.mrb[202].mxu0  ;;  %6593 = vmatmul.mubr.bf16.gmra.mrb[28].mxu1 %v5443_v28 }
 0x366   : > { %v6220_v41 = vpop.f32.mrb[203].mxu0 }
 0x367   : > { %v9299_v45 = vadd.f32 %v6218_v60, %v6106_v62  ;;  %v6221_v27 = vadd.f32 %v6220_v41, %v6219_v10 }
 0x368   : > { %v6122_v61 = vpop.f32.mrb[180].mxu1 }
 0x369   : > { %v9301_v6 = vadd.f32 %v6221_v27, %v6109_v50  ;;  %v6123_v14 = vpop.f32.mrb[181].mxu1 }
 0x36a   : > { %v6124_v4 = vadd.f32 %v6123_v14, %v6122_v61  ;;  %v6125_v63 = vpop.f32.mrb[182].mxu1 }
 0x36b   : > { %v6222_v26 = vpop.f32.mrb[204].mxu0  ;;  %v6126_v30 = vpop.f32.mrb[183].mxu1 }
 0x36c   : > { %v6223_v53 = vpop.f32.mrb[205].mxu0  ;;  %v6127_v32 = vadd.f32 %v6126_v30, %v6125_v63 }
 0x36d   : > { %v6224_v43 = vadd.f32 %v6223_v53, %v6222_v26  ;;  %v6225_v52 = vpop.f32.mrb[206].mxu0 }
 0x36e   : > { %v6226_v22 = vpop.f32.mrb[207].mxu0 }
 0x36f   : > { %v9303_v49 = vadd.f32 %v6224_v43, %v6112_v39  ;;  %v6227_v34 = vadd.f32 %v6226_v22, %v6225_v52 }
 0x370   : > { %v6128_v15 = vpop.f32.mrb[184].mxu1 }
 0x371   : > { %v9305_v62 = vadd.f32 %v6227_v34, %v6115_v18  ;;  %v6129_v57 = vpop.f32.mrb[185].mxu1 }
 0x372   : > { %v6130_v56 = vadd.f32 %v6129_v57, %v6128_v15  ;;  %v6131_v50 = vpop.f32.mrb[186].mxu1 }
 0x373   : > { %v6228_v36 = vpop.f32.mrb[208].mxu0  ;;  %v6132_v47 = vpop.f32.mrb[187].mxu1 }
 0x374   : > { %v6229_v24 = vpop.f32.mrb[209].mxu0  ;;  %v6133_v20 = vadd.f32 %v6132_v47, %v6131_v50 }
 0x375   : > { %v6230_v29 = vadd.f32 %v6229_v24, %v6228_v36  ;;  %v6231_v19 = vpop.f32.mrb[210].mxu0 }
 0x376   : > { %v6232_v33 = vpop.f32.mrb[211].mxu0 }
 0x377   : > { %v9307_v3 = vadd.f32 %v6230_v29, %v6118_v23  ;;  %v6233_v44 = vadd.f32 %v6232_v33, %v6231_v19 }
 0x378   : > { %v6134_v21 = vpop.f32.mrb[188].mxu1 }
 0x379   : > { %v9309_v39 = vadd.f32 %v6233_v44, %v6121_v40  ;;  %v6135_v28 = vpop.f32.mrb[189].mxu1 }
 0x37a   : > { %v6136_v5 = vadd.f32 %v6135_v28, %v6134_v21  ;;  %v6137_v18 = vpop.f32.mrb[190].mxu1 }
 0x37b   : > { %v6234_v54 = vpop.f32.mrb[212].mxu0  ;;  %v6138_v13 = vpop.f32.mrb[191].mxu1 }
 0x37c   : > { %v6235_v37 = vpop.f32.mrb[213].mxu0  ;;  %v6139_v11 = vadd.f32 %v6138_v13, %v6137_v18 }
 0x37d   : > { %v6236_v60 = vadd.f32 %v6235_v37, %v6234_v54  ;;  %v6237_v10 = vpop.f32.mrb[214].mxu0 }
 0x37e   : > { %v6238_v41 = vpop.f32.mrb[215].mxu0 }
 0x37f   : > { %v9311_v27 = vadd.f32 %v6236_v60, %v6124_v4  ;;  %v6239_v61 = vadd.f32 %v6238_v41, %v6237_v10 }
 0x380   : > { %v6268_v14 = vpop.f32.mrb[192].mxu1 }
 0x381   : > { %v9313_v23 = vadd.f32 %v6239_v61, %v6127_v32  ;;  %v6269_v63 = vpop.f32.mrb[193].mxu1 }
 0x382   : > { %v6270_v26 = vadd.f32 %v6269_v63, %v6268_v14  ;;  %v6271_v40 = vpop.f32.mrb[194].mxu1 }
 0x383   : > { %v6240_v30 = vpop.f32.mrb[216].mxu0  ;;  %v6272_v53 = vpop.f32.mrb[195].mxu1 }
 0x384   : > { %v6241_v43 = vpop.f32.mrb[217].mxu0  ;;  %v4403_v52 = vadd.f32 %v6270_v26, %v9180_v35  ;;  %v6273_v22 = vadd.f32 %v6272_v53, %v6271_v40 }
 0x385   : > { %v6242_v34 = vadd.f32 %v6241_v43, %v6240_v30  ;;  %v6243_v15 = vpop.f32.mrb[218].mxu0 }
 0x386   : > { %v6244_v57 = vpop.f32.mrb[219].mxu0  ;;  %v4406_v50 = vadd.f32 %v6273_v22, %v9185_v58 }
 0x387   : > { %v9317_v4 = vadd.f32 %v6242_v34, %v6130_v56  ;;  %v6245_v36 = vadd.f32 %v6244_v57, %v6243_v15 }
 0x388   : > { %v6274_v47 = vpop.f32.mrb[196].mxu1 }
 0x389   : > { %v9319_v32 = vadd.f32 %v6245_v36, %v6133_v20  ;;  %v6275_v24 = vpop.f32.mrb[197].mxu1 }
 0x38a   : > { %v6276_v29 = vadd.f32 %v6275_v24, %v6274_v47  ;;  %v6277_v19 = vpop.f32.mrb[198].mxu1 }
 0x38b   : > { %v6246_v33 = vpop.f32.mrb[220].mxu0  ;;  %v6278_v44 = vpop.f32.mrb[199].mxu1 }
 0x38c   : > { %v6247_v21 = vpop.f32.mrb[221].mxu0  ;;  %v4411_v35 = vadd.f32 %v6276_v29, %v9196_v48  ;;  %v6279_v28 = vadd.f32 %v6278_v44, %v6277_v19 }
 0x38d   : > { %v6248_v18 = vadd.f32 %v6247_v21, %v6246_v33  ;;  %v6249_v54 = vpop.f32.mrb[222].mxu0 }
 0x38e   : > { %v6250_v13 = vpop.f32.mrb[223].mxu0  ;;  %v4414_v58 = vadd.f32 %v6279_v28, %v9200_v7 }
 0x38f   : > { %v9323_v56 = vadd.f32 %v6248_v18, %v6136_v5  ;;  %v6251_v37 = vadd.f32 %v6250_v13, %v6249_v54 }
 0x390   : > { %v6280_v60 = vpop.f32.mrb[200].mxu1 }
 0x391   : > { %v9325_v20 = vadd.f32 %v6251_v37, %v6139_v11  ;;  %v6281_v10 = vpop.f32.mrb[201].mxu1 }
 0x392   : > { %v6282_v41 = vadd.f32 %v6281_v10, %v6280_v60  ;;  %v6283_v61 = vpop.f32.mrb[202].mxu1 }
 0x393   : > { %v6380_v14 = vpop.f32.mrb[224].mxu0  ;;  %v6284_v63 = vpop.f32.mrb[203].mxu1 }
 0x394   : > { %v6381_v26 = vpop.f32.mrb[225].mxu0  ;;  %v4419_v48 = vadd.f32 %v6282_v41, %v9211_v46  ;;  %v6285_v40 = vadd.f32 %v6284_v63, %v6283_v61 }
 0x395   : > { %v6382_v30 = vadd.f32 %v6381_v26, %v6380_v14  ;;  %v6383_v53 = vpop.f32.mrb[226].mxu0 }
 0x396   : > { %v6384_v43 = vpop.f32.mrb[227].mxu0  ;;  %v4422_v7 = vadd.f32 %v6285_v40, %v9217_v59 }
 0x397   : > { %v6385_v5 = vadd.f32 %v6384_v43, %v6383_v53  ;;  %v9329_v22 = vadd.f32 %v6382_v30, %v4403_v52 }
 0x398   : > { %v6286_v34 = vpop.f32.mrb[204].mxu1 }
 0x399   : > { %v6287_v11 = vpop.f32.mrb[205].mxu1  ;;  %v9331_v15 = vadd.f32 %v6385_v5, %v4406_v50 }
 0x39a   : > { %v6288_v57 = vadd.f32 %v6287_v11, %v6286_v34  ;;  %v6289_v36 = vpop.f32.mrb[206].mxu1 }
 0x39b   : > { %v6386_v47 = vpop.f32.mrb[228].mxu0  ;;  %v6290_v24 = vpop.f32.mrb[207].mxu1 }
 0x39c   : > { %v6387_v29 = vpop.f32.mrb[229].mxu0  ;;  %v4427_v46 = vadd.f32 %v6288_v57, %v9239_v25  ;;  %v6291_v19 = vadd.f32 %v6290_v24, %v6289_v36 }
 0x39d   : > { %v6388_v33 = vadd.f32 %v6387_v29, %v6386_v47  ;;  %v6389_v44 = vpop.f32.mrb[230].mxu0 }
 0x39e   : > { %v6390_v21 = vpop.f32.mrb[231].mxu0  ;;  %v4430_v59 = vadd.f32 %v6291_v19, %v9242_v8 }
 0x39f   : > { %v6391_v28 = vadd.f32 %v6390_v21, %v6389_v44  ;;  %v9335_v52 = vadd.f32 %v6388_v33, %v4411_v35 }
 0x3a0   : > { %v6292_v18 = vpop.f32.mrb[208].mxu1 }
 0x3a1   : > { %v6293_v54 = vpop.f32.mrb[209].mxu1  ;;  %v9337_v50 = vadd.f32 %v6391_v28, %v4414_v58 }
 0x3a2   : > { %v6294_v13 = vadd.f32 %v6293_v54, %v6292_v18  ;;  %v6295_v37 = vpop.f32.mrb[210].mxu1 }
 0x3a3   : > { %v6392_v60 = vpop.f32.mrb[232].mxu0  ;;  %v6296_v10 = vpop.f32.mrb[211].mxu1 }
 0x3a4   : > { %v6393_v41 = vpop.f32.mrb[233].mxu0  ;;  %v4435_v25 = vadd.f32 %v6294_v13, %v9252_v38  ;;  %v6297_v61 = vadd.f32 %v6296_v10, %v6295_v37 }
 0x3a5   : > { %v6394_v14 = vadd.f32 %v6393_v41, %v6392_v60  ;;  %v6395_v63 = vpop.f32.mrb[234].mxu0 }
 0x3a6   : > { %v6396_v26 = vpop.f32.mrb[235].mxu0  ;;  %v4438_v8 = vadd.f32 %v6297_v61, %v9255_v16 }
 0x3a7   : > { %v6397_v40 = vadd.f32 %v6396_v26, %v6395_v63  ;;  %v9341_v35 = vadd.f32 %v6394_v14, %v4419_v48 }
 0x3a8   : > { %v6298_v30 = vpop.f32.mrb[212].mxu1 }
 0x3a9   : > { %v6299_v53 = vpop.f32.mrb[213].mxu1  ;;  %v9343_v58 = vadd.f32 %v6397_v40, %v4422_v7 }
 0x3aa   : > { %v6300_v43 = vadd.f32 %v6299_v53, %v6298_v30  ;;  %v6301_v5 = vpop.f32.mrb[214].mxu1 }
 0x3ab   : > { %v6398_v34 = vpop.f32.mrb[236].mxu0  ;;  %v6302_v11 = vpop.f32.mrb[215].mxu1 }
 0x3ac   : > { %v6399_v57 = vpop.f32.mrb[237].mxu0  ;;  %v4443_v38 = vadd.f32 %v6300_v43, %v9259_v42  ;;  %v6303_v36 = vadd.f32 %v6302_v11, %v6301_v5 }
 0x3ad   : > { %v6400_v47 = vadd.f32 %v6399_v57, %v6398_v34  ;;  %v6401_v24 = vpop.f32.mrb[238].mxu0 }
 0x3ae   : > { %v6402_v29 = vpop.f32.mrb[239].mxu0  ;;  %v4446_v16 = vadd.f32 %v6303_v36, %v9261_v12 }
 0x3af   : > { %v6403_v19 = vadd.f32 %v6402_v29, %v6401_v24  ;;  %v9347_v48 = vadd.f32 %v6400_v47, %v4427_v46 }
 0x3b0   : > { %v6304_v33 = vpop.f32.mrb[216].mxu1 }
 0x3b1   : > { %v6305_v44 = vpop.f32.mrb[217].mxu1  ;;  %v9349_v7 = vadd.f32 %v6403_v19, %v4430_v59 }
 0x3b2   : > { %v6306_v21 = vadd.f32 %v6305_v44, %v6304_v33  ;;  %v6307_v28 = vpop.f32.mrb[218].mxu1 }
 0x3b3   : > { %v6404_v18 = vpop.f32.mrb[240].mxu0  ;;  %v6308_v54 = vpop.f32.mrb[219].mxu1 }
 0x3b4   : > { %v6405_v13 = vpop.f32.mrb[241].mxu0  ;;  %v4451_v42 = vadd.f32 %v6306_v21, %v9265_v2  ;;  %v6309_v37 = vadd.f32 %v6308_v54, %v6307_v28 }
 0x3b5   : > { %v6406_v60 = vadd.f32 %v6405_v13, %v6404_v18  ;;  %v6407_v10 = vpop.f32.mrb[242].mxu0 }
 0x3b6   : > { %v6408_v41 = vpop.f32.mrb[243].mxu0  ;;  %v4454_v12 = vadd.f32 %v6309_v37, %v9267_v1 }
 0x3b7   : > { %v6409_v61 = vadd.f32 %v6408_v41, %v6407_v10  ;;  %v9353_v46 = vadd.f32 %v6406_v60, %v4435_v25 }
 0x3b8   : > { %v6310_v14 = vpop.f32.mrb[220].mxu1 }
 0x3b9   : > { %v6311_v63 = vpop.f32.mrb[221].mxu1  ;;  %v9355_v59 = vadd.f32 %v6409_v61, %v4438_v8 }
 0x3ba   : > { %v6312_v26 = vadd.f32 %v6311_v63, %v6310_v14  ;;  %v6313_v40 = vpop.f32.mrb[222].mxu1 }
 0x3bb   : > { %v6410_v30 = vpop.f32.mrb[244].mxu0  ;;  %v6314_v53 = vpop.f32.mrb[223].mxu1 }
 0x3bc   : > { %v6411_v43 = vpop.f32.mrb[245].mxu0  ;;  %v4459_v2 = vadd.f32 %v6312_v26, %v9271_v31  ;;  %v6315_v5 = vadd.f32 %v6314_v53, %v6313_v40 }
 0x3bd   : > { %v6412_v34 = vadd.f32 %v6411_v43, %v6410_v30  ;;  %v6413_v11 = vpop.f32.mrb[246].mxu0 }
 0x3be   : > { %v6414_v57 = vpop.f32.mrb[247].mxu0  ;;  %v4462_v1 = vadd.f32 %v6315_v5, %v9275_v17 }
 0x3bf   : > { %v6415_v36 = vadd.f32 %v6414_v57, %v6413_v11  ;;  %v9359_v25 = vadd.f32 %v6412_v34, %v4443_v38 }
 0x3c0   : > { %v6316_v47 = vpop.f32.mrb[224].mxu1 }
 0x3c1   : > { %v6317_v24 = vpop.f32.mrb[225].mxu1  ;;  %v9361_v8 = vadd.f32 %v6415_v36, %v4446_v16 }
 0x3c2   : > { %v6318_v29 = vadd.f32 %v6317_v24, %v6316_v47  ;;  %v6319_v19 = vpop.f32.mrb[226].mxu1 }
 0x3c3   : > { %v6416_v33 = vpop.f32.mrb[248].mxu0  ;;  %v6320_v44 = vpop.f32.mrb[227].mxu1 }
 0x3c4   : > { %v6417_v21 = vpop.f32.mrb[249].mxu0  ;;  %v4467_v31 = vadd.f32 %v6318_v29, %v9285_v51  ;;  %v6321_v28 = vadd.f32 %v6320_v44, %v6319_v19 }
 0x3c5   : > { %v6418_v18 = vadd.f32 %v6417_v21, %v6416_v33  ;;  %v6419_v54 = vpop.f32.mrb[250].mxu0 }
 0x3c6   : > { %v6420_v13 = vpop.f32.mrb[251].mxu0  ;;  %v4470_v17 = vadd.f32 %v6321_v28, %v9287_v9 }
 0x3c7   : > { %v6421_v37 = vadd.f32 %v6420_v13, %v6419_v54  ;;  %v9365_v38 = vadd.f32 %v6418_v18, %v4451_v42 }
 0x3c8   : > { %v6322_v60 = vpop.f32.mrb[228].mxu1 }
 0x3c9   : > { %v6323_v10 = vpop.f32.mrb[229].mxu1  ;;  %v9367_v16 = vadd.f32 %v6421_v37, %v4454_v12 }
 0x3ca   : > { %v6324_v41 = vadd.f32 %v6323_v10, %v6322_v60  ;;  %v6325_v61 = vpop.f32.mrb[230].mxu1 }
 0x3cb   : > { %v6422_v14 = vpop.f32.mrb[252].mxu0  ;;  %v6326_v63 = vpop.f32.mrb[231].mxu1 }
 0x3cc   : > { %v6423_v26 = vpop.f32.mrb[253].mxu0  ;;  %v4475_v51 = vadd.f32 %v6324_v41, %v9295_v0  ;;  %v6327_v40 = vadd.f32 %v6326_v63, %v6325_v61 }
 0x3cd   : > { %v6424_v30 = vadd.f32 %v6423_v26, %v6422_v14  ;;  %v6425_v53 = vpop.f32.mrb[254].mxu0 }
 0x3ce   : > { %v6426_v43 = vpop.f32.mrb[255].mxu0  ;;  %v4478_v9 = vadd.f32 %v6327_v40, %v9297_v55 }
 0x3cf   : > { %v6427_v5 = vadd.f32 %v6426_v43, %v6425_v53  ;;  %v9371_v42 = vadd.f32 %v6424_v30, %v4459_v2 }
 0x3d0   : > { %v6328_v34 = vpop.f32.mrb[232].mxu1 }
 0x3d1   : > { %v6329_v11 = vpop.f32.mrb[233].mxu1  ;;  %v9373_v12 = vadd.f32 %v6427_v5, %v4462_v1 }
 0x3d2   : > { %v6330_v57 = vadd.f32 %v6329_v11, %v6328_v34  ;;  %v6331_v36 = vpop.f32.mrb[234].mxu1 }
 0x3d3   : > { %v6428_v47 = vpop.f32.mrb[0].mxu0  ;;  %v6332_v24 = vpop.f32.mrb[235].mxu1 }
 0x3d4   : > { %v6429_v29 = vpop.f32.mrb[1].mxu0  ;;  %v4483_v0 = vadd.f32 %v6330_v57, %v9299_v45  ;;  %v6333_v19 = vadd.f32 %v6332_v24, %v6331_v36 }
 0x3d5   : > { %v6430_v33 = vadd.f32 %v6429_v29, %v6428_v47  ;;  %v6431_v44 = vpop.f32.mrb[2].mxu0 }
 0x3d6   : > { %v6432_v21 = vpop.f32.mrb[3].mxu0  ;;  %v4486_v55 = vadd.f32 %v6333_v19, %v9301_v6 }
 0x3d7   : > { %v6433_v28 = vadd.f32 %v6432_v21, %v6431_v44  ;;  %v9377_v2 = vadd.f32 %v6430_v33, %v4467_v31 }
 0x3d8   : > { %v6334_v18 = vpop.f32.mrb[236].mxu1 }
 0x3d9   : > { %v6335_v54 = vpop.f32.mrb[237].mxu1  ;;  %v9379_v1 = vadd.f32 %v6433_v28, %v4470_v17 }
 0x3da   : > { %v6336_v13 = vadd.f32 %v6335_v54, %v6334_v18  ;;  %v6337_v37 = vpop.f32.mrb[238].mxu1 }
 0x3db   : > { %v6434_v60 = vpop.f32.mrb[4].mxu0  ;;  %v6338_v10 = vpop.f32.mrb[239].mxu1 }
 0x3dc   : > { %v6435_v41 = vpop.f32.mrb[5].mxu0  ;;  %v4491_v45 = vadd.f32 %v6336_v13, %v9303_v49  ;;  %v6339_v61 = vadd.f32 %v6338_v10, %v6337_v37 }
 0x3dd   : > { %v6436_v14 = vadd.f32 %v6435_v41, %v6434_v60  ;;  %v6437_v63 = vpop.f32.mrb[6].mxu0 }
 0x3de   : > { %v6438_v26 = vpop.f32.mrb[7].mxu0  ;;  %v4494_v6 = vadd.f32 %v6339_v61, %v9305_v62 }
 0x3df   : > { %v6439_v40 = vadd.f32 %v6438_v26, %v6437_v63  ;;  %v9383_v31 = vadd.f32 %v6436_v14, %v4475_v51 }
 0x3e0   : > { %v6340_v30 = vpop.f32.mrb[240].mxu1 }
 0x3e1   : > { %v6341_v53 = vpop.f32.mrb[241].mxu1  ;;  %v9385_v17 = vadd.f32 %v6439_v40, %v4478_v9 }
 0x3e2   : > { %v6342_v43 = vadd.f32 %v6341_v53, %v6340_v30  ;;  %v6343_v5 = vpop.f32.mrb[242].mxu1 }
 0x3e3   : > { %v6440_v34 = vpop.f32.mrb[8].mxu0  ;;  %v6344_v11 = vpop.f32.mrb[243].mxu1 }
 0x3e4   : > { %v6441_v57 = vpop.f32.mrb[9].mxu0  ;;  %v4499_v49 = vadd.f32 %v6342_v43, %v9307_v3  ;;  %v6345_v36 = vadd.f32 %v6344_v11, %v6343_v5 }
 0x3e5   : > { %v6442_v47 = vadd.f32 %v6441_v57, %v6440_v34  ;;  %v6443_v24 = vpop.f32.mrb[10].mxu0 }
 0x3e6   : > { %v6444_v29 = vpop.f32.mrb[11].mxu0  ;;  %v4502_v62 = vadd.f32 %v6345_v36, %v9309_v39 }
 0x3e7   : > { %v6445_v19 = vadd.f32 %v6444_v29, %v6443_v24  ;;  %v9389_v51 = vadd.f32 %v6442_v47, %v4483_v0 }
 0x3e8   : > { %v6346_v33 = vpop.f32.mrb[244].mxu1 }
 0x3e9   : > { %v6347_v44 = vpop.f32.mrb[245].mxu1  ;;  %v9391_v9 = vadd.f32 %v6445_v19, %v4486_v55 }
 0x3ea   : > { %v6348_v21 = vadd.f32 %v6347_v44, %v6346_v33  ;;  %v6349_v28 = vpop.f32.mrb[246].mxu1 }
 0x3eb   : > { %v6446_v18 = vpop.f32.mrb[12].mxu0  ;;  %v6350_v54 = vpop.f32.mrb[247].mxu1 }
 0x3ec   : > { %v6447_v13 = vpop.f32.mrb[13].mxu0  ;;  %v4507_v3 = vadd.f32 %v6348_v21, %v9311_v27  ;;  %v6351_v37 = vadd.f32 %v6350_v54, %v6349_v28 }
 0x3ed   : > { %v6448_v60 = vadd.f32 %v6447_v13, %v6446_v18  ;;  %v6449_v10 = vpop.f32.mrb[14].mxu0  ;;  %v6801_v13 = vld [vmem:[%s7100_s21 + $0x30] sm:$0xff] }
 0x3ee   : > { %v6450_v41 = vpop.f32.mrb[15].mxu0  ;;  %v4510_v39 = vadd.f32 %v6351_v37, %v9313_v23  ;;  %v4981_v37 = vrot.slane %v6801_v13, 1 }
 0x3ef   : > { %v6451_v61 = vadd.f32 %v6450_v41, %v6449_v10  ;;  %v9395_v0 = vadd.f32 %v6448_v60, %v4491_v45  ;;  %v6802_v60 = vld [vmem:[%s7100_s21 + $0x38] sm:$0xff] }
 0x3f0   : > { %v6352_v14 = vpop.f32.mrb[248].mxu1  ;;  %v4982_v10 = vrot.slane %v6802_v60, 1 }
 0x3f1   : > { %v6353_v63 = vpop.f32.mrb[249].mxu1  ;;  %v9397_v55 = vadd.f32 %v6451_v61, %v4494_v6 }
 0x3f2   : > { %v6354_v26 = vadd.f32 %v6353_v63, %v6352_v14  ;;  %v6355_v40 = vpop.f32.mrb[250].mxu1  ;;  %v9423_v14 = vld [vmem:[%s9719_s5] ss:$0 sm:$0xff] }
 0x3f3   : > { %v6452_v30 = vpop.f32.mrb[16].mxu0  ;;  %v6356_v53 = vpop.f32.mrb[251].mxu1 }
 0x3f4   : > { %v6453_v43 = vpop.f32.mrb[17].mxu0  ;;  %v9400_v27 = vadd.f32 %v6354_v26, %v9317_v4  ;;  %v6357_v5 = vadd.f32 %v6356_v53, %v6355_v40  ;;  %v6805_v40 = vld [vmem:[%s7100_s21 + $0x20] sm:$0xff]  ;;  %v6806_v53 = vld [vmem:[%s7100_s21 + $0x28] sm:$0x3] }
 0x3f5   : > { %v6454_v34 = vadd.f32 %v6453_v43, %v6452_v30  ;;  %v6455_v11 = vpop.f32.mrb[18].mxu0  ;;  %v4977_v30 = vrot.slane %v6805_v40, 1  ;;  %v4979_v43 = vrot.slane %v6806_v53, 1 }
 0x3f6   : > { %v6456_v57 = vpop.f32.mrb[19].mxu0  ;;  %v9403_v23 = vadd.f32 %v6357_v5, %v9319_v32 }
 0x3f7   : > { %v6457_v45 = vadd.f32 %v6456_v57, %v6455_v11  ;;  %v9405_v36 = vadd.f32 %v6454_v34, %v4499_v49  ;;  %v9432_v11 = vld [vmem:[%s7100_s21 + $0x58] sm:$0x3]  ;;  %v4980_v60 = vsel %vm613_vm0, %v4977_v30, %v4979_v43 }
 0x3f8   : > { %v6358_v6 = vpop.f32.mrb[252].mxu1  ;;  %v4989_v57 = vrot.slane %v9432_v11, 1 }
 0x3f9   : > { %v6359_v47 = vpop.f32.mrb[253].mxu1  ;;  %v9407_v24 = vadd.f32 %v6457_v45, %v4502_v62  ;;  %v9439_v45 = vld [vmem:[%s9720_s6] ss:$0 sm:$0xff] }
 0x3fa   : > { %v6360_v29 = vadd.f32 %v6359_v47, %v6358_v6  ;;  %v6361_v19 = vpop.f32.mrb[254].mxu1 }
 0x3fb   : > { %v6458_v4 = vpop.f32.mrb[20].mxu0  ;;  %v6362_v33 = vpop.f32.mrb[255].mxu1 }
 0x3fc   : > { %v6459_v44 = vpop.f32.mrb[21].mxu0  ;;  %v9410_v21 = vadd.f32 %v6360_v29, %v9323_v56  ;;  %v6363_v32 = vadd.f32 %v6362_v33, %v6361_v19  ;;  %v6803_v56 = vld [vmem:[%s7100_s21 + $0x40] sm:$0x3]  ;;  %v6808_v29 = vld [vmem:[%s7100_s21 + $0x70] sm:$0x3] }
 0x3fd   : > { %v6460_v28 = vadd.f32 %v6459_v44, %v6458_v4  ;;  %v6461_v49 = vpop.f32.mrb[22].mxu0  ;;  %v4984_v61 = vrot.slane %v6803_v56, 1  ;;  %v4994_v19 = vrot.slane %v6808_v29, 1  ;;  %v4983_v4 = vsel %vm613_vm0, %v4981_v37, %v4982_v10 }
 0x3fe   : > { %v6462_v18 = vpop.f32.mrb[23].mxu0  ;;  %v9413_v54 = vadd.f32 %v6363_v32, %v9325_v20  ;;  %v6804_v20 = vld [vmem:[%s7100_s21 + $0x18] sm:$0xff] }
 0x3ff   : > { %v6463_v62 = vadd.f32 %v6462_v18, %v6461_v49  ;;  %v9417_v41 = vadd.f32 %v6460_v28, %v4507_v3  ;;  %v4976_v26 = vrot.slane %v6804_v20, 1  ;;  %v6810_v20 = vld [vmem:[%s7100_s21 + $0x68] sm:$0xff] }
 0x400   : > { %v6566_v63 = vpop.f32.mrb[0].mxu1 }
 0x401   : > { %v4733_v5 = vadd.f32 %v6566_v63, %v9335_v52  ;;  %v4724_v3 = vpop.f32.mrb[1].mxu1  ;;  %v9429_v34 = vadd.f32 %v6463_v62, %v4510_v39  ;;  %v4978_v49 = vsel %vm613_vm0, %v4976_v26, %v4977_v30  ;;  %v4992_v26 = vrot.slane %v6810_v20, 1 }
 0x402   : > { %v4725_v6 = vadd.f32 %v4724_v3, %v9329_v22  ;;  %v6567_v47 = vpop.f32.mrb[2].mxu1  ;;  %v4985_v22 = vsel %vm613_vm0, %v4982_v10, %v4984_v61  ;;  %v6809_v61 = vld [vmem:[%s7100_s21 + $0x60] sm:$0xff] }
 0x403   : > { %v6464_v52 = vpop.f32.mrb[24].mxu0  ;;  %v4859_v39 = vmul.f32 %v9423_v14, %v4733_v5  ;;  %v4736_v33 = vadd.f32 %v6567_v47, %v9337_v50  ;;  %v4727_v44 = vpop.f32.mrb[3].mxu1  ;;  %v6811_v47 = vld [vmem:[%s7100_s21 + $0x48] sm:$0xff] }
 0x404   : > { %v6465_v32 = vpop.f32.mrb[25].mxu0  ;;  %v4857_v28 = vmul.f32 %v9423_v14, %v4725_v6  ;;  %v4728_v18 = vadd.f32 %v4727_v44, %v9331_v15  ;;  %v4991_v15 = vrot.slane %v6809_v61, 1  ;;  %v4986_v29 = vrot.slane %v6811_v47, 1 }
 0x405   : > { %v6466_v62 = vadd.f32 %v6465_v32, %v6464_v52  ;;  %v6467_v13 = vpop.f32.mrb[26].mxu0  ;;  %v4897_v37 = vadd.f32 %v9439_v45, %v4859_v39  ;;  %v4860_v50 = vmul.f32 %v9423_v14, %v4736_v33  ;;  %v6812_v52 = vld [vmem:[%s7100_s21 + $0x50] sm:$0xff] }
 0x406   : > { %v6468_v56 = vpop.f32.mrb[27].mxu0  ;;  %v4895_v63 = vadd.f32 %v9439_v45, %v4857_v28  ;;  %v4858_v10 = vmul.f32 %v9423_v14, %v4728_v18  ;;  %v4987_v39 = vrot.slane %v6812_v52, 1 }
 0x407   : > { %v6469_v40 = vadd.f32 %v6468_v56, %v6467_v13  ;;  %v5090_v53 = vadd.f32 %v4983_v4, %v4897_v37  ;;  %v4898_v5 = vadd.f32 %v9439_v45, %v4860_v50  ;;  %v9463_v3 = vadd.f32 %v6466_v62, %v9400_v27 }
 0x408   : > { %v5088_v6 = vadd.f32 %v4978_v49, %v4895_v63  ;;  %v4896_v30 = vadd.f32 %v9439_v45, %v4858_v10  ;;  %v6570_v43 = vpop.f32.mrb[4].mxu1  ;;  %v4993_v49 = vsel %vm613_vm0, %v4991_v15, %v4992_v26  ;;  %v4995_v50 = vsel %vm613_vm0, %v4992_v26, %v4994_v19 }
 0x409   : > { %v5122_v33 = vmax.f32 %v5090_v53, 0.0  ;;  %v5091_v44 = vadd.f32 %v4985_v22, %v4898_v5  ;;  %v4749_v32 = vadd.f32 %v6570_v43, %v9347_v48  ;;  %v4740_v28 = vpop.f32.mrb[5].mxu1  ;;  %v9470_v4 = vadd.f32 %v6469_v40, %v9403_v23 }
 0x40a   : > { %v5120_v18 = vmax.f32 %v5088_v6, 0.0  ;;  %v5089_v27 = vadd.f32 %v4980_v60, %v4896_v30  ;;  %v4741_v62 = vadd.f32 %v4740_v28, %v9341_v35  ;;  %v6571_v13 = vpop.f32.mrb[6].mxu1  ;;  %v4988_v10 = vsel %vm613_vm0, %v4986_v29, %v4987_v39  ;;  %v6814_v30 = vld [vmem:[%s7100_s21 + $0x98] sm:$0xff]  ;;  %v6816_v28 = vld [vmem:[%s7100_s21 + $0x80] sm:$0xff] }
 0x40b   : > { %5154 = vst [vmem:[%s9475_s14 + $0x10] sm:$0xff] %v5122_v33  ;;  %v6470_v22 = vpop.f32.mrb[28].mxu0  ;;  %v5123_v37 = vmax.f32 %v5091_v44, 0.0  ;;  %v4863_v48 = vmul.f32 %v9423_v14, %v4749_v32  ;;  %v4752_v23 = vadd.f32 %v6571_v13, %v9349_v7  ;;  %v4743_v60 = vpop.f32.mrb[7].mxu1  ;;  %v4990_v19 = vsel %vm613_vm0, %v4987_v39, %v4989_v57  ;;  %v6815_v44 = vld [vmem:[%s7100_s21 + $0x78] sm:$0xff] }
 0x40c   : > { %5152 = vst [vmem:[%s9475_s14] sm:$0xff] %v5120_v18  ;;  %v6471_v35 = vpop.f32.mrb[29].mxu0  ;;  %v5121_v56 = vmax.f32 %v5089_v27, 0.0  ;;  %v4861_v63 = vmul.f32 %v9423_v14, %v4741_v62  ;;  %v4744_v61 = vadd.f32 %v4743_v60, %v9343_v58  ;;  %v6813_v58 = vld [vmem:[%s7100_s21 + $0x90] sm:$0xff]  ;;  %v5002_v43 = vrot.slane %v6814_v30, 1 }
 0x40d   : > { %v6472_v15 = vadd.f32 %v6471_v35, %v6470_v22  ;;  %5155 = vst [vmem:[%s9475_s14 + $0x18] sm:$0xff] %v5123_v37  ;;  %v6473_v20 = vpop.f32.mrb[30].mxu0  ;;  %v4901_v40 = vadd.f32 %v9439_v45, %v4863_v48  ;;  %v4864_v7 = vmul.f32 %v9423_v14, %v4752_v23  ;;  %v5001_v6 = vrot.slane %v6813_v58, 1 }
 0x40e   : > { %5153 = vst [vmem:[%s9475_s14 + $0x8] sm:$0xff] %v5121_v56  ;;  %v6474_v26 = vpop.f32.mrb[31].mxu0  ;;  %v4899_v53 = vadd.f32 %v9439_v45, %v4861_v63  ;;  %v4862_v5 = vmul.f32 %v9423_v14, %v4744_v61  ;;  %v4996_v32 = vrot.slane %v6815_v44, 1  ;;  %v4997_v18 = vrot.slane %v6816_v28, 1  ;;  %v6818_v56 = vld [vmem:[%s7100_s21 + $0x88] sm:$0x3] }
 0x40f   : > { %v6475_v47 = vadd.f32 %v6474_v26, %v6473_v20  ;;  %v5094_v29 = vadd.f32 %v4993_v49, %v4901_v40  ;;  %v4902_v52 = vadd.f32 %v9439_v45, %v4864_v7  ;;  %v9498_v11 = vadd.f32 %v6472_v15, %v9410_v21  ;;  %v6817_v21 = vld [vmem:[%s7100_s21 + $0xa0] sm:$0x3] }
 0x410   : > { %v5092_v57 = vadd.f32 %v4988_v10, %v4899_v53  ;;  %v4900_v39 = vadd.f32 %v9439_v45, %v4862_v5  ;;  %v6574_v33 = vpop.f32.mrb[8].mxu1  ;;  %v5004_v37 = vrot.slane %v6817_v21, 1  ;;  %v4999_v63 = vrot.slane %v6818_v56, 1 }
 0x411   : > { %v5126_v27 = vmax.f32 %v5094_v29, 0.0  ;;  %v5095_v62 = vadd.f32 %v4995_v50, %v4902_v52  ;;  %v4765_v13 = vadd.f32 %v6574_v33, %v9359_v25  ;;  %v4756_v49 = vpop.f32.mrb[9].mxu1  ;;  %v9505_v22 = vadd.f32 %v6475_v47, %v9413_v54  ;;  %v6821_v33 = vld [vmem:[%s7100_s21 + $0xa8] sm:$0xff] }
 0x412   : > { %v5124_v48 = vmax.f32 %v5092_v57, 0.0  ;;  %v5093_v23 = vadd.f32 %v4990_v19, %v4900_v39  ;;  %v4757_v60 = vadd.f32 %v4756_v49, %v9353_v46  ;;  %v6575_v35 = vpop.f32.mrb[10].mxu1  ;;  %v5003_v15 = vsel %vm613_vm0, %v5001_v6, %v5002_v43  ;;  %v6819_v6 = vld [vmem:[%s7100_s21 + $0xc0] sm:$0xff]  ;;  %v6820_v57 = vld [vmem:[%s7100_s21 + $0xc8] sm:$0xff] }
 0x413   : > { %5158 = vst [vmem:[%s9475_s14 + $0x30] sm:$0xff] %v5126_v27  ;;  %v5127_v50 = vmax.f32 %v5095_v62, 0.0  ;;  %v4867_v25 = vmul.f32 %v9423_v14, %v4765_v13  ;;  %v4768_v10 = vadd.f32 %v6575_v35, %v9361_v8  ;;  %v4759_v61 = vpop.f32.mrb[11].mxu1  ;;  %v4998_v7 = vsel %vm613_vm0, %v4996_v32, %v4997_v18  ;;  %v6823_v13 = vld [vmem:[%s7100_s21 + $0xd0] sm:$0x3] }
 0x414   : > { %5156 = vst [vmem:[%s9475_s14 + $0x20] sm:$0xff] %v5124_v48  ;;  %v5125_v54 = vmax.f32 %v5093_v23, 0.0  ;;  %v4865_v20 = vmul.f32 %v9423_v14, %v4757_v60  ;;  %v4760_v46 = vadd.f32 %v4759_v61, %v9355_v59  ;;  %v5005_v26 = vsel %vm613_vm0, %v5002_v43, %v5004_v37  ;;  %v6824_v60 = vld [vmem:[%s7100_s21 + $0xb8] sm:$0x3] }
 0x415   : > { %5159 = vst [vmem:[%s9475_s14 + $0x38] sm:$0xff] %v5127_v50  ;;  %v4905_v40 = vadd.f32 %v9439_v45, %v4867_v25  ;;  %v4868_v19 = vmul.f32 %v9423_v14, %v4768_v10  ;;  %v5000_v58 = vsel %vm613_vm0, %v4997_v18, %v4999_v63  ;;  %v5011_v30 = vrot.slane %v6819_v6, 1  ;;  %v6822_v18 = vld [vmem:[%s7100_s21 + $0xb0] sm:$0xff] }
 0x416   : > { %5157 = vst [vmem:[%s9475_s14 + $0x28] sm:$0xff] %v5125_v54  ;;  %v4903_v8 = vadd.f32 %v9439_v45, %v4865_v20  ;;  %v4866_v53 = vmul.f32 %v9423_v14, %v4760_v46  ;;  %v5012_v39 = vrot.slane %v6820_v57, 1  ;;  %v5006_v43 = vrot.slane %v6821_v33, 1  ;;  %v6828_v33 = vld [vmem:[%s7100_s21 + $0xe0] sm:$0xff] }
 0x417   : > { %v5098_v5 = vadd.f32 %v5003_v15, %v4905_v40  ;;  %v4906_v59 = vadd.f32 %v9439_v45, %v4868_v19  ;;  %v5007_v62 = vrot.slane %v6822_v18, 1  ;;  %v5014_v49 = vrot.slane %v6823_v13, 1  ;;  %v6830_v13 = vld [vmem:[%s7100_s21 + $0xe8] sm:$0x3] }
 0x418   : > { %v5096_v47 = vadd.f32 %v4998_v7, %v4903_v8  ;;  %v4904_v29 = vadd.f32 %v9439_v45, %v4866_v53  ;;  %v6578_v52 = vpop.f32.mrb[12].mxu1  ;;  %v5009_v35 = vrot.slane %v6824_v60, 1  ;;  %v5013_v10 = vsel %vm613_vm0, %v5011_v30, %v5012_v39  ;;  %v6825_v8 = vld [vmem:[%s7100_s21 + $0xf0] sm:$0xff]  ;;  %v6827_v30 = vld [vmem:[%s7100_s21 + $0xd8] sm:$0xff] }
 0x419   : > { %v5130_v44 = vmax.f32 %v5098_v5, 0.0  ;;  %v5099_v32 = vadd.f32 %v5005_v26, %v4906_v59  ;;  %v4781_v28 = vadd.f32 %v6578_v52, %v9371_v42  ;;  %v4772_v27 = vpop.f32.mrb[13].mxu1  ;;  %v5008_v15 = vsel %vm613_vm0, %v5006_v43, %v5007_v62 }
 0x41a   : > { %v5128_v21 = vmax.f32 %v5096_v47, 0.0  ;;  %v5097_v37 = vadd.f32 %v5000_v58, %v4904_v29  ;;  %v4773_v48 = vadd.f32 %v4772_v27, %v9365_v38  ;;  %v6579_v23 = vpop.f32.mrb[14].mxu1  ;;  %v5015_v46 = vsel %vm613_vm0, %v5012_v39, %v5014_v49  ;;  %v6826_v58 = vld [vmem:[%s7100_s21 + $0xf8] sm:$0xff] }
 0x41b   : > { %5162 = vst [vmem:[%s9475_s14 + $0x50] sm:$0xff] %v5130_v44  ;;  %v5131_v56 = vmax.f32 %v5099_v32, 0.0  ;;  %v4871_v63 = vmul.f32 %v9423_v14, %v4781_v28  ;;  %v4784_v42 = vadd.f32 %v6579_v23, %v9373_v12  ;;  %v4775_v50 = vpop.f32.mrb[15].mxu1  ;;  %v5010_v19 = vsel %vm613_vm0, %v5007_v62, %v5009_v35  ;;  %v6829_v44 = vld [vmem:[%s7100_s21 + $0x100] sm:$0x3] }
 0x41c   : > { %5160 = vst [vmem:[%s9475_s14 + $0x40] sm:$0xff] %v5128_v21  ;;  %v5129_v25 = vmax.f32 %v5097_v37, 0.0  ;;  %v4869_v61 = vmul.f32 %v9423_v14, %v4773_v48  ;;  %v4776_v38 = vadd.f32 %v4775_v50, %v9367_v16  ;;  %v5021_v26 = vrot.slane %v6825_v8, 1 }
 0x41d   : > { %5163 = vst [vmem:[%s9475_s14 + $0x58] sm:$0xff] %v5131_v56  ;;  %v4909_v54 = vadd.f32 %v9439_v45, %v4871_v63  ;;  %v4872_v20 = vmul.f32 %v9423_v14, %v4784_v42  ;;  %v5022_v6 = vrot.slane %v6826_v58, 1  ;;  %v5016_v47 = vrot.slane %v6827_v30, 1  ;;  %v6835_v58 = vld [vmem:[%s7100_s21 + $0x130] sm:$0x3] }
 0x41e   : > { %5161 = vst [vmem:[%s9475_s14 + $0x48] sm:$0xff] %v5129_v25  ;;  %v4907_v12 = vadd.f32 %v9439_v45, %v4869_v61  ;;  %v4870_v40 = vmul.f32 %v9423_v14, %v4776_v38  ;;  %v5017_v43 = vrot.slane %v6828_v33, 1  ;;  %v5024_v32 = vrot.slane %v6829_v44, 1  ;;  %v6831_v38 = vld [vmem:[%s7100_s21 + $0x120] sm:$0xff] }
 0x41f   : > { %v5102_v7 = vadd.f32 %v5013_v10, %v4909_v54  ;;  %v4910_v16 = vadd.f32 %v9439_v45, %v4872_v20  ;;  %v5019_v49 = vrot.slane %v6830_v13, 1  ;;  %v5023_v60 = vsel %vm613_vm0, %v5021_v26, %v5022_v6 }
 0x420   : > { %v5100_v53 = vadd.f32 %v5008_v15, %v4907_v12  ;;  %v4908_v5 = vadd.f32 %v9439_v45, %v4870_v40  ;;  %v6582_v59 = vpop.f32.mrb[16].mxu1  ;;  %v5018_v63 = vsel %vm613_vm0, %v5016_v47, %v5017_v43  ;;  %v5025_v50 = vsel %vm613_vm0, %v5022_v6, %v5024_v32 }
 0x421   : > { %v5134_v29 = vmax.f32 %v5102_v7, 0.0  ;;  %v5103_v52 = vadd.f32 %v5015_v46, %v4910_v16  ;;  %v4797_v57 = vadd.f32 %v6582_v59, %v9383_v31  ;;  %v4788_v39 = vpop.f32.mrb[17].mxu1  ;;  %v5020_v61 = vsel %vm613_vm0, %v5017_v43, %v5019_v49  ;;  %v6832_v46 = vld [vmem:[%s7100_s21 + $0x128] sm:$0xff] }
 0x422   : > { %v5132_v28 = vmax.f32 %v5100_v53, 0.0  ;;  %v5101_v27 = vadd.f32 %v5010_v19, %v4908_v5  ;;  %v4789_v18 = vadd.f32 %v4788_v39, %v9377_v2  ;;  %v6583_v62 = vpop.f32.mrb[18].mxu1  ;;  %v5031_v54 = vrot.slane %v6831_v38, 1  ;;  %v6833_v7 = vld [vmem:[%s7100_s21 + $0x108] sm:$0xff]  ;;  %v6834_v5 = vld [vmem:[%s7100_s21 + $0x110] sm:$0xff] }
 0x423   : > { %5166 = vst [vmem:[%s9475_s14 + $0x70] sm:$0xff] %v5134_v29  ;;  %v5135_v21 = vmax.f32 %v5103_v52, 0.0  ;;  %v4875_v37 = vmul.f32 %v9423_v14, %v4797_v57  ;;  %v4800_v31 = vadd.f32 %v6583_v62, %v9385_v17  ;;  %v4791_v48 = vpop.f32.mrb[19].mxu1  ;;  %v5032_v40 = vrot.slane %v6832_v46, 1  ;;  %v6836_v57 = vld [vmem:[%s7100_s21 + $0x118] sm:$0x3] }
 0x424   : > { %5164 = vst [vmem:[%s9475_s14 + $0x60] sm:$0xff] %v5132_v28  ;;  %v5133_v23 = vmax.f32 %v5101_v27, 0.0  ;;  %v4873_v35 = vmul.f32 %v9423_v14, %v4789_v18  ;;  %v4792_v2 = vadd.f32 %v4791_v48, %v9379_v1  ;;  %v5026_v16 = vrot.slane %v6833_v7, 1  ;;  %v6837_v48 = vld [vmem:[%s7100_s21 + $0x150] sm:$0xff]  ;;  %v6842_v7 = vld [vmem:[%s7100_s21 + $0x148] sm:$0x3] }
 0x425   : > { %5167 = vst [vmem:[%s9475_s14 + $0x78] sm:$0xff] %v5135_v21  ;;  %v4913_v56 = vadd.f32 %v9439_v45, %v4875_v37  ;;  %v4876_v42 = vmul.f32 %v9423_v14, %v4800_v31  ;;  %v5027_v59 = vrot.slane %v6834_v5, 1  ;;  %v5034_v6 = vrot.slane %v6835_v58, 1 }
 0x426   : > { %5165 = vst [vmem:[%s9475_s14 + $0x68] sm:$0xff] %v5133_v23  ;;  %v4911_v17 = vadd.f32 %v9439_v45, %v4873_v35  ;;  %v4874_v25 = vmul.f32 %v9423_v14, %v4792_v2  ;;  %v5029_v39 = vrot.slane %v6836_v57, 1  ;;  %v5033_v28 = vsel %vm613_vm0, %v5031_v54, %v5032_v40  ;;  %v6841_v54 = vld [vmem:[%s7100_s21 + $0x160] sm:$0x3] }
 0x427   : > { %v5106_v10 = vadd.f32 %v5023_v60, %v4913_v56  ;;  %v4914_v1 = vadd.f32 %v9439_v45, %v4876_v42  ;;  %v5028_v62 = vsel %vm613_vm0, %v5026_v16, %v5027_v59  ;;  %v5035_v49 = vsel %vm613_vm0, %v5032_v40, %v5034_v6  ;;  %v6838_v56 = vld [vmem:[%s7100_s21 + $0x158] sm:$0xff] }
 0x428   : > { %v5104_v15 = vadd.f32 %v5018_v63, %v4911_v17  ;;  %v4912_v20 = vadd.f32 %v9439_v45, %v4874_v25  ;;  %v6586_v12 = vpop.f32.mrb[20].mxu1  ;;  %v5030_v31 = vsel %vm613_vm0, %v5027_v59, %v5029_v39  ;;  %v5041_v23 = vrot.slane %v6837_v48, 1  ;;  %v6839_v42 = vld [vmem:[%s7100_s21 + $0x138] sm:$0xff]  ;;  %v6843_v39 = vld [vmem:[%s7100_s21 + $0x180] sm:$0xff] }
 0x429   : > { %v5138_v19 = vmax.f32 %v5106_v10, 0.0  ;;  %v5107_v8 = vadd.f32 %v5025_v50, %v4914_v1  ;;  %v4813_v26 = vadd.f32 %v6586_v12, %v9395_v0  ;;  %v4804_v53 = vpop.f32.mrb[21].mxu1  ;;  %v5042_v63 = vrot.slane %v6838_v56, 1 }
 0x42a   : > { %v5136_v30 = vmax.f32 %v5104_v15, 0.0  ;;  %v5105_v47 = vadd.f32 %v5020_v61, %v4912_v20  ;;  %v4805_v29 = vadd.f32 %v4804_v53, %v9389_v51  ;;  %v6587_v52 = vpop.f32.mrb[22].mxu1  ;;  %v5036_v17 = vrot.slane %v6839_v42, 1  ;;  %v6840_v61 = vld [vmem:[%s7100_s21 + $0x140] sm:$0xff] }
 0x42b   : > { %5170 = vst [vmem:[%s9475_s14 + $0x90] sm:$0xff] %v5138_v19  ;;  %v5139_v33 = vmax.f32 %v5107_v8, 0.0  ;;  %v4879_v43 = vmul.f32 %v9423_v14, %v4813_v26  ;;  %v4816_v0 = vadd.f32 %v6587_v52, %v9397_v55  ;;  %v4807_v44 = vpop.f32.mrb[23].mxu1  ;;  %v5037_v38 = vrot.slane %v6840_v61, 1 }
 0x42c   : > { %5168 = vst [vmem:[%s9475_s14 + $0x80] sm:$0xff] %v5136_v30  ;;  %v5137_v32 = vmax.f32 %v5105_v47, 0.0  ;;  %v4877_v27 = vmul.f32 %v9423_v14, %v4805_v29  ;;  %v4808_v51 = vadd.f32 %v4807_v44, %v9391_v9  ;;  %v5044_v15 = vrot.slane %v6841_v54, 1 }
 0x42d   : > { %5171 = vst [vmem:[%s9475_s14 + $0x98] sm:$0xff] %v5139_v33  ;;  %v4917_v18 = vadd.f32 %v9439_v45, %v4879_v43  ;;  %v4880_v13 = vmul.f32 %v9423_v14, %v4816_v0  ;;  %v5039_v16 = vrot.slane %v6842_v7, 1  ;;  %v5043_v5 = vsel %vm613_vm0, %v5041_v23, %v5042_v63 }
 0x42e   : > { %5169 = vst [vmem:[%s9475_s14 + $0x88] sm:$0xff] %v5137_v32  ;;  %v4915_v55 = vadd.f32 %v9439_v45, %v4877_v27  ;;  %v4878_v21 = vmul.f32 %v9423_v14, %v4808_v51  ;;  %v5038_v6 = vsel %vm613_vm0, %v5036_v17, %v5037_v38  ;;  %v5045_v47 = vsel %vm613_vm0, %v5042_v63, %v5044_v15  ;;  %v6844_v32 = vld [vmem:[%s7100_s21 + $0x188] sm:$0xff] }
 0x42f   : > { %v5110_v37 = vadd.f32 %v5033_v28, %v4917_v18  ;;  %v4918_v9 = vadd.f32 %v9439_v45, %v4880_v13  ;;  %v5040_v57 = vsel %vm613_vm0, %v5037_v38, %v5039_v16  ;;  %v5051_v33 = vrot.slane %v6843_v39, 1  ;;  %v6845_v27 = vld [vmem:[%s7100_s21 + $0x168] sm:$0xff] }
 0x430   : > { %v5108_v60 = vadd.f32 %v5028_v62, %v4915_v55  ;;  %v4916_v35 = vadd.f32 %v9439_v45, %v4878_v21  ;;  %v6590_v2 = vpop.f32.mrb[24].mxu1  ;;  %v5052_v28 = vrot.slane %v6844_v32, 1  ;;  %v5046_v51 = vrot.slane %v6845_v27, 1 }
 0x431   : > { %v5142_v50 = vmax.f32 %v5110_v37, 0.0  ;;  %v5111_v25 = vadd.f32 %v5035_v49, %v4918_v9  ;;  %v4829_v10 = vadd.f32 %v6590_v2, %v9417_v41  ;;  %v4820_v1 = vpop.f32.mrb[25].mxu1  ;;  %v6846_v49 = vld [vmem:[%s7100_s21 + $0x170] sm:$0xff] }
 0x432   : > { %v5140_v20 = vmax.f32 %v5108_v60, 0.0  ;;  %v5109_v12 = vadd.f32 %v5030_v31, %v4916_v35  ;;  %v4821_v46 = vadd.f32 %v4820_v1, %v9405_v36  ;;  %v6591_v40 = vpop.f32.mrb[26].mxu1  ;;  %v5047_v21 = vrot.slane %v6846_v49, 1  ;;  %v6847_v37 = vld [vmem:[%s7100_s21 + $0x190] sm:$0x3] }
 0x433   : > { %5174 = vst [vmem:[%s9475_s14 + $0xb0] sm:$0xff] %v5142_v50  ;;  %v5143_v19 = vmax.f32 %v5111_v25, 0.0  ;;  %v4883_v8 = vmul.f32 %v9423_v14, %v4829_v10  ;;  %v4832_v41 = vadd.f32 %v6591_v40, %v9429_v34  ;;  %v4823_v26 = vpop.f32.mrb[27].mxu1  ;;  %v5054_v9 = vrot.slane %v6847_v37, 1  ;;  %v6848_v35 = vld [vmem:[%s7100_s21 + $0x178] sm:$0x3] }
 0x434   : > { %5172 = vst [vmem:[%s9475_s14 + $0xa0] sm:$0xff] %v5140_v20  ;;  %v5141_v53 = vmax.f32 %v5109_v12, 0.0  ;;  %v4881_v59 = vmul.f32 %v9423_v14, %v4821_v46  ;;  %v4824_v36 = vadd.f32 %v4823_v26, %v9407_v24  ;;  %v5049_v2 = vrot.slane %v6848_v35, 1  ;;  %s5555_s21 = sshll.u32 %s6978_s28, 12  ;;  %s9673_s28 = scalar_lea.sflag [#allocation4], %s269_s8 }
 0x435   : > { %5175 = vst [vmem:[%s9475_s14 + $0xb8] sm:$0xff] %v5143_v19  ;;  %v4921_v58 = vadd.f32 %v9439_v45, %v4883_v8  ;;  %v4884_v30 = vmul.f32 %v9423_v14, %v4832_v41  ;;  %v5053_v50 = vsel %vm613_vm0, %v5051_v33, %v5052_v28  ;;  %v5048_v1 = vsel %vm613_vm0, %v5046_v51, %v5047_v21  ;;  %s9664_s19 = scalar_lea.hbm %s9721_s7, %s5555_s21 }
 0x436   : > { %5173 = vst [vmem:[%s9475_s14 + $0xa8] sm:$0xff] %v5141_v53  ;;  %v4919_v34 = vadd.f32 %v9439_v45, %v4881_v59  ;;  %v4882_v29 = vmul.f32 %v9423_v14, %v4824_v36  ;;  %v5055_v38 = vsel %vm613_vm0, %v5052_v28, %v5054_v9 }
 0x437   : > { %v5114_v52 = vadd.f32 %v5043_v5, %v4921_v58  ;;  %v4922_v24 = vadd.f32 %v9439_v45, %v4884_v30 }
 0x438   : > { %v5112_v43 = vadd.f32 %v5038_v6, %v4919_v34  ;;  %v4920_v0 = vadd.f32 %v9439_v45, %v4882_v29  ;;  %v6594_v44 = vpop.f32.mrb[28].mxu1 }
 0x439   : > { %v5146_v18 = vmax.f32 %v5114_v52, 0.0  ;;  %v5115_v62 = vadd.f32 %v5045_v47, %v4922_v24  ;;  %v4845_v13 = vadd.f32 %v6594_v44, %v9498_v11  ;;  %v4836_v55 = vpop.f32.mrb[29].mxu1 }
 0x43a   : > { %v5144_v31 = vmax.f32 %v5112_v43, 0.0  ;;  %v5113_v48 = vadd.f32 %v5040_v57, %v4920_v0  ;;  %v4837_v23 = vadd.f32 %v4836_v55, %v9463_v3  ;;  %v6595_v60 = vpop.f32.mrb[30].mxu1 }
 0x43b   : > { %5178 = vst [vmem:[%s9475_s14 + $0xd0] sm:$0xff] %v5146_v18  ;;  %v5147_v56 = vmax.f32 %v5115_v62, 0.0  ;;  %v4887_v63 = vmul.f32 %v9423_v14, %v4845_v13  ;;  %v4848_v11 = vadd.f32 %v6595_v60, %v9505_v22  ;;  %v4839_v42 = vpop.f32.mrb[31].mxu1 }
 0x43c   : > { %5176 = vst [vmem:[%s9475_s14 + $0xc0] sm:$0xff] %v5144_v31  ;;  %v5145_v17 = vmax.f32 %v5113_v48, 0.0  ;;  %v4885_v25 = vmul.f32 %v9423_v14, %v4837_v23  ;;  %v4840_v3 = vadd.f32 %v4839_v42, %v9470_v4  ;;  %v5050_v4 = vsel %vm613_vm0, %v5047_v21, %v5049_v2 }
 0x43d   : > { %5179 = vst [vmem:[%s9475_s14 + $0xd8] sm:$0xff] %v5147_v56  ;;  %v4925_v10 = vadd.f32 %v9439_v45, %v4887_v63  ;;  %v4888_v61 = vmul.f32 %v9423_v14, %v4848_v11 }
 0x43e   : > { %5177 = vst [vmem:[%s9475_s14 + $0xc8] sm:$0xff] %v5145_v17  ;;  %v4923_v22 = vadd.f32 %v9439_v45, %v4885_v25  ;;  %v4886_v54 = vmul.f32 %v9423_v14, %v4840_v3 }
 0x43f   : > { %v5118_v15 = vadd.f32 %v5053_v50, %v4925_v10  ;;  %v4926_v20 = vadd.f32 %v9439_v45, %v4888_v61 }
 0x440   : > { %v5116_v12 = vadd.f32 %v5048_v1, %v4923_v22  ;;  %v4924_v46 = vadd.f32 %v9439_v45, %v4886_v54 }
 0x441   : > { %v5150_v40 = vmax.f32 %v5118_v15, 0.0  ;;  %v5119_v7 = vadd.f32 %v5055_v38, %v4926_v20 }
 0x442   : > { %v5148_v16 = vmax.f32 %v5116_v12, 0.0  ;;  %v5117_v19 = vadd.f32 %v5050_v4, %v4924_v46 }
 0x443   : > { %5182 = vst [vmem:[%s9475_s14 + $0xf0] sm:$0xff] %v5150_v40  ;;  %v5151_v14 = vmax.f32 %v5119_v7, 0.0 }
 0x444   : > { %5180 = vst [vmem:[%s9475_s14 + $0xe0] sm:$0xff] %v5148_v16  ;;  %v5149_v45 = vmax.f32 %v5117_v19, 0.0 }
 0x445   : > { %5183 = vst [vmem:[%s9475_s14 + $0xf8] sm:$0xff] %v5151_v14 }
 0x446   : > { %5181 = vst [vmem:[%s9475_s14 + $0xe8] sm:$0xff] %v5149_v45 }
 0x447   : > { %6862 = shalt.err (!%p6859_p3)
}
 0x448   : > { %s6863_s8 = scalar_lea.hbm %s9664_s19, 4096  ;;  %s6867_s13 = scalar_lea.hbm %s9721_s7, 8192 }
 0x449   : > { %p6864_p4 = scmp.ne.s32.totalorder %s9664_s19, %s6863_s8  ;;  %p6868_p9 = scmp.lt.u32.totalorder %s9664_s19, %s9721_s7 }
 0x44a   : > { %p6869_p10 = scmp.lt.u32.totalorder %s6867_s13, %s6863_s8  ;;  %p6871_p12 = scmp.lt.u32.totalorder %s6863_s8, %s9664_s19 }
 0x44b   : > { %p6865_p7 = pnand %p6864_p4, %p6995_p5 }
 0x44c   : > { %p6870_p11 = por %p6869_p10, %p6868_p9 }
 0x44d   : > { %p6866_p8 = pneg %p6865_p7 }
 0x44e   : > { %p6872_p13 = por %p6871_p12, %p6870_p11 }
 0x450   : > { %p6873_p0 = pnand %p6872_p13, %p6866_p8 }
 0x452   : > { %6876 = shalt.err (!%p6873_p0)
}
 0x453   : > { %s6915_s17 = smov 128   ;;  %s6916_s18 = smov 8  }
 0x454   : > { %6597 = dma.vmem_to_hbm [thread:$0]  (%p6995_p5), %s9666_s16, 4096, %s9664_s19, %s9673_s28, %s6915_s17, %s6915_s17, %s6916_s18  }
 0x455 PF: > { %p6603_p1 = scmp.ge.s32.totalorder %s6911_s27, 2  ;;  %s5213_s15 = sand.u32 1, %s6899_s24  }
 0x456   : > { %s5214_s20 = scalar_lea.sflag [#allocation4], %s5213_s15 }
 0x457   : > { %p6600_p2 = pnand %p6603_p1, %p6999_p6 }
 0x459   : > { %6894 = dma.done.wait (!%p6600_p2), %s5214_s20, 4096  }
 0x45a   : > { %6896 = vsyncadd (!%p6600_p2), %s5214_s20, 4294963200  ;;  %p17_p3 = scmp.ge.s32.totalorder %s6982_s30, 4   ;;  %s9853_s24 = smov %s6903_s25 }
 0x45b   : > { %s9854_s25 = smov %s6907_s26  ;;  %s9855_s26 = smov %s6993_s10 }
 0x45c   : > { %s9856_s27 = smov %s6982_s30  ;;  %19 = sbr.rel (!%p17_p3) target bundleno = 3 (0x3), region = 85 }
 0x463   :  { %5219 = vsyncpa [#allocation4], 1 }
 0x464   :  { %5221 = vsyncpa [#allocation4 + $0x1], 1 }

</bundles_post_ra>
